<compile_context>
chip_gen: v7x
topology: tpu7x:2x2x1
jax: 0.10.0
libtpu: 0.0.40
codegen_flags: <defaults>
</compile_context>

<pallas_src>
import functools

import numpy as np
import jax
import jax.numpy as jnp
from jax.experimental import pallas as pl
from jax.experimental.pallas import tpu as pltpu


# ---------------------------------------------------------------------------
# Host-side helpers (numpy) mirroring scipy.get_window / librosa pad_center /
# window_sumsquare used by the original module.
# ---------------------------------------------------------------------------
def _hann_periodic(n):
    return 0.5 - 0.5 * np.cos(2.0 * np.pi * np.arange(n) / n)


def _pad_center(v, size):
    n = len(v)
    lpad = (size - n) // 2
    out = np.zeros(size, dtype=np.float64)
    out[lpad:lpad + n] = v
    return out


def _window_sumsquare(win_length, n_frames, hop_length, n_fft):
    n = n_fft + hop_length * (n_frames - 1)
    x = np.zeros(n, dtype=np.float64)
    win_sq = _pad_center(_hann_periodic(win_length) ** 2, n_fft)
    for i in range(n_frames):
        s = i * hop_length
        x[s:min(n, s + n_fft)] += win_sq[:max(0, min(n_fft, n - s))]
    return x


def _round_up(x, m):
    return ((x + m - 1) // m) * m


def build_stft_params(filter_length=800, hop_length=200, win_length=800):
    """Precompute the packed windowed forward/inverse bases in kernel layout."""
    assert filter_length >= win_length
    assert filter_length % hop_length == 0, \
        "kernel assumes filter_length % hop_length == 0"
    fl, hop = filter_length, hop_length
    cutoff = fl // 2 + 1
    K = fl // hop
    scale = fl / hop

    fb = np.fft.fft(np.eye(fl))
    fourier = np.vstack([np.real(fb[:cutoff, :]), np.imag(fb[:cutoff, :])])  # (2c, fl)
    inv = np.linalg.pinv(scale * fourier).T                                  # (2c, fl)
    win = _pad_center(_hann_periodic(win_length), fl)
    fwd_w = fourier * win
    inv_w = inv * win

    cc = 2 * cutoff
    cc_pad = _round_up(cc, 128)     # packed [real | imag] bin axis, lane-dense
    fl_pad = _round_up(fl, 128)

    # Analysis:  spec_tile = frames_tile @ wf     (tile_f, fl_pad)@(fl_pad, cc_pad)
    wf = np.zeros((fl_pad, cc_pad), np.float32)
    wf[:fl, :cc] = fwd_w.T.astype(np.float32)
    # Synthesis: y_tile = spec_tile @ wi          (tile_f, cc_pad)@(cc_pad, fl_pad)
    wi = np.zeros((cc_pad, fl_pad), np.float32)
    wi[:cc, :fl] = inv_w.astype(np.float32)

    return dict(filter_length=fl, hop_length=hop, win_length=win_length,
                cutoff=cutoff, K=K, scale=scale, cc_pad=cc_pad, fl_pad=fl_pad,
                wf=jnp.asarray(wf), wi=jnp.asarray(wi))


# ---------------------------------------------------------------------------
# Fused Pallas kernel: analysis matmul -> synthesis matmul -> overlap-add
# (local scratch + carried spill) -> window_sumsquare correction -> store.
# ---------------------------------------------------------------------------
def _stft_roundtrip_kernel(frames_ref, wf_ref, wi_ref, corr_ref, out_ref,
                           acc_ref, carry_ref, *, tile_f, K, hop):
    ft = pl.program_id(1)

    if K > 1:
        @pl.when(ft == 0)
        def _reset_carry():
            carry_ref[...] = jnp.zeros_like(carry_ref)

    # ---- analysis: one MXU matmul against the packed [real | imag] basis ----
    x = frames_ref[0]                                                # (tile_f, fl_pad)
    spec = jnp.dot(x, wf_ref[...], preferred_element_type=jnp.float32)

    # The module's magnitude/phase recombination
    #   [mag*cos(atan2(im,re)), mag*sin(atan2(im,re))] == [re, im]
    # is the identity map (also at re = im = 0), so the recombined spectrum is
    # `spec` itself; recomputing it would only add VPU work and rounding noise.

    # ---- synthesis: one MXU matmul against the stacked inverse basis ----
    y = jnp.dot(spec, wi_ref[...], preferred_element_type=jnp.float32)  # (tile_f, fl_pad)

    # ---- overlap-add into a local accumulator; one HBM store per tile ----
    # Frame r of this tile contributes its K hop-wide chunks to local rows
    # r .. r+K-1; rows >= tile_f spill into the carry consumed by the next tile.
    n_acc = acc_ref.shape[0]
    acc_ref[0:tile_f, :] = y[:, 0:hop]                               # tap j = 0
    if n_acc > tile_f:
        acc_ref[tile_f:n_acc, :] = jnp.zeros((n_acc - tile_f, hop), jnp.float32)
    if K > 1:
        acc_ref[0:K - 1, :] += carry_ref[0:K - 1, :]                 # previous spill
    for j in range(1, K):                                            # static unroll
        acc_ref[j:j + tile_f, :] += y[:, j * hop:(j + 1) * hop]

    out_ref[0] = acc_ref[0:tile_f, :] * corr_ref[...]
    if K > 1:
        carry_ref[0:K - 1, :] = acc_ref[tile_f:tile_f + K - 1, :]


def stft_forward(params, x, *, tile_f=256):
    """Forward of the STFT module: reconstruction = inverse(transform(x)).

    x: (B, num_samples) float32.  Returns (B, 1, (n_frames-1)*hop) float32.
    """
    fl = params["filter_length"]
    hop = params["hop_length"]
    wl = params["win_length"]
    K = params["K"]
    scale = params["scale"]
    fl_pad = params["fl_pad"]
    cc_pad = params["cc_pad"]

    B, num_samples = x.shape
    pad = fl // 2
    xp = jnp.pad(x.astype(jnp.float32), ((0, 0), (pad, pad)), mode="reflect")
    Tp = num_samples + 2 * pad
    n_frames = (Tp - fl) // hop + 1
    assert n_frames >= 1

    # Frame tiling: pad the frame axis so the K-1-chunk overlap-add overhang of
    # the last real frame still lands inside the tiled output; ghost frames are
    # explicit zero rows (zero contribution), so the tail cannot be corrupted.
    need = n_frames + K - 1
    tile_f = max(8, _round_up(min(tile_f, _round_up(need, 8)), 8))
    n_frames_pad = _round_up(need, tile_f)
    nft = n_frames_pad // tile_f

    # Materialize overlapping frames in the wrapper (cheap XLA gather, ~K x the
    # signal): each analysis step becomes one lane-dense, filter_length-deep
    # matmul instead of K misaligned hop-deep taps.
    idx = np.arange(n_frames)[:, None] * hop + np.arange(fl)[None, :]
    frames = xp[:, idx]                                              # (B, n_frames, fl)
    frames = jnp.pad(frames,
                     ((0, 0), (0, n_frames_pad - n_frames), (0, fl_pad - fl)))

    # Per-sample correction: (1/window_sumsquare where > tiny, else 1) * scale,
    # applied per output tile inside the kernel (no divide-by-zero on host).
    n_inv = (n_frames - 1) * hop + fl                                # == need * hop
    wsum = _window_sumsquare(wl, n_frames, hop, fl)
    c = np.ones(n_inv, np.float64)
    nz = wsum > np.finfo(np.float32).tiny
    c[nz] = 1.0 / wsum[nz]
    c *= scale
    corr = np.zeros(n_frames_pad * hop, np.float32)
    corr[:n_inv] = c.astype(np.float32)
    corr = jnp.asarray(corr.reshape(n_frames_pad, hop))

    acc_rows = _round_up(tile_f + K - 1, 8)
    carry_rows = _round_up(max(K - 1, 1), 8)

    kernel = functools.partial(_stft_roundtrip_kernel, tile_f=tile_f, K=K, hop=hop)
    out = pl.pallas_call(
        kernel,
        out_shape=jax.ShapeDtypeStruct((B, n_frames_pad, hop), jnp.float32),
        grid=(B, nft),
        in_specs=[
            # overlapping frames, tiled along the frame axis
            pl.BlockSpec((1, tile_f, fl_pad), lambda b, f: (b, f, 0)),
            # packed bases: grid-invariant, DMA'd once and kept resident
            pl.BlockSpec((fl_pad, cc_pad), lambda b, f: (0, 0)),
            pl.BlockSpec((cc_pad, fl_pad), lambda b, f: (0, 0)),
            # per-sample correction, tiled along the frame axis
            pl.BlockSpec((tile_f, hop), lambda b, f: (f, 0)),
        ],
        # fully tiled output: bounded VMEM residency, one pure store per tile
        out_specs=pl.BlockSpec((1, tile_f, hop), lambda b, f: (b, f, 0)),
        scratch_shapes=[
            pltpu.VMEM((acc_rows, hop), jnp.float32),    # local overlap-add acc
            pltpu.VMEM((carry_rows, hop), jnp.float32),  # K-1-chunk spill carry
        ],
        compiler_params=pltpu.CompilerParams(
            dimension_semantics=("parallel", "arbitrary"),
            vmem_limit_bytes=32 * 1024 * 1024),
    )(frames, params["wf"], params["wi"], corr)

    rec = out.reshape(B, n_frames_pad * hop)[:, pad:n_inv - pad]
    return rec[:, None, :]


# ---------------------------------------------------------------------------
# Pure numpy (float64) reference implementing the torch module's math exactly
# (conv1d, sqrt/atan2/cos/sin, conv_transpose1d, window_sumsquare, trim).
# ---------------------------------------------------------------------------
def stft_reference_np(x_np, filter_length, hop_length, win_length):
    fl, hop, wl = filter_length, hop_length, win_length
    B, _ = x_np.shape
    pad = fl // 2
    xp = np.pad(x_np.astype(np.float64), ((0, 0), (pad, pad)), mode="reflect")
    cutoff = fl // 2 + 1
    fb = np.fft.fft(np.eye(fl))
    full = np.vstack([np.real(fb[:cutoff]), np.imag(fb[:cutoff])])
    scale = fl / hop
    inv_full = np.linalg.pinv(scale * full).T
    win = _pad_center(_hann_periodic(wl), fl)
    fwd = full * win
    inv = inv_full * win

    n_frames = (xp.shape[1] - fl) // hop + 1
    spec = np.zeros((B, 2 * cutoff, n_frames))
    for t in range(n_frames):
        spec[:, :, t] = xp[:, t * hop:t * hop + fl] @ fwd.T
    re, im = spec[:, :cutoff], spec[:, cutoff:]
    mag = np.sqrt(re ** 2 + im ** 2)
    ph = np.arctan2(im, re)
    recomb = np.concatenate([mag * np.cos(ph), mag * np.sin(ph)], axis=1)

    n_inv = (n_frames - 1) * hop + fl
    out = np.zeros((B, n_inv))
    for t in range(n_frames):
        out[:, t * hop:t * hop + fl] += recomb[:, :, t] @ inv
    wsum = _window_sumsquare(wl, n_frames, hop, fl)
    nzi = wsum > np.finfo(np.float32).tiny
    out[:, nzi] /= wsum[nzi]
    out *= scale
    out = out[:, pad:n_inv - pad]
    return out[:, None, :]


if __name__ == "__main__":
    key = jax.random.PRNGKey(0)

    def check(filter_length, hop_length, win_length, B, num_samples, tile_f, k):
        params = build_stft_params(filter_length, hop_length, win_length)
        x = jax.random.normal(k, (B, num_samples), dtype=jnp.float32)
        rec = jax.block_until_ready(stft_forward(params, x, tile_f=tile_f))
        ref = stft_reference_np(np.asarray(x), filter_length, hop_length, win_length)
        assert rec.shape == ref.shape, (rec.shape, ref.shape)
        err = np.abs(np.asarray(rec) - ref).max()
        assert np.allclose(np.asarray(rec), ref, atol=2e-3, rtol=2e-3), \
            f"mismatch vs reference (max abs err {err})"

    k0, k1 = jax.random.split(key)
    # Module defaults (800/200/800); small tile_f forces several frame tiles so
    # the overlap carry, per-tile correction and zero ghost frames are exercised.
    check(800, 200, 800, B=2, num_samples=2000, tile_f=8, k=k0)
    # 128-aligned small config, default (clamped) tile size -> single-tile path.
    check(512, 128, 512, B=2, num_samples=1024, tile_f=256, k=k1)

    print("KERNEL_OK")
</pallas_src>

<mosaic_0001>
module attributes {stable_mosaic.version = 11 : i64} {
  func.func @_stft_roundtrip_kernel(%arg0: i32, %arg1: i32, %arg2: memref<1x8x896xf32, #tpu.memory_space<vmem>>, %arg3: memref<896x896xf32, #tpu.memory_space<vmem>>, %arg4: memref<896x896xf32, #tpu.memory_space<vmem>>, %arg5: memref<8x200xf32, #tpu.memory_space<vmem>>, %arg6: memref<1x8x200xf32, #tpu.memory_space<vmem>>, %arg7: memref<16x200xf32, #tpu.memory_space<vmem>>, %arg8: memref<8x200xf32, #tpu.memory_space<vmem>>) attributes {dimension_semantics = [#tpu.dimension_semantics<parallel>, #tpu.dimension_semantics<arbitrary>], iteration_bounds = array<i64: 2, 2>, scalar_prefetch = 0 : i64, scratch_operands = 2 : i64, tpu.core_type = #tpu.core_type<tc>, window_params = [{transform_indices = @transform_0, window_bounds = array<i64: 1, 8, 896>}, {pipeline_mode = #tpu.pipeline_mode<synchronous>, transform_indices = @transform_1, window_bounds = array<i64: 896, 896>}, {pipeline_mode = #tpu.pipeline_mode<synchronous>, transform_indices = @transform_2, window_bounds = array<i64: 896, 896>}, {transform_indices = @transform_3, window_bounds = array<i64: 8, 200>}, {transform_indices = @transform_4, window_bounds = array<i64: 1, 8, 200>}]} {
    %c0_i32 = arith.constant 0 : i32
    %0 = arith.cmpi eq, %arg1, %c0_i32 : i32
    %1 = arith.extui %0 : i1 to i32
    %c0_i32_0 = arith.constant 0 : i32
    %2 = arith.cmpi ne, %1, %c0_i32_0 : i32
    scf.if %2 {
      %cst_38 = arith.constant 0.000000e+00 : f32
      %37 = vector.broadcast %cst_38 : f32 to vector<8x200xf32>
      %c0_39 = arith.constant 0 : index
      %c0_40 = arith.constant 0 : index
      %38 = vector.load %arg8[%c0_39, %c0_40] : memref<8x200xf32, #tpu.memory_space<vmem>>, vector<8x200xf32>
      tpu.vector_store %arg8[%c0_39, %c0_40], %37 {strides = array<i32>} : memref<8x200xf32, #tpu.memory_space<vmem>>, vector<8x200xf32>,
    } else {
    }
    %c0 = arith.constant 0 : index
    %c0_1 = arith.constant 0 : index
    %c0_2 = arith.constant 0 : index
    %3 = vector.load %arg2[%c0, %c0_1, %c0_2] : memref<1x8x896xf32, #tpu.memory_space<vmem>>, vector<1x8x896xf32>
    %4 = vector.shape_cast %3 : vector<1x8x896xf32> to vector<8x896xf32>
    %c0_3 = arith.constant 0 : index
    %c0_4 = arith.constant 0 : index
    %5 = vector.load %arg3[%c0_3, %c0_4] : memref<896x896xf32, #tpu.memory_space<vmem>>, vector<896x896xf32>
    %cst = arith.constant dense<0.000000e+00> : vector<8x896xf32>
    %6 = tpu.matmul %4, %5, %cst {dimension_numbers = #tpu.dot_dimension_numbers<[1], [0], [0], [1], [0, 0, 1, 1], [], []>} : vector<8x896xf32>, vector<896x896xf32>, vector<8x896xf32> -> vector<8x896xf32>
    %c0_5 = arith.constant 0 : index
    %c0_6 = arith.constant 0 : index
    %7 = vector.load %arg4[%c0_5, %c0_6] : memref<896x896xf32, #tpu.memory_space<vmem>>, vector<896x896xf32>
    %cst_7 = arith.constant dense<0.000000e+00> : vector<8x896xf32>
    %8 = tpu.matmul %6, %7, %cst_7 {dimension_numbers = #tpu.dot_dimension_numbers<[1], [0], [0], [1], [0, 0, 1, 1], [], []>} : vector<8x896xf32>, vector<896x896xf32>, vector<8x896xf32> -> vector<8x896xf32>
    %9 = vector.extract_strided_slice %8 {offsets = [0, 0], sizes = [8, 200], strides = [1, 1]} : vector<8x896xf32> to vector<8x200xf32>
    %c0_8 = arith.constant 0 : index
    %c0_9 = arith.constant 0 : index
    %10 = vector.load %arg7[%c0_8, %c0_9] : memref<16x200xf32, #tpu.memory_space<vmem>>, vector<8x200xf32>
    tpu.vector_store %arg7[%c0_8, %c0_9], %9 {strides = array<i32>} : memref<16x200xf32, #tpu.memory_space<vmem>>, vector<8x200xf32>,
    %cst_10 = arith.constant 0.000000e+00 : f32
    %11 = vector.broadcast %cst_10 : f32 to vector<8x200xf32>
    %c8 = arith.constant 8 : index
    %c0_11 = arith.constant 0 : index
    %12 = vector.load %arg7[%c8, %c0_11] : memref<16x200xf32, #tpu.memory_space<vmem>>, vector<8x200xf32>
    tpu.vector_store %arg7[%c8, %c0_11], %11 {strides = array<i32>} : memref<16x200xf32, #tpu.memory_space<vmem>>, vector<8x200xf32>,
    %c0_12 = arith.constant 0 : index
    %c0_13 = arith.constant 0 : index
    %13 = vector.load %arg7[%c0_12, %c0_13] : memref<16x200xf32, #tpu.memory_space<vmem>>, vector<3x200xf32>
    %c0_14 = arith.constant 0 : index
    %c0_15 = arith.constant 0 : index
    %14 = vector.load %arg8[%c0_14, %c0_15] : memref<8x200xf32, #tpu.memory_space<vmem>>, vector<3x200xf32>
    %15 = arith.addf %13, %14 : vector<3x200xf32>
    %c0_16 = arith.constant 0 : index
    %c0_17 = arith.constant 0 : index
    %16 = vector.load %arg7[%c0_16, %c0_17] : memref<16x200xf32, #tpu.memory_space<vmem>>, vector<3x200xf32>
    tpu.vector_store %arg7[%c0_16, %c0_17], %15 {strides = array<i32>} : memref<16x200xf32, #tpu.memory_space<vmem>>, vector<3x200xf32>,
    %c1 = arith.constant 1 : index
    %c0_18 = arith.constant 0 : index
    %17 = vector.load %arg7[%c1, %c0_18] : memref<16x200xf32, #tpu.memory_space<vmem>>, vector<8x200xf32>
    %18 = vector.extract_strided_slice %8 {offsets = [0, 200], sizes = [8, 200], strides = [1, 1]} : vector<8x896xf32> to vector<8x200xf32>
    %19 = arith.addf %17, %18 : vector<8x200xf32>
    %c1_19 = arith.constant 1 : index
    %c0_20 = arith.constant 0 : index
    %20 = vector.load %arg7[%c1_19, %c0_20] : memref<16x200xf32, #tpu.memory_space<vmem>>, vector<8x200xf32>
    tpu.vector_store %arg7[%c1_19, %c0_20], %19 {strides = array<i32>} : memref<16x200xf32, #tpu.memory_space<vmem>>, vector<8x200xf32>,
    %c2 = arith.constant 2 : index
    %c0_21 = arith.constant 0 : index
    %21 = vector.load %arg7[%c2, %c0_21] : memref<16x200xf32, #tpu.memory_space<vmem>>, vector<8x200xf32>
    %22 = vector.extract_strided_slice %8 {offsets = [0, 400], sizes = [8, 200], strides = [1, 1]} : vector<8x896xf32> to vector<8x200xf32>
    %23 = arith.addf %21, %22 : vector<8x200xf32>
    %c2_22 = arith.constant 2 : index
    %c0_23 = arith.constant 0 : index
    %24 = vector.load %arg7[%c2_22, %c0_23] : memref<16x200xf32, #tpu.memory_space<vmem>>, vector<8x200xf32>
    tpu.vector_store %arg7[%c2_22, %c0_23], %23 {strides = array<i32>} : memref<16x200xf32, #tpu.memory_space<vmem>>, vector<8x200xf32>,
    %c3 = arith.constant 3 : index
    %c0_24 = arith.constant 0 : index
    %25 = vector.load %arg7[%c3, %c0_24] : memref<16x200xf32, #tpu.memory_space<vmem>>, vector<8x200xf32>
    %26 = vector.extract_strided_slice %8 {offsets = [0, 600], sizes = [8, 200], strides = [1, 1]} : vector<8x896xf32> to vector<8x200xf32>
    %27 = arith.addf %25, %26 : vector<8x200xf32>
    %c3_25 = arith.constant 3 : index
    %c0_26 = arith.constant 0 : index
    %28 = vector.load %arg7[%c3_25, %c0_26] : memref<16x200xf32, #tpu.memory_space<vmem>>, vector<8x200xf32>
    tpu.vector_store %arg7[%c3_25, %c0_26], %27 {strides = array<i32>} : memref<16x200xf32, #tpu.memory_space<vmem>>, vector<8x200xf32>,
    %c0_27 = arith.constant 0 : index
    %c0_28 = arith.constant 0 : index
    %29 = vector.load %arg7[%c0_27, %c0_28] : memref<16x200xf32, #tpu.memory_space<vmem>>, vector<8x200xf32>
    %c0_29 = arith.constant 0 : index
    %c0_30 = arith.constant 0 : index
    %30 = vector.load %arg5[%c0_29, %c0_30] : memref<8x200xf32, #tpu.memory_space<vmem>>, vector<8x200xf32>
    %31 = arith.mulf %29, %30 : vector<8x200xf32>
    %c0_31 = arith.constant 0 : index
    %c0_32 = arith.constant 0 : index
    %c0_33 = arith.constant 0 : index
    %32 = vector.load %arg6[%c0_31, %c0_32, %c0_33] : memref<1x8x200xf32, #tpu.memory_space<vmem>>, vector<1x8x200xf32>
    %33 = vector.shape_cast %32 : vector<1x8x200xf32> to vector<8x200xf32>
    %34 = vector.shape_cast %31 : vector<8x200xf32> to vector<1x8x200xf32>
    tpu.vector_store %arg6[%c0_31, %c0_32, %c0_33], %34 {strides = array<i32>} : memref<1x8x200xf32, #tpu.memory_space<vmem>>, vector<1x8x200xf32>,
    %c8_34 = arith.constant 8 : index
    %c0_35 = arith.constant 0 : index
    %35 = vector.load %arg7[%c8_34, %c0_35] : memref<16x200xf32, #tpu.memory_space<vmem>>, vector<3x200xf32>
    %c0_36 = arith.constant 0 : index
    %c0_37 = arith.constant 0 : index
    %36 = vector.load %arg8[%c0_36, %c0_37] : memref<8x200xf32, #tpu.memory_space<vmem>>, vector<3x200xf32>
    tpu.vector_store %arg8[%c0_36, %c0_37], %35 {strides = array<i32>} : memref<8x200xf32, #tpu.memory_space<vmem>>, vector<3x200xf32>,
    return
  }
  func.func @transform_0(%arg0: i32, %arg1: i32) -> (i32, i32, i32) {
    %c0_i32 = arith.constant 0 : i32
    %c0_i32_0 = arith.constant 0 : i32
    return %arg0, %arg1, %c0_i32 : i32, i32, i32
  }
  func.func @transform_1(%arg0: i32, %arg1: i32) -> (i32, i32) {
    %c0_i32 = arith.constant 0 : i32
    %c0_i32_0 = arith.constant 0 : i32
    %c0_i32_1 = arith.constant 0 : i32
    return %c0_i32, %c0_i32_0 : i32, i32
  }
  func.func @transform_2(%arg0: i32, %arg1: i32) -> (i32, i32) {
    %c0_i32 = arith.constant 0 : i32
    %c0_i32_0 = arith.constant 0 : i32
    %c0_i32_1 = arith.constant 0 : i32
    return %c0_i32, %c0_i32_0 : i32, i32
  }
  func.func @transform_3(%arg0: i32, %arg1: i32) -> (i32, i32) {
    %c0_i32 = arith.constant 0 : i32
    %c0_i32_0 = arith.constant 0 : i32
    return %arg1, %c0_i32 : i32, i32
  }
  func.func @transform_4(%arg0: i32, %arg1: i32) -> (i32, i32, i32) {
    %c0_i32 = arith.constant 0 : i32
    %c0_i32_0 = arith.constant 0 : i32
    return %arg0, %arg1, %c0_i32 : i32, i32, i32
  }
}

</mosaic_0001>

<bundles_post_ra>
// kernel: tpu_custom_call.1
= control target key start
LH: loop header
LB: loop body
LE: loop exit
PB: predicated region body
PF: predicated region fallthrough
CT: control target
= control target key end

     0   :  { %s7312_s0 = inlined_call_operand.hbm [shape: f32[2,16,896], index: 0, kind: input, shape index: {}]   ;;  %s7313_s1 = inlined_call_operand.hbm [shape: f32[896,896], index: 1, kind: input, shape index: {}]   ;;  %s7314_s2 = inlined_call_operand.hbm [shape: f32[896,896], index: 2, kind: input, shape index: {}]   ;;  %s7315_s3 = inlined_call_operand.hbm [shape: f32[16,200], index: 3, kind: input, shape index: {}]   ;;  %s7316_s4 = inlined_call_operand.hbm [shape: f32[2,16,200], index: 4, kind: output, shape index: {}]  }
   0x1   :  { %7331 = sst [smem:[#allocation22_spill]] %s7313_s1 }
   0x2   :  { %7332 = sst [smem:[#allocation23_spill]] %s7314_s2 }
   0x3   :  { %7333 = sst [smem:[#allocation24_spill]] %s7316_s4 }
   0x4   :  { %9 = vsyncpa [#allocation5], 0 }
   0x5   :  { %11 = vsyncpa [#allocation5 + $0x1], 0 }
   0x6   :  { %12 = vsyncpa [#allocation8], 0 }
   0x7   :  { %13 = vsyncpa [#allocation11], 0 }
   0x8   :  { %15 = vsyncpa [#allocation11 + $0x1], 0 }
   0x9   :  { %16 = vsyncpa [#allocation6], 0 }
   0xa   :  { %18 = vsyncpa [#allocation6 + $0x1], 0  ;;  %s6797_s15 = smov 0   ;;  %s6799_s16 = smov 0  }
   0xb   :  { %s6801_s17 = smov 0   ;;  %s6803_s18 = smov 0  }
   0xc   :  { %s6805_s19 = smov 0   ;;  %s6807_s20 = smov 0  }
   0xd   :  { %s6809_s21 = smov 0   ;;  %s6811_s22 = smov 0  }
   0xe   :  { %s6813_s23 = smov 0   ;;  %s6815_s24 = smov 0  }
   0xf   :  { %s6817_s25 = smov 0  }
  0x10 LB: > { %7334 = sst [smem:[#allocation17_spill]] %s6736_s20  ;;  %s7321_s26 = sadd.s32 4294967295, %s6756_s25   ;;  %s6756_s25 = sphi %s6817_s25, %s24_s25   ;;  %s6752_s24 = sphi %s6815_s24, %s7375_s24   ;;  %s6748_s23 = sphi %s6813_s23, %s7374_s23   ;;  %s6744_s22 = sphi %s6811_s22, %s7373_s22   ;;  %s6740_s21 = sphi %s6809_s21, %s7372_s21   ;;  %s6736_s20 = sphi %s6807_s20, %s7364_s20   ;;  %s6732_s19 = sphi %s6805_s19, %s7371_s19   ;;  %s6728_s18 = sphi %s6803_s18, %s7370_s18   ;;  %s6724_s17 = sphi %s6801_s17, %s7369_s17   ;;  %s6720_s16 = sphi %s6799_s16, %s7368_s16   ;;  %s6716_s15 = sphi %s6797_s15, %s7367_s15  }
  0x11   : > { %p4404_p0 = scmp.ge.s32.totalorder %s6756_s25, 1  ;;  %p6856_p1 = scmp.eq.s32.totalorder %s7321_s26, 0 }
  0x12   : > { %p165_p2 = scmp.lt.s32.totalorder %s6756_s25, 5  ;;  %s6758_s29 = smov [#allocation7]  }
  0x13   : > { %s7335_s27 = scalar_select %p6856_p1, 1, 0 }
  0x14   : > { %p6861_p3 = pnand %p4404_p0, %p165_p2  ;;  %s177_s30 = sshll.u32 %s6758_s29, 4  ;;  %s178_s30 = int_to_ptr.vmem [resolvable:$true] %s177_s30 }
  0x15   : > { %s6759_s6 = smov [#allocation9]   ;;  %s7338_s1 = sld [smem:[#allocation22_spill]] }
  0x16   : > { %s7336_s28 = scalar_select %p6861_p3, 1, 0 }
  0x17   : > { %p6377_p4 = pneg %p6861_p3  ;;  %s190_s7 = sshll.u32 %s6759_s6, 4  ;;  %s6873_s7 = int_to_ptr.vmem [resolvable:$true] %s190_s7 }
  0x19   : > { %p6869_p5 = pnand %p6377_p4, %p6856_p1 }
  0x1b   : > { %s6510_s10 = scalar_lea.hbm %s7338_s1, 100352  ;;  %p6512_p7 = pneg %p6869_p5 }
  0x1c   : > { %p6511_p6 = scmp.ne.s32.totalorder %s7338_s1, %s6510_s10  ;;  %p6517_p10 = scmp.lt.u32.totalorder %s6510_s10, %s7338_s1 }
  0x1e   : > { %p6513_p8 = pnand %p6512_p7, %p6511_p6 }
  0x20   : > { %p6514_p9 = pneg %p6513_p8 }
  0x22   : > { %p6519_p11 = pnand %p6517_p10, %p6514_p9 }
  0x24   : > { %6522 = shalt.err (!%p6519_p11)
}
  0x25   : > { %s6523_s29 = scalar_lea.vmem %s178_s30, 100352  ;;  %p6531_p2 = scmp.lt.s32.totalorder %s178_s30, %s178_s30 }
  0x26   : > { %p6524_p12 = scmp.ne.s32.totalorder %s178_s30, %s6523_s29  ;;  %p6532_p4 = scmp.lt.s32.totalorder %s6523_s29, %s6523_s29 }
  0x28   : > { %p6526_p13 = pnand %p6524_p12, %p6512_p7  ;;  %p6533_p3 = por %p6532_p4, %p6531_p2 }
  0x2a   : > { %p6527_p0 = pneg %p6526_p13 }
  0x2c   : > { %p6534_p1 = pnand %p6533_p3, %p6527_p0 }
  0x2e   : > { %6537 = shalt.err (!%p6534_p1)
}
  0x2f   : > { %s6760_s6 = smov 896   ;;  %s6761_s8 = smov 56  }
  0x30   : > { %6380 = dma.hbm_to_vmem [thread:$0]  (!%p6869_p5), %s7338_s1, 100352, %s178_s30, [#allocation8], %s6760_s6, %s6760_s6, %s6761_s8  }
  0x31   : > { %s7339_s2 = sld [smem:[#allocation23_spill]] }
  0x37   : > { %s6538_s13 = scalar_lea.hbm %s7339_s2, 100352 }
  0x38   : > { %p6539_p6 = scmp.ne.s32.totalorder %s7339_s2, %s6538_s13  ;;  %p6545_p8 = scmp.lt.u32.totalorder %s6538_s13, %s7339_s2 }
  0x3a   : > { %p6541_p1 = pnand %p6539_p6, %p6512_p7 }
  0x3c   : > { %p6542_p3 = pneg %p6541_p1 }
  0x3e   : > { %p6547_p9 = pnand %p6545_p8, %p6542_p3 }
  0x40   : > { %6550 = shalt.err (!%p6547_p9)
}
  0x41   : > { %s6551_s30 = scalar_lea.vmem %s6873_s7, 100352  ;;  %p6559_p13 = scmp.lt.s32.totalorder %s6873_s7, %s6873_s7 }
  0x42   : > { %p6552_p10 = scmp.ne.s32.totalorder %s6873_s7, %s6551_s30  ;;  %p6560_p0 = scmp.lt.s32.totalorder %s6551_s30, %s6551_s30 }
  0x44   : > { %p6554_p11 = pnand %p6552_p10, %p6512_p7  ;;  %p6561_p2 = por %p6560_p0, %p6559_p13 }
  0x46   : > { %p6555_p12 = pneg %p6554_p11 }
  0x48   : > { %p6562_p4 = pnand %p6561_p2, %p6555_p12 }
  0x4a   : > { %6565 = shalt.err (!%p6562_p4)
}
  0x4b   : > { %6383 = dma.hbm_to_vmem [thread:$0]  (!%p6869_p5), %s7339_s2, 100352, %s6873_s7, [#allocation8], %s6760_s6, %s6760_s6, %s6761_s8  }
  0x4c   : > { %s4403_s5 = sadd.s32 4294967294, %s6756_s25   ;;  %s33_s9 = sadd.s32 1, %s6748_s23 }
  0x4d   : > { %p34_p7 = scmp.ge.s32.totalorder %s33_s9, 2  ;;  %s36_s10 = sadd.s32 1, %s6752_s24 }
  0x4e   : > { %s45_s11 = sadd.s32 1, %s6736_s20  ;;  %p52_p6 = scmp.ne.s32.totalorder %s6736_s20, %s6732_s19 }
  0x4f   : > { %s7377_s9 = smov (%p34_p7, %s33_s9), 0  ;;  %s7379_s10 = smov (!%p34_p7, %s36_s10), %s6752_s24 }
  0x50   : > { %7340 = sst [smem:[#allocation18_spill]] %s7377_s9  ;;  %s6933_s12 = ssub.s32 %s6748_s23, %s7377_s9 }
  0x51   : > { %p7328_p5 = scmp.eq.s32.totalorder %s6756_s25, 0  ;;  %p38_p1 = scmp.ge.s32.totalorder %s7379_s10, 2 }
  0x52   : > { %p58_p3 = scmp.ne.s32.totalorder %s6732_s19, %s6728_s18  ;;  %p7343_p10 = scmp.ne.s32.totalorder %s7335_s27, 0 }
  0x53   : > { %p6943_p8 = por %p7328_p5, %p52_p6  ;;  %s7381_s10 = smov (%p38_p1, %s7379_s10), 0 }
  0x54   : > { %7342 = sst [smem:[#allocation19_spill]] %s7381_s10  ;;  %p6952_p11 = por %p7343_p10, %p58_p3 }
  0x55   : > { %s7345_s8 = sadd.s32 4294967295, %s6756_s25   ;;  %s40_s13 = ssub.s32 %s6752_s24, %s7381_s10 }
  0x56   : > { %s7344_s6 = scalar_select %p6952_p11, 1, 0 }
  0x57   : > { %p152_p12 = scmp.eq.s32.totalorder %s7345_s8, 3  ;;  %p158_p13 = scmp.eq.s32.totalorder %s4403_s5, 3 }
  0x58   : > { %s42_s14 = sor.u32 %s6933_s12, %s40_s13  ;;  %p7327_p7 = scmp.lt.s32.totalorder %s6756_s25, 4 }
  0x59   : > { %p6964_p0 = por %p152_p12, %p52_p6  ;;  %p43_p2 = scmp.eq.s32.totalorder %s42_s14, 0 }
  0x5a   : > { %p6968_p4 = por %p158_p13, %p58_p3  ;;  %s204_s4 = sand.u32 1, %s6736_s20  }
  0x5b   : > { %s7346_s29 = scalar_select %p6964_p0, 1, 0 }
  0x5c   : > { %s7347_s30 = scalar_select %p6968_p4, 1, 0 }
  0x5d   : > { %s6975_s26 = scalar_select %p43_p2, %s6736_s20, %s45_s11  }
  0x5e   : > { %7348 = sst [smem:[#allocation20_spill]] %s7347_s30  ;;  %s6359_s1 = smul.u32 56, %s204_s4 }
  0x5f   : > { %7349 = sst [smem:[#allocation21_spill]] %s6975_s26  ;;  %s6360_s2 = smul.u32 7, %s6748_s23 }
  0x60   : > { %p6982_p1 = pnand %p7327_p7, %p6943_p8  ;;  %s6361_s8 = smul.u32 14, %s6752_s24 }
  0x61   : > { %s208_s13 = scalar_lea.vmem [#allocation4], %s6359_s1  ;;  %s205_s7 = scalar_lea.sflag [#allocation5], %s204_s4 }
  0x62   : > { %s218_s14 = sshll.u32 %s208_s13, 4  ;;  %s214_s10 = sadd.s32 %s6361_s8, %s6360_s2  ;;  %s6987_s14 = int_to_ptr.vmem [resolvable:$true] %s218_s14 }
  0x63   : > { %s4408_s9 = sshll.u32 %s214_s10, 7  ;;  %p6568_p3 = pneg %p6982_p1 }
  0x64   : > { %s6992_s26 = scalar_lea.hbm %s7312_s0, %s4408_s9  ;;  %s6571_s10 = scalar_lea.hbm %s7312_s0, 3584 }
  0x65   : > { %s6566_s20 = scalar_lea.hbm %s6992_s26, 896  ;;  %p6572_p13 = scmp.lt.u32.totalorder %s6992_s26, %s7312_s0 }
  0x66   : > { %p6567_p6 = scmp.ne.s32.totalorder %s6992_s26, %s6566_s20  ;;  %p6573_p2 = scmp.lt.u32.totalorder %s6571_s10, %s6566_s20 }
  0x67   : > { %p6575_p5 = scmp.lt.u32.totalorder %s6566_s20, %s6992_s26 }
  0x68   : > { %p6569_p8 = pnand %p6568_p3, %p6567_p6  ;;  %p6574_p7 = por %p6573_p2, %p6572_p13 }
  0x6a   : > { %p6570_p12 = pneg %p6569_p8  ;;  %p6576_p9 = por %p6575_p5, %p6574_p7 }
  0x6c   : > { %p6577_p4 = pnand %p6576_p9, %p6570_p12 }
  0x6e   : > { %6580 = shalt.err (!%p6577_p4)
}
  0x6f   : > { %s6581_s4 = scalar_lea.vmem %s6987_s14, 896  ;;  %s6762_s8 = smov [#allocation4]  }
  0x70   : > { %p6582_p6 = scmp.ne.s32.totalorder %s6987_s14, %s6581_s4  ;;  %s6586_s13 = sshll.u32 %s6762_s8, 4  ;;  %s6587_s13 = int_to_ptr.vmem [resolvable:$false] %s6586_s13 }
  0x71   : > { %s6588_s11 = scalar_lea.vmem %s6587_s13, 1792  ;;  %p6589_p11 = scmp.lt.s32.totalorder %s6987_s14, %s6587_s13 }
  0x72   : > { %p6584_p8 = pnand %p6582_p6, %p6568_p3  ;;  %p6590_p13 = scmp.lt.s32.totalorder %s6588_s11, %s6581_s4 }
  0x74   : > { %p6585_p0 = pneg %p6584_p8  ;;  %p6591_p2 = por %p6590_p13, %p6589_p11 }
  0x76   : > { %p6592_p5 = pnand %p6591_p2, %p6585_p0 }
  0x78   : > { %6595 = shalt.err (!%p6592_p5)
}
  0x79   : > { %6387 = dma.hbm_to_vmem [thread:$0]  (!%p6982_p1), %s6992_s26, 896, %s6987_s14, %s205_s7  }
  0x7a   : > { %s113_s20 = sadd.s32 1, %s6724_s17  ;;  %p120_p9 = scmp.ne.s32.totalorder %s6724_s17, %s6720_s16 }
  0x7b   : > { %p7351_p11 = scmp.eq.s32.totalorder %s6933_s12, 0  ;;  %p7352_p0 = scmp.eq.s32.totalorder %s6756_s25, 0 }
  0x7c   : > { %p126_p7 = scmp.ne.s32.totalorder %s6720_s16, %s6716_s15  ;;  %s225_s5 = sand.u32 1, %s6724_s17  }
  0x7d   : > { %s7025_s1 = scalar_select %p7351_p11, %s6724_s17, %s113_s20  }
  0x7e   : > { %p122_p4 = por %p120_p9, %p7352_p0  ;;  %s4424_s2 = sshll.u32 %s6748_s23, 8 }
  0x7f   : > { %p7035_p3 = por %p126_p7, %p7343_p10  ;;  %s4409_s30 = sshll.u32 %s225_s5, 4 }
  0x80   : > { %s7042_s26 = scalar_lea.hbm %s7315_s3, %s4424_s2  ;;  %p7354_p1 = scmp.lt.s32.totalorder %s6756_s25, 4 }
  0x81   : > { %s229_s12 = scalar_lea.vmem [#allocation10], %s4409_s30  ;;  %s226_s7 = scalar_lea.sflag [#allocation11], %s225_s5 }
  0x82   : > { %p7046_p12 = pnand %p7354_p1, %p122_p4  ;;  %s237_s14 = sshll.u32 %s229_s12, 4  ;;  %s7050_s14 = int_to_ptr.vmem [resolvable:$true] %s237_s14 }
  0x83   : > { %s6596_s8 = scalar_lea.hbm %s7042_s26, 256  ;;  %s6601_s20 = scalar_lea.hbm %s7315_s3, 512 }
  0x84   : > { %p6597_p10 = scmp.ne.s32.totalorder %s7042_s26, %s6596_s8  ;;  %p6598_p6 = pneg %p7046_p12 }
  0x85   : > { %p6602_p2 = scmp.lt.u32.totalorder %s7042_s26, %s7315_s3  ;;  %p6603_p5 = scmp.lt.u32.totalorder %s6601_s20, %s6596_s8 }
  0x86   : > { %p6599_p8 = pnand %p6598_p6, %p6597_p10  ;;  %p6605_p11 = scmp.lt.u32.totalorder %s6596_s8, %s7042_s26 }
  0x87   : > { %p6604_p9 = por %p6603_p5, %p6602_p2 }
  0x88   : > { %p6600_p13 = pneg %p6599_p8 }
  0x89   : > { %p6606_p0 = por %p6605_p11, %p6604_p9 }
  0x8b   : > { %p6607_p4 = pnand %p6606_p0, %p6600_p13 }
  0x8d   : > { %6610 = shalt.err (!%p6607_p4)
}
  0x8e   : > { %s6611_s5 = scalar_lea.vmem %s7050_s14, 256  ;;  %s6763_s30 = smov [#allocation10]  }
  0x8f   : > { %p6612_p7 = scmp.ne.s32.totalorder %s7050_s14, %s6611_s5  ;;  %s6616_s4 = sshll.u32 %s6763_s30, 4  ;;  %s6617_s4 = int_to_ptr.vmem [resolvable:$false] %s6616_s4 }
  0x90   : > { %s6618_s12 = scalar_lea.vmem %s6617_s4, 512  ;;  %p6619_p8 = scmp.lt.s32.totalorder %s7050_s14, %s6617_s4 }
  0x91   : > { %p6614_p1 = pnand %p6612_p7, %p6598_p6  ;;  %p6620_p2 = scmp.lt.s32.totalorder %s6618_s12, %s6611_s5 }
  0x93   : > { %p6615_p10 = pneg %p6614_p1  ;;  %p6621_p5 = por %p6620_p2, %p6619_p8 }
  0x95   : > { %p6622_p9 = pnand %p6621_p5, %p6615_p10 }
  0x97   : > { %6625 = shalt.err (!%p6622_p9)
}
  0x98   : > { %6390 = dma.hbm_to_vmem [thread:$0]  (!%p7046_p12), %s7042_s26, 256, %s7050_s14, %s226_s7  }
  0x99   : > { %p7356_p13 = scmp.ne.s32.totalorder %s7336_s28, 0 }
  0x9a   : > { %s7080_s8 = sand.u32 (!%p7356_p13), 1, %s6732_s19   ;;  %p7357_p6 = scmp.ne.s32.totalorder (!%p7356_p13), %s7344_s6, 0 }
  0x9b   : > { %246 = sbr.rel (%p7356_p13) target bundleno = 1466 (0x5ba), region = 36  ;;  %s249_s11 = scalar_lea.sflag (!%p7356_p13), [#allocation5], %s7080_s8 }
  0x9c   : > { %s6362_s13 = smul.u32 (!%p7356_p13), 56, %s7080_s8 }
  0x9e   : > { %s7084_s20 = scalar_lea.vmem (!%p7356_p13), [#allocation4], %s6362_s13 }
  0xa2   : > { %6699 = dma.done.wait (%p7357_p6), %s249_s11, 896  }
  0xa3   : > { %6701 = vsyncadd (%p7357_p6), %s249_s11, 4294966400  ;;  %p7358_p12 = scmp.ne.s32.totalorder %s7335_s27, 0 }
  0xa5   : > { %6703 = dma.done.wait (%p7358_p12), [#allocation8], 200704  }
  0xa6   : > { %6705 = vsyncadd (%p7358_p12), [#allocation8], 4294766592  ;;  %s265_s28 = sand.u32 1, %s6720_s16  }
  0xa7   : > { %s7095_s26 = sshll.u32 %s265_s28, 4  ;;  %s266_s15 = scalar_lea.sflag [#allocation11], %s265_s28 }
  0xa8   : > { %s269_s14 = scalar_lea.vmem [#allocation10], %s7095_s26 }
  0xa9   : > { %6707 = dma.done.wait (%p7035_p3), %s266_s15, 256  }
  0xaa   : > { %6709 = vsyncadd (%p7035_p3), %s266_s15, 4294967040  ;;  %s4416_s6 = sshll.u32 %s7080_s8, 4  ;;  %p4417_p11 = scmp.ne.s32.totalorder %s6740_s21, 0 }
  0xab   : > { %s7103_s7 = scalar_lea.vmem [#allocation12], %s4416_s6  ;;  %vm304_vm0 = vcmask (!%p4417_p11), 588800   ;;  %v6764_v0 = vmov (!%p4417_p11), 0.0  }
  0xac   : > { %302 = sbr.rel (%p4417_p11) target bundleno = 179 (0xb3), region = 56  ;;  %303 = vst [vmem:[#allocation3] sm:$0xff] (!%p4417_p11), %v6764_v0  ;;  %305 = vst.msk [vmem:[#allocation3 + $0x8] sm:$0xff] (!%p4417_p11), %vm304_vm0, %v6764_v0 }
  0xb3 PF: > { %v314_v1 = vld [vmem:[#allocation7 + $0x8] sm:$0xff]  ;;  %v321_v2 = vld [vmem:[#allocation7 + $0x40] sm:$0xff]  ;;  %v316_v3 = vld [vmem:[#allocation7 + $0x18] sm:$0xff]  ;;  %vm6767_vm1 = vmmov 0   ;;  %vm4146_vm2 = vcmask 588800   ;;  %s6768_s27 = smov 56  }
  0xb4   : > { %v4739_v4 = vpack.c.bf16 %v321_v2, %v314_v1  ;;  %v323_v5 = vld [vmem:[#allocation7 + $0x50] sm:$0xff]  ;;  %v313_v6 = vld [vmem:[#allocation7] sm:$0xff]  ;;  %v320_v7 = vld [vmem:[#allocation7 + $0x38] sm:$0xff]  ;;  %s6769_s10 = smov 112   ;;  %vm4157_vm3 = vcmask 583680   ;;  %vm4175_vm4 = vcmask 457728  }
  0xb5   : > { %v4963_v8 = vpack.c.bf16 %v323_v5, %v316_v3  ;;  %v4741_v9 = vpack.c.bf16 %v320_v7, %v313_v6  ;;  %v315_v10 = vld [vmem:[#allocation7 + $0x10] sm:$0xff]  ;;  %v322_v11 = vld [vmem:[#allocation7 + $0x48] sm:$0xff]  ;;  %v328_v12 = vld [vmem:[#allocation7 + $0x78] sm:$0xff]  ;;  %vm4185_vm5 = vcmask 588801   ;;  %vm4188_vm6 = vcmask 581632   ;;  %s6770_s2 = smov 40  }
  0xb6   : > { %4740 = vmatprep.subr.bf16.mxu0 %v4739_v4  ;;  %v4965_v13 = vpack.c.bf16 %v322_v11, %v315_v10  ;;  %v335_v14 = vld [vmem:[#allocation7 + $0xb0] sm:$0xff]  ;;  %v330_v15 = vld [vmem:[#allocation7 + $0x88] sm:$0xff]  ;;  %v337_v16 = vld [vmem:[#allocation7 + $0xc0] sm:$0xff]  ;;  %vm4201_vm7 = vcmask 916480   ;;  %vm4210_vm8 = vcmask 588802   ;;  %vm4213_vm9 = vcmask 582656  }
  0xb7   : > { %4964 = vmatprep.subr.bf16.mxu1 %v4963_v8  ;;  %4742 = vmatpush1.bf16.msra.mxu0 %v4741_v9  ;;  %v4743_v17 = vpack.c.bf16 %v335_v14, %v328_v12  ;;  %v4967_v18 = vpack.c.bf16 %v337_v16, %v330_v15  ;;  %v327_v19 = vld [vmem:[#allocation7 + $0x70] sm:$0xff]  ;;  %v334_v20 = vld [vmem:[#allocation7 + $0xa8] sm:$0xff]  ;;  %v329_v21 = vld [vmem:[#allocation7 + $0x80] sm:$0xff]  ;;  %vm4230_vm10 = vcmask 326656   ;;  %vm4240_vm11 = vcmask 588803   ;;  %s4419_s9 = sshll.u32 %s6740_s21, 1 }
  0xb8   : > { %4966 = vmatpush1.bf16.msra.mxu1 %v4965_v13  ;;  %v4745_v22 = vpack.c.bf16 %v334_v20, %v327_v19  ;;  %v336_v23 = vld [vmem:[#allocation7 + $0xb8] sm:$0xff]  ;;  %v342_v24 = vld [vmem:[#allocation7 + $0xe8] sm:$0xff]  ;;  %v349_v25 = vld [vmem:[#allocation7 + $0x120] sm:$0xff]  ;;  %s4420_s5 = sshll.u32 %s6744_s22, 2  ;;  %s4273_s12 = sshll.u32 %s7103_s7, 4  ;;  %s7248_s12 = int_to_ptr.vmem [resolvable:$true] %s4273_s12 }
  0xb9   : > { %4744 = vmatprep.subr.bf16.mxu0 %v4743_v17  ;;  %4968 = vmatprep.subr.bf16.mxu1 %v4967_v18  ;;  %v4969_v26 = vpack.c.bf16 %v336_v23, %v329_v21  ;;  %v4747_v27 = vpack.c.bf16 %v349_v25, %v342_v24  ;;  %v344_v28 = vld [vmem:[#allocation7 + $0xf8] sm:$0xff]  ;;  %v351_v29 = vld [vmem:[#allocation7 + $0x130] sm:$0xff]  ;;  %v341_v30 = vld [vmem:[#allocation7 + $0xe0] sm:$0xff]  ;;  %s4269_s30 = sadd.s32 %s4420_s5, %s4419_s9  ;;  %s7359_s13 = sld [smem:[#allocation24_spill]] }
  0xba   : > { %v4971_v31 = vpack.c.bf16 %v351_v29, %v344_v28  ;;  %v348_v32 = vld [vmem:[#allocation7 + $0x118] sm:$0xff]  ;;  %v343_v33 = vld [vmem:[#allocation7 + $0xf0] sm:$0xff]  ;;  %v350_v34 = vld [vmem:[#allocation7 + $0x128] sm:$0xff]  ;;  %s4421_s4 = sshll.u32 %s4269_s30, 7  ;;  %s6626_s28 = scalar_lea.vmem %s7248_s12, 256 }
  0xbb   : > { %4746 = vmatpush1.bf16.msra.mxu0 %v4745_v22  ;;  %v4749_v35 = vpack.c.bf16 %v348_v32, %v341_v30  ;;  %v356_v36 = vld [vmem:[#allocation7 + $0x158] sm:$0xff]  ;;  %v363_v37 = vld [vmem:[#allocation7 + $0x190] sm:$0xff]  ;;  %v358_v38 = vld [vmem:[#allocation7 + $0x168] sm:$0xff]  ;;  %v4973_v39 = vpack.c.bf16 %v350_v34, %v343_v33  ;;  %p6627_p3 = scmp.ne.s32.totalorder %s7248_s12, %s6626_s28  ;;  %p7360_p0 = scmp.ne.s32.totalorder %s7346_s29, 0 }
  0xbc   : > { %4970 = vmatpush1.bf16.msra.mxu1 %v4969_v26  ;;  %4748 = vmatprep.subr.bf16.mxu0 %v4747_v27  ;;  %v4751_v40 = vpack.c.bf16 %v363_v37, %v356_v36  ;;  %v365_v41 = vld [vmem:[#allocation7 + $0x1a0] sm:$0xff]  ;;  %v355_v42 = vld [vmem:[#allocation7 + $0x150] sm:$0xff]  ;;  %v362_v43 = vld [vmem:[#allocation7 + $0x188] sm:$0xff]  ;;  %s6771_s26 = smov [#allocation12]  }
  0xbd   : > { %4972 = vmatprep.subr.bf16.mxu1 %v4971_v31  ;;  %v4975_v44 = vpack.c.bf16 %v365_v41, %v358_v38  ;;  %v357_v45 = vld [vmem:[#allocation7 + $0x160] sm:$0xff]  ;;  %v364_v46 = vld [vmem:[#allocation7 + $0x198] sm:$0xff]  ;;  %v370_v47 = vld [vmem:[#allocation7 + $0x1c8] sm:$0xff]  ;;  %v4753_v51 = vpack.c.bf16 %v362_v43, %v355_v42  ;;  %p6628_p4 = pnand %p6627_p3, %p7360_p0  ;;  %s6630_s15 = sshll.u32 %s6771_s26, 4  ;;  %s6631_s15 = int_to_ptr.vmem [resolvable:$false] %s6630_s15 }
  0xbe   : > { %v377_v48 = vld [vmem:[#allocation7 + $0x200] sm:$0xff]  ;;  %v372_v49 = vld [vmem:[#allocation7 + $0x1d8] sm:$0xff]  ;;  %v379_v50 = vld [vmem:[#allocation7 + $0x210] sm:$0xff]  ;;  %v4977_v52 = vpack.c.bf16 %v364_v46, %v357_v45  ;;  %p6633_p1 = scmp.lt.s32.totalorder %s7248_s12, %s6631_s15 }
  0xbf   : > { %4750 = vmatpush1.bf16.msra.mxu0 %v4749_v35  ;;  %v4755_v53 = vpack.c.bf16 %v377_v48, %v370_v47  ;;  %v369_v54 = vld [vmem:[#allocation7 + $0x1c0] sm:$0xff]  ;;  %v376_v55 = vld [vmem:[#allocation7 + $0x1f8] sm:$0xff]  ;;  %v371_v56 = vld [vmem:[#allocation7 + $0x1d0] sm:$0xff]  ;;  %v4979_v57 = vpack.c.bf16 %v379_v50, %v372_v49  ;;  %s7246_s11 = scalar_lea.hbm %s7359_s13, %s4421_s4  ;;  %p6629_p7 = pneg %p6628_p4 }
  0xc0   : > { %4974 = vmatpush1.bf16.msra.mxu1 %v4973_v39  ;;  %4752 = vmatprep.subr.bf16.mxu0 %v4751_v40  ;;  %v378_v58 = vld [vmem:[#allocation7 + $0x208] sm:$0xff]  ;;  %v384_v59 = vld [vmem:[#allocation7 + $0x238] sm:$0xff]  ;;  %v391_v60 = vld [vmem:[#allocation7 + $0x270] sm:$0xff]  ;;  %v4757_v63 = vpack.c.bf16 %v376_v55, %v369_v54 }
  0xc1   : > { %4976 = vmatprep.subr.bf16.mxu1 %v4975_v44  ;;  %v386_v61 = vld [vmem:[#allocation7 + $0x248] sm:$0xff]  ;;  %v393_v62 = vld [vmem:[#allocation7 + $0x280] sm:$0xff]  ;;  %v4981_v0 = vpack.c.bf16 %v378_v58, %v371_v56  ;;  %v4759_v1 = vpack.c.bf16 %v391_v60, %v384_v59  ;;  %v383_v2 = vld [vmem:[#allocation7 + $0x230] sm:$0xff] }
  0xc2   : > { %v390_v3 = vld [vmem:[#allocation7 + $0x268] sm:$0xff]  ;;  %v385_v4 = vld [vmem:[#allocation7 + $0x240] sm:$0xff]  ;;  %v4983_v5 = vpack.c.bf16 %v393_v62, %v386_v61  ;;  %v392_v6 = vld [vmem:[#allocation7 + $0x278] sm:$0xff] }
  0xc3   : > { %4754 = vmatpush1.bf16.msra.mxu0 %v4753_v51  ;;  %v398_v7 = vld [vmem:[#allocation7 + $0x2a8] sm:$0xff]  ;;  %v405_v8 = vld [vmem:[#allocation7 + $0x2e0] sm:$0xff]  ;;  %v400_v9 = vld [vmem:[#allocation7 + $0x2b8] sm:$0xff]  ;;  %v4761_v11 = vpack.c.bf16 %v390_v3, %v383_v2  ;;  %v4985_v12 = vpack.c.bf16 %v392_v6, %v385_v4 }
  0xc4   : > { %4978 = vmatpush1.bf16.msra.mxu1 %v4977_v52  ;;  %4756 = vmatprep.subr.bf16.mxu0 %v4755_v53  ;;  %v407_v10 = vld [vmem:[#allocation7 + $0x2f0] sm:$0xff]  ;;  %v4763_v13 = vpack.c.bf16 %v405_v8, %v398_v7  ;;  %v397_v14 = vld [vmem:[#allocation7 + $0x2a0] sm:$0xff]  ;;  %v404_v15 = vld [vmem:[#allocation7 + $0x2d8] sm:$0xff] }
  0xc5   : > { %4980 = vmatprep.subr.bf16.mxu1 %v4979_v57  ;;  %v399_v16 = vld [vmem:[#allocation7 + $0x2b0] sm:$0xff]  ;;  %v4987_v17 = vpack.c.bf16 %v407_v10, %v400_v9  ;;  %v406_v18 = vld [vmem:[#allocation7 + $0x2e8] sm:$0xff]  ;;  %v412_v19 = vld [vmem:[#allocation7 + $0x318] sm:$0xff]  ;;  %v4765_v23 = vpack.c.bf16 %v404_v15, %v397_v14 }
  0xc6   : > { %v419_v20 = vld [vmem:[#allocation7 + $0x350] sm:$0xff]  ;;  %v414_v21 = vld [vmem:[#allocation7 + $0x328] sm:$0xff]  ;;  %v421_v22 = vld [vmem:[#allocation7 + $0x360] sm:$0xff]  ;;  %v4989_v24 = vpack.c.bf16 %v406_v18, %v399_v16 }
  0xc7   : > { %4758 = vmatpush1.bf16.msra.mxu0 %v4757_v63  ;;  %v4767_v25 = vpack.c.bf16 %v419_v20, %v412_v19  ;;  %v411_v26 = vld [vmem:[#allocation7 + $0x310] sm:$0xff]  ;;  %v418_v27 = vld [vmem:[#allocation7 + $0x348] sm:$0xff]  ;;  %v413_v28 = vld [vmem:[#allocation7 + $0x320] sm:$0xff]  ;;  %v4991_v29 = vpack.c.bf16 %v421_v22, %v414_v21 }
  0xc8   : > { %4982 = vmatpush1.bf16.msra.mxu1 %v4981_v0  ;;  %4760 = vmatprep.subr.bf16.mxu0 %v4759_v1  ;;  %v420_v30 = vld [vmem:[#allocation7 + $0x358] sm:$0xff]  ;;  %v426_v31 = vld [vmem:[#allocation7 + $0x388] sm:$0xff]  ;;  %v433_v32 = vld [vmem:[#allocation7 + $0x3c0] sm:$0xff]  ;;  %v4769_v35 = vpack.c.bf16 %v418_v27, %v411_v26 }
  0xc9   : > { %4984 = vmatprep.subr.bf16.mxu1 %v4983_v5  ;;  %v428_v33 = vld [vmem:[#allocation7 + $0x398] sm:$0xff]  ;;  %v435_v34 = vld [vmem:[#allocation7 + $0x3d0] sm:$0xff]  ;;  %v4993_v36 = vpack.c.bf16 %v420_v30, %v413_v28  ;;  %v4771_v37 = vpack.c.bf16 %v433_v32, %v426_v31  ;;  %v425_v38 = vld [vmem:[#allocation7 + $0x380] sm:$0xff] }
  0xca   : > { %v432_v39 = vld [vmem:[#allocation7 + $0x3b8] sm:$0xff]  ;;  %v427_v40 = vld [vmem:[#allocation7 + $0x390] sm:$0xff]  ;;  %v4995_v41 = vpack.c.bf16 %v435_v34, %v428_v33  ;;  %v434_v42 = vld [vmem:[#allocation7 + $0x3c8] sm:$0xff] }
  0xcb   : > { %4762 = vmatpush1.bf16.msra.mxu0 %v4761_v11  ;;  %v440_v43 = vld [vmem:[#allocation7 + $0x3f8] sm:$0xff]  ;;  %v447_v44 = vld [vmem:[#allocation7 + $0x430] sm:$0xff]  ;;  %v442_v45 = vld [vmem:[#allocation7 + $0x408] sm:$0xff]  ;;  %v4773_v47 = vpack.c.bf16 %v432_v39, %v425_v38  ;;  %v4997_v48 = vpack.c.bf16 %v434_v42, %v427_v40 }
  0xcc   : > { %4986 = vmatpush1.bf16.msra.mxu1 %v4985_v12  ;;  %4764 = vmatprep.subr.bf16.mxu0 %v4763_v13  ;;  %v449_v46 = vld [vmem:[#allocation7 + $0x440] sm:$0xff]  ;;  %v4775_v49 = vpack.c.bf16 %v447_v44, %v440_v43  ;;  %v439_v50 = vld [vmem:[#allocation7 + $0x3f0] sm:$0xff]  ;;  %v446_v51 = vld [vmem:[#allocation7 + $0x428] sm:$0xff] }
  0xcd   : > { %4988 = vmatprep.subr.bf16.mxu1 %v4987_v17  ;;  %v441_v52 = vld [vmem:[#allocation7 + $0x400] sm:$0xff]  ;;  %v4999_v53 = vpack.c.bf16 %v449_v46, %v442_v45  ;;  %v448_v54 = vld [vmem:[#allocation7 + $0x438] sm:$0xff]  ;;  %v454_v55 = vld [vmem:[#allocation7 + $0x468] sm:$0xff]  ;;  %v4777_v59 = vpack.c.bf16 %v446_v51, %v439_v50 }
  0xce   : > { %v461_v56 = vld [vmem:[#allocation7 + $0x4a0] sm:$0xff]  ;;  %v456_v57 = vld [vmem:[#allocation7 + $0x478] sm:$0xff]  ;;  %v463_v58 = vld [vmem:[#allocation7 + $0x4b0] sm:$0xff]  ;;  %v5001_v60 = vpack.c.bf16 %v448_v54, %v441_v52 }
  0xcf   : > { %4766 = vmatpush1.bf16.msra.mxu0 %v4765_v23  ;;  %v4779_v61 = vpack.c.bf16 %v461_v56, %v454_v55  ;;  %v453_v62 = vld [vmem:[#allocation7 + $0x460] sm:$0xff]  ;;  %v460_v63 = vld [vmem:[#allocation7 + $0x498] sm:$0xff]  ;;  %v455_v0 = vld [vmem:[#allocation7 + $0x470] sm:$0xff]  ;;  %v5003_v1 = vpack.c.bf16 %v463_v58, %v456_v57 }
  0xd0   : > { %4990 = vmatpush1.bf16.msra.mxu1 %v4989_v24  ;;  %4768 = vmatprep.subr.bf16.mxu0 %v4767_v25  ;;  %v462_v2 = vld [vmem:[#allocation7 + $0x4a8] sm:$0xff]  ;;  %v468_v3 = vld [vmem:[#allocation7 + $0x4d8] sm:$0xff]  ;;  %v475_v4 = vld [vmem:[#allocation7 + $0x510] sm:$0xff]  ;;  %v4781_v7 = vpack.c.bf16 %v460_v63, %v453_v62 }
  0xd1   : > { %4992 = vmatprep.subr.bf16.mxu1 %v4991_v29  ;;  %v470_v5 = vld [vmem:[#allocation7 + $0x4e8] sm:$0xff]  ;;  %v477_v6 = vld [vmem:[#allocation7 + $0x520] sm:$0xff]  ;;  %v467_v8 = vld [vmem:[#allocation7 + $0x4d0] sm:$0xff]  ;;  %v5005_v9 = vpack.c.bf16 %v462_v2, %v455_v0  ;;  %v4783_v10 = vpack.c.bf16 %v475_v4, %v468_v3 }
  0xd2   : > { %v474_v11 = vld [vmem:[#allocation7 + $0x508] sm:$0xff]  ;;  %v469_v12 = vld [vmem:[#allocation7 + $0x4e0] sm:$0xff]  ;;  %v476_v13 = vld [vmem:[#allocation7 + $0x518] sm:$0xff]  ;;  %v5007_v14 = vpack.c.bf16 %v477_v6, %v470_v5 }
  0xd3   : > { %4770 = vmatpush1.bf16.msra.mxu0 %v4769_v35  ;;  %v482_v15 = vld [vmem:[#allocation7 + $0x548] sm:$0xff]  ;;  %v489_v16 = vld [vmem:[#allocation7 + $0x580] sm:$0xff]  ;;  %v307_v17 = vld [vmem:[%s7084_s20 + $0x8] sm:$0xff]  ;;  %v4785_v20 = vpack.c.bf16 %v474_v11, %v467_v8  ;;  %v5009_v21 = vpack.c.bf16 %v476_v13, %v469_v12 }
  0xd4   : > { %4994 = vmatpush1.bf16.msra.mxu1 %v4993_v36  ;;  %4772 = vmatprep.subr.bf16.mxu0 %v4771_v37  ;;  %v484_v18 = vld [vmem:[#allocation7 + $0x558] sm:$0xff]  ;;  %v491_v19 = vld [vmem:[#allocation7 + $0x590] sm:$0xff]  ;;  %v4787_v22 = vpack.c.bf16 %v489_v16, %v482_v15  ;;  %v481_v23 = vld [vmem:[#allocation7 + $0x540] sm:$0xff] }
  0xd5   : > { %4996 = vmatprep.subr.bf16.mxu1 %v4995_v41  ;;  %1161 = vmatprep.mubr.f32.mxu0 %v307_v17  ;;  %v488_v24 = vld [vmem:[#allocation7 + $0x578] sm:$0xff]  ;;  %v483_v25 = vld [vmem:[#allocation7 + $0x550] sm:$0xff]  ;;  %v5011_v26 = vpack.c.bf16 %v491_v19, %v484_v18  ;;  %v490_v27 = vld [vmem:[#allocation7 + $0x588] sm:$0xff] }
  0xd6   : > { %1445 = vmatprep.mubr.f32.mxu1 %v307_v17  ;;  %v496_v28 = vld [vmem:[#allocation7 + $0x5b8] sm:$0xff]  ;;  %v503_v29 = vld [vmem:[#allocation7 + $0x5f0] sm:$0xff]  ;;  %v498_v30 = vld [vmem:[#allocation7 + $0x5c8] sm:$0xff]  ;;  %v4789_v32 = vpack.c.bf16 %v488_v24, %v481_v23  ;;  %v5013_v33 = vpack.c.bf16 %v490_v27, %v483_v25 }
  0xd7   : > { %4774 = vmatpush1.bf16.msra.mxu0 %v4773_v47  ;;  %v505_v31 = vld [vmem:[#allocation7 + $0x600] sm:$0xff]  ;;  %v4791_v34 = vpack.c.bf16 %v503_v29, %v496_v28  ;;  %v495_v35 = vld [vmem:[#allocation7 + $0x5b0] sm:$0xff]  ;;  %v502_v36 = vld [vmem:[#allocation7 + $0x5e8] sm:$0xff] }
  0xd8   : > { %4998 = vmatpush1.bf16.msra.mxu1 %v4997_v48  ;;  %4776 = vmatprep.subr.bf16.mxu0 %v4775_v49  ;;  %v497_v37 = vld [vmem:[#allocation7 + $0x5c0] sm:$0xff]  ;;  %v5015_v38 = vpack.c.bf16 %v505_v31, %v498_v30  ;;  %v504_v39 = vld [vmem:[#allocation7 + $0x5f8] sm:$0xff]  ;;  %v510_v40 = vld [vmem:[#allocation7 + $0x628] sm:$0xff]  ;;  %v4793_v44 = vpack.c.bf16 %v502_v36, %v495_v35 }
  0xd9   : > { %5000 = vmatprep.subr.bf16.mxu1 %v4999_v53  ;;  %v517_v41 = vld [vmem:[#allocation7 + $0x660] sm:$0xff]  ;;  %v512_v42 = vld [vmem:[#allocation7 + $0x638] sm:$0xff]  ;;  %v519_v43 = vld [vmem:[#allocation7 + $0x670] sm:$0xff]  ;;  %v5017_v45 = vpack.c.bf16 %v504_v39, %v497_v37 }
  0xda   : > { %v4795_v46 = vpack.c.bf16 %v517_v41, %v510_v40  ;;  %v509_v47 = vld [vmem:[#allocation7 + $0x620] sm:$0xff]  ;;  %v516_v48 = vld [vmem:[#allocation7 + $0x658] sm:$0xff]  ;;  %v511_v49 = vld [vmem:[#allocation7 + $0x630] sm:$0xff]  ;;  %v5019_v50 = vpack.c.bf16 %v519_v43, %v512_v42 }
  0xdb   : > { %4778 = vmatpush1.bf16.msra.mxu0 %v4777_v59  ;;  %v518_v51 = vld [vmem:[#allocation7 + $0x668] sm:$0xff]  ;;  %v524_v52 = vld [vmem:[#allocation7 + $0x698] sm:$0xff]  ;;  %v531_v53 = vld [vmem:[#allocation7 + $0x6d0] sm:$0xff]  ;;  %v4797_v56 = vpack.c.bf16 %v516_v48, %v509_v47 }
  0xdc   : > { %5002 = vmatpush1.bf16.msra.mxu1 %v5001_v60  ;;  %4780 = vmatprep.subr.bf16.mxu0 %v4779_v61  ;;  %v526_v54 = vld [vmem:[#allocation7 + $0x6a8] sm:$0xff]  ;;  %v533_v55 = vld [vmem:[#allocation7 + $0x6e0] sm:$0xff]  ;;  %v5021_v57 = vpack.c.bf16 %v518_v51, %v511_v49  ;;  %v4799_v58 = vpack.c.bf16 %v531_v53, %v524_v52  ;;  %v523_v59 = vld [vmem:[#allocation7 + $0x690] sm:$0xff] }
  0xdd   : > { %5004 = vmatprep.subr.bf16.mxu1 %v5003_v1  ;;  %v530_v60 = vld [vmem:[#allocation7 + $0x6c8] sm:$0xff]  ;;  %v525_v61 = vld [vmem:[#allocation7 + $0x6a0] sm:$0xff]  ;;  %v5023_v62 = vpack.c.bf16 %v533_v55, %v526_v54  ;;  %v532_v63 = vld [vmem:[#allocation7 + $0x6d8] sm:$0xff] }
  0xde   : > { %v538_v0 = vld [vmem:[#allocation7 + $0x708] sm:$0xff]  ;;  %v545_v1 = vld [vmem:[#allocation7 + $0x740] sm:$0xff]  ;;  %v540_v2 = vld [vmem:[#allocation7 + $0x718] sm:$0xff]  ;;  %v4801_v4 = vpack.c.bf16 %v530_v60, %v523_v59  ;;  %v5025_v5 = vpack.c.bf16 %v532_v63, %v525_v61 }
  0xdf   : > { %4782 = vmatpush1.bf16.msra.mxu0 %v4781_v7  ;;  %v547_v3 = vld [vmem:[#allocation7 + $0x750] sm:$0xff]  ;;  %v4803_v6 = vpack.c.bf16 %v545_v1, %v538_v0  ;;  %v537_v7 = vld [vmem:[#allocation7 + $0x700] sm:$0xff]  ;;  %v544_v8 = vld [vmem:[#allocation7 + $0x738] sm:$0xff] }
  0xe0   : > { %5006 = vmatpush1.bf16.msra.mxu1 %v5005_v9  ;;  %4784 = vmatprep.subr.bf16.mxu0 %v4783_v10  ;;  %v539_v9 = vld [vmem:[#allocation7 + $0x710] sm:$0xff]  ;;  %v5027_v10 = vpack.c.bf16 %v547_v3, %v540_v2  ;;  %v546_v11 = vld [vmem:[#allocation7 + $0x748] sm:$0xff]  ;;  %v552_v12 = vld [vmem:[#allocation7 + $0x778] sm:$0xff]  ;;  %v4805_v17 = vpack.c.bf16 %v544_v8, %v537_v7 }
  0xe1   : > { %5008 = vmatprep.subr.bf16.mxu1 %v5007_v14  ;;  %v559_v13 = vld [vmem:[#allocation7 + $0x7b0] sm:$0xff]  ;;  %v554_v14 = vld [vmem:[#allocation7 + $0x788] sm:$0xff]  ;;  %v561_v15 = vld [vmem:[#allocation7 + $0x7c0] sm:$0xff]  ;;  %v5029_v18 = vpack.c.bf16 %v546_v11, %v539_v9 }
  0xe2   : > { %v306_v16 = vld [vmem:[%s7084_s20] sm:$0xff]  ;;  %v4807_v19 = vpack.c.bf16 %v559_v13, %v552_v12  ;;  %v5031_v23 = vpack.c.bf16 %v561_v15, %v554_v14  ;;  %v560_v24 = vld [vmem:[#allocation7 + $0x7b8] sm:$0xff]  ;;  %v589_v40 = vld [vmem:[#allocation7 + $0x8a0] sm:$0xff] }
  0xe3   : > { %4786 = vmatpush1.bf16.msra.mxu0 %v4785_v20  ;;  %v551_v20 = vld [vmem:[#allocation7 + $0x770] sm:$0xff]  ;;  %v566_v25 = vld [vmem:[#allocation7 + $0x7e8] sm:$0xff]  ;;  %v568_v27 = vld [vmem:[#allocation7 + $0x7f8] sm:$0xff] }
  0xe4   : > { %5010 = vmatpush1.bf16.msra.mxu1 %v5009_v21  ;;  %4788 = vmatprep.subr.bf16.mxu0 %v4787_v22  ;;  %v558_v21 = vld [vmem:[#allocation7 + $0x7a8] sm:$0xff]  ;;  %v553_v22 = vld [vmem:[#allocation7 + $0x780] sm:$0xff]  ;;  %v575_v28 = vld [vmem:[#allocation7 + $0x830] sm:$0xff] }
  0xe5   : > { %5012 = vmatprep.subr.bf16.mxu1 %v5011_v26  ;;  %v573_v26 = vld [vmem:[#allocation7 + $0x820] sm:$0xff]  ;;  %v4809_v29 = vpack.c.bf16 %v558_v21, %v551_v20  ;;  %v5033_v30 = vpack.c.bf16 %v560_v24, %v553_v22  ;;  %v5035_v35 = vpack.c.bf16 %v575_v28, %v568_v27  ;;  %v574_v36 = vld [vmem:[#allocation7 + $0x828] sm:$0xff]  ;;  %v580_v37 = vld [vmem:[#allocation7 + $0x858] sm:$0xff] }
  0xe6   : > { %v4811_v31 = vpack.c.bf16 %v573_v26, %v566_v25  ;;  %v582_v39 = vld [vmem:[#allocation7 + $0x868] sm:$0xff]  ;;  %v588_v48 = vld [vmem:[#allocation7 + $0x898] sm:$0xff]  ;;  %v603_v52 = vld [vmem:[#allocation7 + $0x910] sm:$0xff] }
  0xe7   : > { %4790 = vmatpush1.bf16.msra.mxu0 %v4789_v32  ;;  %v565_v32 = vld [vmem:[#allocation7 + $0x7e0] sm:$0xff]  ;;  %v5039_v47 = vpack.c.bf16 %v589_v40, %v582_v39  ;;  %v594_v49 = vld [vmem:[#allocation7 + $0x8c8] sm:$0xff]  ;;  %v596_v51 = vld [vmem:[#allocation7 + $0x8d8] sm:$0xff] }
  0xe8   : > { %5014 = vmatpush1.bf16.msra.mxu1 %v5013_v33  ;;  %4792 = vmatprep.subr.bf16.mxu0 %v4791_v34  ;;  %v572_v33 = vld [vmem:[#allocation7 + $0x818] sm:$0xff]  ;;  %v567_v34 = vld [vmem:[#allocation7 + $0x7f0] sm:$0xff]  ;;  %v5043_v59 = vpack.c.bf16 %v603_v52, %v596_v51  ;;  %v602_v60 = vld [vmem:[#allocation7 + $0x908] sm:$0xff] }
  0xe9   : > { %5016 = vmatprep.subr.bf16.mxu1 %v5015_v38  ;;  %v587_v38 = vld [vmem:[#allocation7 + $0x890] sm:$0xff]  ;;  %v4813_v41 = vpack.c.bf16 %v572_v33, %v565_v32  ;;  %v5037_v42 = vpack.c.bf16 %v574_v36, %v567_v34  ;;  %v608_v61 = vld [vmem:[#allocation7 + $0x938] sm:$0xff]  ;;  %v610_v63 = vld [vmem:[#allocation7 + $0x948] sm:$0xff] }
  0xea   : > { %v4815_v43 = vpack.c.bf16 %v587_v38, %v580_v37  ;;  %v617_v0 = vld [vmem:[#allocation7 + $0x980] sm:$0xff]  ;;  %v616_v8 = vld [vmem:[#allocation7 + $0x978] sm:$0xff]  ;;  %v622_v9 = vld [vmem:[#allocation7 + $0x9a8] sm:$0xff] }
  0xeb   : > { %4794 = vmatpush1.bf16.msra.mxu0 %v4793_v44  ;;  %v579_v44 = vld [vmem:[#allocation7 + $0x850] sm:$0xff]  ;;  %v5047_v7 = vpack.c.bf16 %v617_v0, %v610_v63  ;;  %v624_v11 = vld [vmem:[#allocation7 + $0x9b8] sm:$0xff]  ;;  %v621_v14 = vld [vmem:[#allocation7 + $0x9a0] sm:$0xff] }
  0xec   : > { %5018 = vmatpush1.bf16.msra.mxu1 %v5017_v45  ;;  %4796 = vmatprep.subr.bf16.mxu0 %v4795_v46  ;;  %v586_v45 = vld [vmem:[#allocation7 + $0x888] sm:$0xff]  ;;  %v581_v46 = vld [vmem:[#allocation7 + $0x860] sm:$0xff]  ;;  %v631_v12 = vld [vmem:[#allocation7 + $0x9f0] sm:$0xff] }
  0xed   : > { %5020 = vmatprep.subr.bf16.mxu1 %v5019_v50  ;;  %v601_v50 = vld [vmem:[#allocation7 + $0x900] sm:$0xff]  ;;  %v4817_v53 = vpack.c.bf16 %v586_v45, %v579_v44  ;;  %v5041_v54 = vpack.c.bf16 %v588_v48, %v581_v46  ;;  %v5051_v20 = vpack.c.bf16 %v631_v12, %v624_v11  ;;  %v636_v21 = vld [vmem:[#allocation7 + $0xa18] sm:$0xff]  ;;  %v643_v22 = vld [vmem:[#allocation7 + $0xa50] sm:$0xff] }
  0xee   : > { %v4819_v55 = vpack.c.bf16 %v601_v50, %v594_v49  ;;  %v638_v24 = vld [vmem:[#allocation7 + $0xa28] sm:$0xff]  ;;  %v645_v25 = vld [vmem:[#allocation7 + $0xa60] sm:$0xff]  ;;  %v4831_v28 = vpack.c.bf16 %v643_v22, %v636_v21  ;;  %v644_v33 = vld [vmem:[#allocation7 + $0xa58] sm:$0xff] }
  0xef   : > { %4798 = vmatpush1.bf16.msra.mxu0 %v4797_v56  ;;  %v593_v56 = vld [vmem:[#allocation7 + $0x8c0] sm:$0xff]  ;;  %v5055_v32 = vpack.c.bf16 %v645_v25, %v638_v24  ;;  %v650_v34 = vld [vmem:[#allocation7 + $0xa88] sm:$0xff]  ;;  %v652_v36 = vld [vmem:[#allocation7 + $0xa98] sm:$0xff] }
  0xf0   : > { %5022 = vmatpush1.bf16.msra.mxu1 %v5021_v57  ;;  %4800 = vmatprep.subr.bf16.mxu0 %v4799_v58  ;;  %v600_v57 = vld [vmem:[#allocation7 + $0x8f8] sm:$0xff]  ;;  %v595_v58 = vld [vmem:[#allocation7 + $0x8d0] sm:$0xff]  ;;  %v658_v45 = vld [vmem:[#allocation7 + $0xac8] sm:$0xff] }
  0xf1   : > { %5024 = vmatprep.subr.bf16.mxu1 %v5023_v62  ;;  %v615_v62 = vld [vmem:[#allocation7 + $0x970] sm:$0xff]  ;;  %v4821_v1 = vpack.c.bf16 %v600_v57, %v593_v56  ;;  %v5045_v2 = vpack.c.bf16 %v602_v60, %v595_v58  ;;  %v664_v46 = vld [vmem:[#allocation7 + $0xaf8] sm:$0xff]  ;;  %v666_v48 = vld [vmem:[#allocation7 + $0xb08] sm:$0xff]  ;;  %v6765_v60 = vmov 0.0  }
  0xf2   : > { %v4823_v3 = vpack.c.bf16 %v615_v62, %v608_v61  ;;  %v659_v37 = vld [vmem:[#allocation7 + $0xad0] sm:$0xff]  ;;  %v673_v49 = vld [vmem:[#allocation7 + $0xb40] sm:$0xff]  ;;  %v672_v57 = vld [vmem:[#allocation7 + $0xb38] sm:$0xff]  ;;  %4148 = vst [vmem:[#allocation2 + $0x10] sm:$0xff] %v6765_v60 }
  0xf3   : > { %4802 = vmatpush1.bf16.msra.mxu0 %v4801_v4  ;;  %v607_v4 = vld [vmem:[#allocation7 + $0x930] sm:$0xff]  ;;  %v5059_v44 = vpack.c.bf16 %v659_v37, %v652_v36  ;;  %v5063_v56 = vpack.c.bf16 %v673_v49, %v666_v48  ;;  %v678_v58 = vld [vmem:[#allocation7 + $0xb68] sm:$0xff]  ;;  %v680_v61 = vld [vmem:[#allocation7 + $0xb78] sm:$0xff] }
  0xf4   : > { %5026 = vmatpush1.bf16.msra.mxu1 %v5025_v5  ;;  %4804 = vmatprep.subr.bf16.mxu0 %v4803_v6  ;;  %v614_v5 = vld [vmem:[#allocation7 + $0x968] sm:$0xff]  ;;  %v609_v6 = vld [vmem:[#allocation7 + $0x940] sm:$0xff]  ;;  %v687_v62 = vld [vmem:[#allocation7 + $0xbb0] sm:$0xff] }
  0xf5   : > { %5028 = vmatprep.subr.bf16.mxu1 %v5027_v10  ;;  %v629_v10 = vld [vmem:[#allocation7 + $0x9e0] sm:$0xff]  ;;  %v4825_v13 = vpack.c.bf16 %v614_v5, %v607_v4  ;;  %v5049_v15 = vpack.c.bf16 %v616_v8, %v609_v6  ;;  %v679_v4 = vld [vmem:[#allocation7 + $0xb70] sm:$0xff]  ;;  %v5067_v5 = vpack.c.bf16 %v687_v62, %v680_v61  ;;  %v686_v6 = vld [vmem:[#allocation7 + $0xba8] sm:$0xff] }
  0xf6   : > { %1162 = vmatmul.mubr.f32.vlgmr.msra.gmra.mrb[0].mxu0 %v306_v16  ;;  %v699_v8 = vld [vmem:[#allocation7 + $0xc10] sm:$0xff]  ;;  %v5069_v12 = vpack.c.bf16 %v686_v6, %v679_v4  ;;  %v708_v21 = vld [vmem:[#allocation7 + $0xc58] sm:$0xff]  ;;  %v762_v4 = vld [vmem:[#allocation7 + $0xe08] sm:$0xff] }
  0xf7   : > { %4806 = vmatpush1.bf16.msra.mxu0 %v4805_v17  ;;  %1446 = vmatmul.mubr.f32.vlgmr.msra.gmra.mrb[0].mxu1 %v306_v16  ;;  %v4827_v16 = vpack.c.bf16 %v629_v10, %v622_v9  ;;  %v628_v17 = vld [vmem:[#allocation7 + $0x9d8] sm:$0xff]  ;;  %v694_v9 = vld [vmem:[#allocation7 + $0xbe8] sm:$0xff]  ;;  %v701_v10 = vld [vmem:[#allocation7 + $0xc20] sm:$0xff] }
  0xf8   : > { %5030 = vmatpush1.bf16.msra.mxu1 %v5029_v18  ;;  %4808 = vmatprep.subr.bf16.mxu0 %v4807_v19  ;;  %v623_v18 = vld [vmem:[#allocation7 + $0x9b0] sm:$0xff]  ;;  %v630_v19 = vld [vmem:[#allocation7 + $0x9e8] sm:$0xff]  ;;  %v4829_v26 = vpack.c.bf16 %v628_v17, %v621_v14  ;;  %v5071_v17 = vpack.c.bf16 %v701_v10, %v694_v9  ;;  %v764_v6 = vld [vmem:[#allocation7 + $0xe18] sm:$0xff] }
  0xf9   : > { %5032 = vmatprep.subr.bf16.mxu1 %v5031_v23  ;;  %v309_v23 = vld [vmem:[%s7084_s20 + $0x18] sm:$0xff]  ;;  %v5053_v27 = vpack.c.bf16 %v630_v19, %v623_v18  ;;  %v691_v14 = vld [vmem:[#allocation7 + $0xbd0] sm:$0xff]  ;;  %v700_v18 = vld [vmem:[#allocation7 + $0xc18] sm:$0xff] }
  0xfa   : > { %1232 = vmatprep.mubr.f32.mxu0 %v309_v23  ;;  %1516 = vmatprep.mubr.f32.mxu1 %v309_v23  ;;  %v706_v19 = vld [vmem:[#allocation7 + $0xc48] sm:$0xff]  ;;  %v715_v22 = vld [vmem:[#allocation7 + $0xc90] sm:$0xff] }
  0xfb   : > { %4810 = vmatpush1.bf16.msra.mxu0 %v4809_v29  ;;  %v635_v29 = vld [vmem:[#allocation7 + $0xa10] sm:$0xff] }
  0xfc   : > { %5034 = vmatpush1.bf16.msra.mxu1 %v5033_v30  ;;  %4812 = vmatprep.subr.bf16.mxu0 %v4811_v31  ;;  %v642_v30 = vld [vmem:[#allocation7 + $0xa48] sm:$0xff]  ;;  %v637_v31 = vld [vmem:[#allocation7 + $0xa20] sm:$0xff] }
  0xfd   : > { %5036 = vmatprep.subr.bf16.mxu1 %v5035_v35  ;;  %v657_v35 = vld [vmem:[#allocation7 + $0xac0] sm:$0xff]  ;;  %v4833_v38 = vpack.c.bf16 %v642_v30, %v635_v29  ;;  %v5057_v39 = vpack.c.bf16 %v644_v33, %v637_v31  ;;  %v5075_v29 = vpack.c.bf16 %v715_v22, %v708_v21  ;;  %v714_v30 = vld [vmem:[#allocation7 + $0xc88] sm:$0xff]  ;;  %v720_v31 = vld [vmem:[#allocation7 + $0xcb8] sm:$0xff] }
  0xfe   : > { %v4835_v40 = vpack.c.bf16 %v657_v35, %v650_v34  ;;  %v722_v33 = vld [vmem:[#allocation7 + $0xcc8] sm:$0xff]  ;;  %v729_v34 = vld [vmem:[#allocation7 + $0xd00] sm:$0xff] }
  0xff   : > { %4814 = vmatpush1.bf16.msra.mxu0 %v4813_v41  ;;  %v649_v41 = vld [vmem:[#allocation7 + $0xa80] sm:$0xff] }
 0x100   : > { %5038 = vmatpush1.bf16.msra.mxu1 %v5037_v42  ;;  %4816 = vmatprep.subr.bf16.mxu0 %v4815_v43  ;;  %v656_v42 = vld [vmem:[#allocation7 + $0xab8] sm:$0xff]  ;;  %v651_v43 = vld [vmem:[#allocation7 + $0xa90] sm:$0xff] }
 0x101   : > { %5040 = vmatprep.subr.bf16.mxu1 %v5039_v47  ;;  %v671_v47 = vld [vmem:[#allocation7 + $0xb30] sm:$0xff]  ;;  %v4837_v50 = vpack.c.bf16 %v656_v42, %v649_v41  ;;  %v5061_v51 = vpack.c.bf16 %v658_v45, %v651_v43  ;;  %v5079_v41 = vpack.c.bf16 %v729_v34, %v722_v33  ;;  %v728_v42 = vld [vmem:[#allocation7 + $0xcf8] sm:$0xff]  ;;  %v734_v43 = vld [vmem:[#allocation7 + $0xd28] sm:$0xff] }
 0x102   : > { %v4839_v52 = vpack.c.bf16 %v671_v47, %v664_v46  ;;  %v736_v45 = vld [vmem:[#allocation7 + $0xd38] sm:$0xff]  ;;  %v743_v46 = vld [vmem:[#allocation7 + $0xd70] sm:$0xff] }
 0x103   : > { %4818 = vmatpush1.bf16.msra.mxu0 %v4817_v53  ;;  %v663_v53 = vld [vmem:[#allocation7 + $0xaf0] sm:$0xff] }
 0x104   : > { %5042 = vmatpush1.bf16.msra.mxu1 %v5041_v54  ;;  %4820 = vmatprep.subr.bf16.mxu0 %v4819_v55  ;;  %v670_v54 = vld [vmem:[#allocation7 + $0xb28] sm:$0xff]  ;;  %v665_v55 = vld [vmem:[#allocation7 + $0xb00] sm:$0xff]  ;;  %v311_v33 = vld [vmem:[%s7084_s20 + $0x28] sm:$0xff] }
 0x105   : > { %5044 = vmatprep.subr.bf16.mxu1 %v5043_v59  ;;  %v685_v59 = vld [vmem:[#allocation7 + $0xba0] sm:$0xff]  ;;  %v4841_v63 = vpack.c.bf16 %v670_v54, %v663_v53  ;;  %v5065_v0 = vpack.c.bf16 %v672_v57, %v665_v55  ;;  %v5083_v53 = vpack.c.bf16 %v743_v46, %v736_v45  ;;  %v742_v54 = vld [vmem:[#allocation7 + $0xd68] sm:$0xff]  ;;  %v748_v55 = vld [vmem:[#allocation7 + $0xd98] sm:$0xff] }
 0x106   : > { %v750_v57 = vld [vmem:[#allocation7 + $0xda8] sm:$0xff]  ;;  %v813_v45 = vld [vmem:[#allocation7 + $0xfa0] sm:$0xff] }
 0x107   : > { %4822 = vmatpush1.bf16.msra.mxu0 %v4821_v1  ;;  %v4843_v1 = vpack.c.bf16 %v685_v59, %v678_v58  ;;  %v757_v58 = vld [vmem:[#allocation7 + $0xde0] sm:$0xff] }
 0x108   : > { %5046 = vmatpush1.bf16.msra.mxu1 %v5045_v2  ;;  %4824 = vmatprep.subr.bf16.mxu0 %v4823_v3  ;;  %v677_v2 = vld [vmem:[#allocation7 + $0xb60] sm:$0xff]  ;;  %v684_v3 = vld [vmem:[#allocation7 + $0xb98] sm:$0xff] }
 0x109   : > { %5048 = vmatprep.subr.bf16.mxu1 %v5047_v7  ;;  %v692_v7 = vld [vmem:[#allocation7 + $0xbd8] sm:$0xff]  ;;  %v4845_v11 = vpack.c.bf16 %v684_v3, %v677_v2  ;;  %v5087_v2 = vpack.c.bf16 %v757_v58, %v750_v57  ;;  %v827_v57 = vld [vmem:[#allocation7 + $0x1010] sm:$0xff] }
 0x10a   : > { %v756_v3 = vld [vmem:[#allocation7 + $0xdd8] sm:$0xff] }
 0x10b   : > { %4826 = vmatpush1.bf16.msra.mxu0 %v4825_v13  ;;  %v4847_v13 = vpack.c.bf16 %v699_v8, %v692_v7  ;;  %v771_v7 = vld [vmem:[#allocation7 + $0xe50] sm:$0xff] }
 0x10c   : > { %5050 = vmatpush1.bf16.msra.mxu1 %v5049_v15  ;;  %4828 = vmatprep.subr.bf16.mxu0 %v4827_v16  ;;  %v698_v15 = vld [vmem:[#allocation7 + $0xc08] sm:$0xff]  ;;  %v693_v16 = vld [vmem:[#allocation7 + $0xbe0] sm:$0xff] }
 0x10d   : > { %5052 = vmatprep.subr.bf16.mxu1 %v5051_v20  ;;  %v713_v20 = vld [vmem:[#allocation7 + $0xc80] sm:$0xff]  ;;  %v4849_v23 = vpack.c.bf16 %v698_v15, %v691_v14  ;;  %v5073_v24 = vpack.c.bf16 %v700_v18, %v693_v16  ;;  %v5091_v14 = vpack.c.bf16 %v771_v7, %v764_v6  ;;  %v770_v15 = vld [vmem:[#allocation7 + $0xe48] sm:$0xff]  ;;  %v776_v16 = vld [vmem:[#allocation7 + $0xe78] sm:$0xff] }
 0x10e   : > { %v4851_v25 = vpack.c.bf16 %v713_v20, %v706_v19  ;;  %v778_v18 = vld [vmem:[#allocation7 + $0xe88] sm:$0xff]  ;;  %v785_v19 = vld [vmem:[#allocation7 + $0xec0] sm:$0xff] }
 0x10f   : > { %4830 = vmatpush1.bf16.msra.mxu0 %v4829_v26  ;;  %v705_v26 = vld [vmem:[#allocation7 + $0xc40] sm:$0xff] }
 0x110   : > { %5054 = vmatpush1.bf16.msra.mxu1 %v5053_v27  ;;  %4832 = vmatprep.subr.bf16.mxu0 %v4831_v28  ;;  %v712_v27 = vld [vmem:[#allocation7 + $0xc78] sm:$0xff]  ;;  %v707_v28 = vld [vmem:[#allocation7 + $0xc50] sm:$0xff]  ;;  %v841_v6 = vld [vmem:[#allocation7 + $0x1080] sm:$0xff] }
 0x111   : > { %5056 = vmatprep.subr.bf16.mxu1 %v5055_v32  ;;  %v727_v32 = vld [vmem:[#allocation7 + $0xcf0] sm:$0xff]  ;;  %v4853_v35 = vpack.c.bf16 %v712_v27, %v705_v26  ;;  %v5077_v36 = vpack.c.bf16 %v714_v30, %v707_v28  ;;  %v308_v20 = vld [vmem:[%s7084_s20 + $0x10] sm:$0xff]  ;;  %v5095_v27 = vpack.c.bf16 %v785_v19, %v778_v18 }
 0x112   : > { %v4855_v37 = vpack.c.bf16 %v727_v32, %v720_v31  ;;  %v777_v26 = vld [vmem:[#allocation7 + $0xe80] sm:$0xff]  ;;  %v784_v28 = vld [vmem:[#allocation7 + $0xeb8] sm:$0xff]  ;;  %v799_v32 = vld [vmem:[#allocation7 + $0xf30] sm:$0xff] }
 0x113   : > { %4834 = vmatpush1.bf16.msra.mxu0 %v4833_v38  ;;  %v719_v38 = vld [vmem:[#allocation7 + $0xcb0] sm:$0xff]  ;;  %v797_v30 = vld [vmem:[#allocation7 + $0xf20] sm:$0xff]  ;;  %v792_v31 = vld [vmem:[#allocation7 + $0xef8] sm:$0xff] }
 0x114   : > { %5058 = vmatpush1.bf16.msra.mxu1 %v5057_v39  ;;  %4836 = vmatprep.subr.bf16.mxu0 %v4835_v40  ;;  %v726_v39 = vld [vmem:[#allocation7 + $0xce8] sm:$0xff]  ;;  %v721_v40 = vld [vmem:[#allocation7 + $0xcc0] sm:$0xff]  ;;  %v855_v18 = vld [vmem:[#allocation7 + $0x10f0] sm:$0xff] }
 0x115   : > { %5060 = vmatprep.subr.bf16.mxu1 %v5059_v44  ;;  %v741_v44 = vld [vmem:[#allocation7 + $0xd60] sm:$0xff]  ;;  %v4857_v47 = vpack.c.bf16 %v726_v39, %v719_v38  ;;  %v5081_v48 = vpack.c.bf16 %v728_v42, %v721_v40  ;;  %v796_v38 = vld [vmem:[#allocation7 + $0xf18] sm:$0xff]  ;;  %v791_v39 = vld [vmem:[#allocation7 + $0xef0] sm:$0xff]  ;;  %v5099_v40 = vpack.c.bf16 %v799_v32, %v792_v31 }
 0x116   : > { %v4859_v49 = vpack.c.bf16 %v741_v44, %v734_v43  ;;  %v804_v42 = vld [vmem:[#allocation7 + $0xf58] sm:$0xff]  ;;  %v811_v43 = vld [vmem:[#allocation7 + $0xf90] sm:$0xff]  ;;  %v806_v44 = vld [vmem:[#allocation7 + $0xf68] sm:$0xff] }
 0x117   : > { %4838 = vmatpush1.bf16.msra.mxu0 %v4837_v50  ;;  %v733_v50 = vld [vmem:[#allocation7 + $0xd20] sm:$0xff] }
 0x118   : > { %5062 = vmatpush1.bf16.msra.mxu1 %v5061_v51  ;;  %4840 = vmatprep.subr.bf16.mxu0 %v4839_v52  ;;  %v740_v51 = vld [vmem:[#allocation7 + $0xd58] sm:$0xff]  ;;  %v735_v52 = vld [vmem:[#allocation7 + $0xd30] sm:$0xff] }
 0x119   : > { %5064 = vmatprep.subr.bf16.mxu1 %v5063_v56  ;;  %v755_v56 = vld [vmem:[#allocation7 + $0xdd0] sm:$0xff]  ;;  %v4861_v59 = vpack.c.bf16 %v740_v51, %v733_v50  ;;  %v5085_v61 = vpack.c.bf16 %v742_v54, %v735_v52  ;;  %v810_v50 = vld [vmem:[#allocation7 + $0xf88] sm:$0xff]  ;;  %v805_v51 = vld [vmem:[#allocation7 + $0xf60] sm:$0xff]  ;;  %v5103_v52 = vpack.c.bf16 %v813_v45, %v806_v44 }
 0x11a   : > { %v4863_v62 = vpack.c.bf16 %v755_v56, %v748_v55  ;;  %v818_v54 = vld [vmem:[#allocation7 + $0xfc8] sm:$0xff]  ;;  %v825_v55 = vld [vmem:[#allocation7 + $0x1000] sm:$0xff]  ;;  %v820_v56 = vld [vmem:[#allocation7 + $0xfd8] sm:$0xff] }
 0x11b   : > { %4842 = vmatpush1.bf16.msra.mxu0 %v4841_v63  ;;  %v747_v63 = vld [vmem:[#allocation7 + $0xd90] sm:$0xff] }
 0x11c   : > { %5066 = vmatpush1.bf16.msra.mxu1 %v5065_v0  ;;  %4844 = vmatprep.subr.bf16.mxu0 %v4843_v1  ;;  %v754_v0 = vld [vmem:[#allocation7 + $0xdc8] sm:$0xff]  ;;  %v749_v1 = vld [vmem:[#allocation7 + $0xda0] sm:$0xff] }
 0x11d   : > { %5068 = vmatprep.subr.bf16.mxu1 %v5067_v5  ;;  %v769_v5 = vld [vmem:[#allocation7 + $0xe40] sm:$0xff]  ;;  %v4865_v8 = vpack.c.bf16 %v754_v0, %v747_v63  ;;  %v5089_v9 = vpack.c.bf16 %v756_v3, %v749_v1  ;;  %v824_v63 = vld [vmem:[#allocation7 + $0xff8] sm:$0xff]  ;;  %v819_v0 = vld [vmem:[#allocation7 + $0xfd0] sm:$0xff]  ;;  %v5107_v1 = vpack.c.bf16 %v827_v57, %v820_v56 }
 0x11e   : > { %v4867_v10 = vpack.c.bf16 %v769_v5, %v762_v4  ;;  %v832_v3 = vld [vmem:[#allocation7 + $0x1038] sm:$0xff]  ;;  %v839_v4 = vld [vmem:[#allocation7 + $0x1070] sm:$0xff]  ;;  %v834_v5 = vld [vmem:[#allocation7 + $0x1048] sm:$0xff] }
 0x11f   : > { %4846 = vmatpush1.bf16.msra.mxu0 %v4845_v11  ;;  %v761_v11 = vld [vmem:[#allocation7 + $0xe00] sm:$0xff] }
 0x120   : > { %5070 = vmatpush1.bf16.msra.mxu1 %v5069_v12  ;;  %4848 = vmatprep.subr.bf16.mxu0 %v4847_v13  ;;  %v768_v12 = vld [vmem:[#allocation7 + $0xe38] sm:$0xff]  ;;  %v763_v13 = vld [vmem:[#allocation7 + $0xe10] sm:$0xff] }
 0x121   : > { %5072 = vmatprep.subr.bf16.mxu1 %v5071_v17  ;;  %v783_v17 = vld [vmem:[#allocation7 + $0xeb0] sm:$0xff]  ;;  %v4869_v21 = vpack.c.bf16 %v768_v12, %v761_v11  ;;  %v5093_v22 = vpack.c.bf16 %v770_v15, %v763_v13  ;;  %v838_v11 = vld [vmem:[#allocation7 + $0x1068] sm:$0xff]  ;;  %v833_v12 = vld [vmem:[#allocation7 + $0x1040] sm:$0xff]  ;;  %v5111_v13 = vpack.c.bf16 %v841_v6, %v834_v5 }
 0x122   : > { %v846_v15 = vld [vmem:[#allocation7 + $0x10a8] sm:$0xff] }
 0x123   : > { %4850 = vmatpush1.bf16.msra.mxu0 %v4849_v23  ;;  %v4871_v23 = vpack.c.bf16 %v783_v17, %v776_v16  ;;  %v853_v16 = vld [vmem:[#allocation7 + $0x10e0] sm:$0xff]  ;;  %v848_v17 = vld [vmem:[#allocation7 + $0x10b8] sm:$0xff] }
 0x124   : > { %5074 = vmatpush1.bf16.msra.mxu1 %v5073_v24  ;;  %4852 = vmatprep.subr.bf16.mxu0 %v4851_v25  ;;  %v775_v24 = vld [vmem:[#allocation7 + $0xe70] sm:$0xff]  ;;  %v782_v25 = vld [vmem:[#allocation7 + $0xea8] sm:$0xff] }
 0x125   : > { %5076 = vmatprep.subr.bf16.mxu1 %v5075_v29  ;;  %v790_v29 = vld [vmem:[#allocation7 + $0xee8] sm:$0xff]  ;;  %v4873_v34 = vpack.c.bf16 %v782_v25, %v775_v24  ;;  %v847_v24 = vld [vmem:[#allocation7 + $0x10b0] sm:$0xff]  ;;  %v5115_v25 = vpack.c.bf16 %v855_v18, %v848_v17 }
 0x127   : > { %4854 = vmatpush1.bf16.msra.mxu0 %v4853_v35  ;;  %v5097_v35 = vpack.c.bf16 %v784_v28, %v777_v26  ;;  %v854_v26 = vld [vmem:[#allocation7 + $0x10e8] sm:$0xff]  ;;  %v867_v28 = vld [vmem:[#allocation7 + $0x1150] sm:$0xff] }
 0x128   : > { %5078 = vmatpush1.bf16.msra.mxu1 %v5077_v36  ;;  %4856 = vmatprep.subr.bf16.mxu0 %v4855_v37  ;;  %v4875_v36 = vpack.c.bf16 %v797_v30, %v790_v29  ;;  %v789_v37 = vld [vmem:[#allocation7 + $0xee0] sm:$0xff]  ;;  %v862_v29 = vld [vmem:[#allocation7 + $0x1128] sm:$0xff]  ;;  %v5117_v32 = vpack.c.bf16 %v854_v26, %v847_v24  ;;  %v932_v26 = vld [vmem:[#allocation7 + $0x1358] sm:$0xff] }
 0x129   : > { %5080 = vmatprep.subr.bf16.mxu1 %v5079_v41  ;;  %v798_v41 = vld [vmem:[#allocation7 + $0xf28] sm:$0xff]  ;;  %v4877_v46 = vpack.c.bf16 %v796_v38, %v789_v37  ;;  %v869_v30 = vld [vmem:[#allocation7 + $0x1160] sm:$0xff]  ;;  %v868_v38 = vld [vmem:[#allocation7 + $0x1158] sm:$0xff] }
 0x12a   : > { %v5119_v37 = vpack.c.bf16 %v869_v30, %v862_v29  ;;  %v930_v24 = vld [vmem:[#allocation7 + $0x1348] sm:$0xff] }
 0x12b   : > { %4858 = vmatpush1.bf16.msra.mxu0 %v4857_v47  ;;  %v5101_v47 = vpack.c.bf16 %v798_v41, %v791_v39  ;;  %v874_v39 = vld [vmem:[#allocation7 + $0x1188] sm:$0xff]  ;;  %v876_v41 = vld [vmem:[#allocation7 + $0x1198] sm:$0xff] }
 0x12c   : > { %5082 = vmatpush1.bf16.msra.mxu1 %v5081_v48  ;;  %4860 = vmatprep.subr.bf16.mxu0 %v4859_v49  ;;  %v4879_v48 = vpack.c.bf16 %v811_v43, %v804_v42  ;;  %v803_v49 = vld [vmem:[#allocation7 + $0xf50] sm:$0xff] }
 0x12d   : > { %5084 = vmatprep.subr.bf16.mxu1 %v5083_v53  ;;  %v812_v53 = vld [vmem:[#allocation7 + $0xf98] sm:$0xff]  ;;  %v4881_v58 = vpack.c.bf16 %v810_v50, %v803_v49  ;;  %v883_v42 = vld [vmem:[#allocation7 + $0x11d0] sm:$0xff]  ;;  %v882_v50 = vld [vmem:[#allocation7 + $0x11c8] sm:$0xff] }
 0x12e   : > { %v5123_v49 = vpack.c.bf16 %v883_v42, %v876_v41 }
 0x12f   : > { %4862 = vmatpush1.bf16.msra.mxu0 %v4861_v59  ;;  %v5105_v59 = vpack.c.bf16 %v812_v53, %v805_v51  ;;  %v888_v51 = vld [vmem:[#allocation7 + $0x11f8] sm:$0xff]  ;;  %v890_v53 = vld [vmem:[#allocation7 + $0x1208] sm:$0xff] }
 0x130   : > { %5086 = vmatpush1.bf16.msra.mxu1 %v5085_v61  ;;  %4864 = vmatprep.subr.bf16.mxu0 %v4863_v62  ;;  %v4883_v61 = vpack.c.bf16 %v825_v55, %v818_v54  ;;  %v817_v62 = vld [vmem:[#allocation7 + $0xfc0] sm:$0xff] }
 0x131   : > { %5088 = vmatprep.subr.bf16.mxu1 %v5087_v2  ;;  %v826_v2 = vld [vmem:[#allocation7 + $0x1008] sm:$0xff]  ;;  %v4885_v7 = vpack.c.bf16 %v824_v63, %v817_v62  ;;  %v897_v54 = vld [vmem:[#allocation7 + $0x1240] sm:$0xff]  ;;  %v896_v63 = vld [vmem:[#allocation7 + $0x1238] sm:$0xff] }
 0x132   : > { %v5127_v62 = vpack.c.bf16 %v897_v54, %v890_v53 }
 0x133   : > { %4866 = vmatpush1.bf16.msra.mxu0 %v4865_v8  ;;  %v5109_v8 = vpack.c.bf16 %v826_v2, %v819_v0  ;;  %v902_v0 = vld [vmem:[#allocation7 + $0x1268] sm:$0xff]  ;;  %v904_v2 = vld [vmem:[#allocation7 + $0x1278] sm:$0xff] }
 0x134   : > { %5090 = vmatpush1.bf16.msra.mxu1 %v5089_v9  ;;  %4868 = vmatprep.subr.bf16.mxu0 %v4867_v10  ;;  %v4887_v9 = vpack.c.bf16 %v839_v4, %v832_v3  ;;  %v831_v10 = vld [vmem:[#allocation7 + $0x1030] sm:$0xff] }
 0x135   : > { %5092 = vmatprep.subr.bf16.mxu1 %v5091_v14  ;;  %v840_v14 = vld [vmem:[#allocation7 + $0x1078] sm:$0xff]  ;;  %v4889_v19 = vpack.c.bf16 %v838_v11, %v831_v10  ;;  %v911_v3 = vld [vmem:[#allocation7 + $0x12b0] sm:$0xff]  ;;  %v910_v11 = vld [vmem:[#allocation7 + $0x12a8] sm:$0xff] }
 0x136   : > { %1233 = vmatmul.mubr.f32.vlgmr.msra.gmra.mrb[0].mxu0 %v308_v20  ;;  %v5131_v10 = vpack.c.bf16 %v911_v3, %v904_v2 }
 0x137   : > { %4870 = vmatpush1.bf16.msra.mxu0 %v4869_v21  ;;  %1517 = vmatmul.mubr.f32.vlgmr.msra.gmra.mrb[0].mxu1 %v308_v20  ;;  %v5113_v20 = vpack.c.bf16 %v840_v14, %v833_v12  ;;  %v4891_v21 = vpack.c.bf16 %v853_v16, %v846_v15  ;;  %v916_v12 = vld [vmem:[#allocation7 + $0x12d8] sm:$0xff]  ;;  %v918_v14 = vld [vmem:[#allocation7 + $0x12e8] sm:$0xff]  ;;  %v925_v15 = vld [vmem:[#allocation7 + $0x1320] sm:$0xff] }
 0x138   : > { %5094 = vmatpush1.bf16.msra.mxu1 %v5093_v22  ;;  %4872 = vmatprep.subr.bf16.mxu0 %v4871_v23  ;;  %v845_v22 = vld [vmem:[#allocation7 + $0x10a0] sm:$0xff]  ;;  %v852_v23 = vld [vmem:[#allocation7 + $0x10d8] sm:$0xff] }
 0x139   : > { %5096 = vmatprep.subr.bf16.mxu1 %v5095_v27  ;;  %1303 = vmatprep.mubr.f32.mxu0 %v311_v33  ;;  %v860_v27 = vld [vmem:[#allocation7 + $0x1118] sm:$0xff]  ;;  %v4893_v31 = vpack.c.bf16 %v852_v23, %v845_v22  ;;  %v5135_v22 = vpack.c.bf16 %v925_v15, %v918_v14 }
 0x13a   : > { %1587 = vmatprep.mubr.f32.mxu1 %v311_v33  ;;  %v4895_v33 = vpack.c.bf16 %v867_v28, %v860_v27  ;;  %v924_v23 = vld [vmem:[#allocation7 + $0x1318] sm:$0xff]  ;;  %v939_v27 = vld [vmem:[#allocation7 + $0x1390] sm:$0xff] }
 0x13b   : > { %4874 = vmatpush1.bf16.msra.mxu0 %v4873_v34  ;;  %v859_v34 = vld [vmem:[#allocation7 + $0x1110] sm:$0xff] }
 0x13c   : > { %5098 = vmatpush1.bf16.msra.mxu1 %v5097_v35  ;;  %4876 = vmatprep.subr.bf16.mxu0 %v4875_v36  ;;  %v866_v35 = vld [vmem:[#allocation7 + $0x1148] sm:$0xff]  ;;  %v861_v36 = vld [vmem:[#allocation7 + $0x1120] sm:$0xff] }
 0x13d   : > { %5100 = vmatprep.subr.bf16.mxu1 %v5099_v40  ;;  %v881_v40 = vld [vmem:[#allocation7 + $0x11c0] sm:$0xff]  ;;  %v4897_v43 = vpack.c.bf16 %v866_v35, %v859_v34  ;;  %v5121_v44 = vpack.c.bf16 %v868_v38, %v861_v36  ;;  %v5139_v34 = vpack.c.bf16 %v939_v27, %v932_v26  ;;  %v938_v35 = vld [vmem:[#allocation7 + $0x1388] sm:$0xff]  ;;  %v944_v36 = vld [vmem:[#allocation7 + $0x13b8] sm:$0xff] }
 0x13e   : > { %v4899_v45 = vpack.c.bf16 %v881_v40, %v874_v39  ;;  %v946_v38 = vld [vmem:[#allocation7 + $0x13c8] sm:$0xff]  ;;  %v953_v39 = vld [vmem:[#allocation7 + $0x1400] sm:$0xff] }
 0x13f   : > { %4878 = vmatpush1.bf16.msra.mxu0 %v4877_v46  ;;  %v873_v46 = vld [vmem:[#allocation7 + $0x1180] sm:$0xff] }
 0x140   : > { %5102 = vmatpush1.bf16.msra.mxu1 %v5101_v47  ;;  %4880 = vmatprep.subr.bf16.mxu0 %v4879_v48  ;;  %v880_v47 = vld [vmem:[#allocation7 + $0x11b8] sm:$0xff]  ;;  %v875_v48 = vld [vmem:[#allocation7 + $0x1190] sm:$0xff] }
 0x141   : > { %5104 = vmatprep.subr.bf16.mxu1 %v5103_v52  ;;  %v895_v52 = vld [vmem:[#allocation7 + $0x1230] sm:$0xff]  ;;  %v4901_v55 = vpack.c.bf16 %v880_v47, %v873_v46  ;;  %v5125_v56 = vpack.c.bf16 %v882_v50, %v875_v48  ;;  %v5143_v46 = vpack.c.bf16 %v953_v39, %v946_v38  ;;  %v952_v47 = vld [vmem:[#allocation7 + $0x13f8] sm:$0xff]  ;;  %v958_v48 = vld [vmem:[#allocation7 + $0x1428] sm:$0xff] }
 0x142   : > { %v4903_v57 = vpack.c.bf16 %v895_v52, %v888_v51  ;;  %v960_v50 = vld [vmem:[#allocation7 + $0x1438] sm:$0xff]  ;;  %v967_v51 = vld [vmem:[#allocation7 + $0x1470] sm:$0xff] }
 0x143   : > { %4882 = vmatpush1.bf16.msra.mxu0 %v4881_v58  ;;  %v887_v58 = vld [vmem:[#allocation7 + $0x11f0] sm:$0xff] }
 0x144   : > { %5106 = vmatpush1.bf16.msra.mxu1 %v5105_v59  ;;  %4884 = vmatprep.subr.bf16.mxu0 %v4883_v61  ;;  %v894_v59 = vld [vmem:[#allocation7 + $0x1228] sm:$0xff]  ;;  %v889_v61 = vld [vmem:[#allocation7 + $0x1200] sm:$0xff] }
 0x145   : > { %5108 = vmatprep.subr.bf16.mxu1 %v5107_v1  ;;  %v909_v1 = vld [vmem:[#allocation7 + $0x12a0] sm:$0xff]  ;;  %v4905_v4 = vpack.c.bf16 %v894_v59, %v887_v58  ;;  %v5129_v5 = vpack.c.bf16 %v896_v63, %v889_v61  ;;  %v5147_v58 = vpack.c.bf16 %v967_v51, %v960_v50  ;;  %v966_v59 = vld [vmem:[#allocation7 + $0x1468] sm:$0xff]  ;;  %v972_v61 = vld [vmem:[#allocation7 + $0x1498] sm:$0xff] }
 0x146   : > { %v4907_v6 = vpack.c.bf16 %v909_v1, %v902_v0  ;;  %v974_v63 = vld [vmem:[#allocation7 + $0x14a8] sm:$0xff]  ;;  %v981_v0 = vld [vmem:[#allocation7 + $0x14e0] sm:$0xff] }
 0x147   : > { %4886 = vmatpush1.bf16.msra.mxu0 %v4885_v7  ;;  %v901_v7 = vld [vmem:[#allocation7 + $0x1260] sm:$0xff] }
 0x148   : > { %5110 = vmatpush1.bf16.msra.mxu1 %v5109_v8  ;;  %4888 = vmatprep.subr.bf16.mxu0 %v4887_v9  ;;  %v908_v8 = vld [vmem:[#allocation7 + $0x1298] sm:$0xff]  ;;  %v903_v9 = vld [vmem:[#allocation7 + $0x1270] sm:$0xff] }
 0x149   : > { %5112 = vmatprep.subr.bf16.mxu1 %v5111_v13  ;;  %v923_v13 = vld [vmem:[#allocation7 + $0x1310] sm:$0xff]  ;;  %v4909_v16 = vpack.c.bf16 %v908_v8, %v901_v7  ;;  %v5133_v17 = vpack.c.bf16 %v910_v11, %v903_v9  ;;  %v5151_v7 = vpack.c.bf16 %v981_v0, %v974_v63  ;;  %v980_v8 = vld [vmem:[#allocation7 + $0x14d8] sm:$0xff]  ;;  %v986_v9 = vld [vmem:[#allocation7 + $0x1508] sm:$0xff] }
 0x14a   : > { %v4911_v18 = vpack.c.bf16 %v923_v13, %v916_v12  ;;  %v988_v11 = vld [vmem:[#allocation7 + $0x1518] sm:$0xff]  ;;  %v995_v12 = vld [vmem:[#allocation7 + $0x1550] sm:$0xff] }
 0x14b   : > { %4890 = vmatpush1.bf16.msra.mxu0 %v4889_v19  ;;  %v915_v19 = vld [vmem:[#allocation7 + $0x12d0] sm:$0xff] }
 0x14c   : > { %5114 = vmatpush1.bf16.msra.mxu1 %v5113_v20  ;;  %4892 = vmatprep.subr.bf16.mxu0 %v4891_v21  ;;  %v922_v20 = vld [vmem:[#allocation7 + $0x1308] sm:$0xff]  ;;  %v917_v21 = vld [vmem:[#allocation7 + $0x12e0] sm:$0xff] }
 0x14d   : > { %5116 = vmatprep.subr.bf16.mxu1 %v5115_v25  ;;  %v937_v25 = vld [vmem:[#allocation7 + $0x1380] sm:$0xff]  ;;  %v4913_v28 = vpack.c.bf16 %v922_v20, %v915_v19  ;;  %v5137_v29 = vpack.c.bf16 %v924_v23, %v917_v21  ;;  %v5155_v19 = vpack.c.bf16 %v995_v12, %v988_v11  ;;  %v994_v20 = vld [vmem:[#allocation7 + $0x1548] sm:$0xff]  ;;  %v1000_v21 = vld [vmem:[#allocation7 + $0x1578] sm:$0xff] }
 0x14e   : > { %v4915_v30 = vpack.c.bf16 %v937_v25, %v930_v24  ;;  %v1002_v23 = vld [vmem:[#allocation7 + $0x1588] sm:$0xff]  ;;  %v1009_v24 = vld [vmem:[#allocation7 + $0x15c0] sm:$0xff] }
 0x14f   : > { %4894 = vmatpush1.bf16.msra.mxu0 %v4893_v31  ;;  %v929_v31 = vld [vmem:[#allocation7 + $0x1340] sm:$0xff]  ;;  %v310_v25 = vld [vmem:[%s7084_s20 + $0x20] sm:$0xff] }
 0x150   : > { %5118 = vmatpush1.bf16.msra.mxu1 %v5117_v32  ;;  %4896 = vmatprep.subr.bf16.mxu0 %v4895_v33  ;;  %v936_v32 = vld [vmem:[#allocation7 + $0x1378] sm:$0xff]  ;;  %v931_v33 = vld [vmem:[#allocation7 + $0x1350] sm:$0xff] }
 0x151   : > { %5120 = vmatprep.subr.bf16.mxu1 %v5119_v37  ;;  %v951_v37 = vld [vmem:[#allocation7 + $0x13f0] sm:$0xff]  ;;  %v4917_v40 = vpack.c.bf16 %v936_v32, %v929_v31  ;;  %v5141_v41 = vpack.c.bf16 %v938_v35, %v931_v33  ;;  %v1001_v31 = vld [vmem:[#allocation7 + $0x1580] sm:$0xff]  ;;  %v5159_v32 = vpack.c.bf16 %v1009_v24, %v1002_v23  ;;  %v1008_v33 = vld [vmem:[#allocation7 + $0x15b8] sm:$0xff] }
 0x152   : > { %v4919_v42 = vpack.c.bf16 %v951_v37, %v944_v36  ;;  %v1021_v35 = vld [vmem:[#allocation7 + $0x1620] sm:$0xff]  ;;  %v1016_v36 = vld [vmem:[#allocation7 + $0x15f8] sm:$0xff]  ;;  %v1023_v37 = vld [vmem:[#allocation7 + $0x1630] sm:$0xff]  ;;  %v5161_v39 = vpack.c.bf16 %v1008_v33, %v1001_v31 }
 0x153   : > { %4898 = vmatpush1.bf16.msra.mxu0 %v4897_v43  ;;  %v943_v43 = vld [vmem:[#allocation7 + $0x13b0] sm:$0xff]  ;;  %v1093_v33 = vld [vmem:[#allocation7 + $0x1860] sm:$0xff] }
 0x154   : > { %5122 = vmatpush1.bf16.msra.mxu1 %v5121_v44  ;;  %4900 = vmatprep.subr.bf16.mxu0 %v4899_v45  ;;  %v950_v44 = vld [vmem:[#allocation7 + $0x13e8] sm:$0xff]  ;;  %v945_v45 = vld [vmem:[#allocation7 + $0x13c0] sm:$0xff]  ;;  %v1091_v31 = vld [vmem:[#allocation7 + $0x1850] sm:$0xff] }
 0x155   : > { %5124 = vmatprep.subr.bf16.mxu1 %v5123_v49  ;;  %v965_v49 = vld [vmem:[#allocation7 + $0x1460] sm:$0xff]  ;;  %v4921_v52 = vpack.c.bf16 %v950_v44, %v943_v43  ;;  %v5145_v53 = vpack.c.bf16 %v952_v47, %v945_v45  ;;  %v1015_v43 = vld [vmem:[#allocation7 + $0x15f0] sm:$0xff]  ;;  %v5163_v44 = vpack.c.bf16 %v1023_v37, %v1016_v36  ;;  %v1022_v45 = vld [vmem:[#allocation7 + $0x1628] sm:$0xff] }
 0x156   : > { %v4923_v54 = vpack.c.bf16 %v965_v49, %v958_v48  ;;  %v1035_v47 = vld [vmem:[#allocation7 + $0x1690] sm:$0xff]  ;;  %v1030_v48 = vld [vmem:[#allocation7 + $0x1668] sm:$0xff]  ;;  %v1037_v49 = vld [vmem:[#allocation7 + $0x16a0] sm:$0xff]  ;;  %v5165_v51 = vpack.c.bf16 %v1022_v45, %v1015_v43 }
 0x157   : > { %4902 = vmatpush1.bf16.msra.mxu0 %v4901_v55  ;;  %v957_v55 = vld [vmem:[#allocation7 + $0x1420] sm:$0xff]  ;;  %v1083_v37 = vld [vmem:[#allocation7 + $0x1810] sm:$0xff]  ;;  %v438_v45 = vld [vmem:[#allocation7 + $0x3e8] sm:$0xff] }
 0x158   : > { %5126 = vmatpush1.bf16.msra.mxu1 %v5125_v56  ;;  %4904 = vmatprep.subr.bf16.mxu0 %v4903_v57  ;;  %v964_v56 = vld [vmem:[#allocation7 + $0x1458] sm:$0xff]  ;;  %v959_v57 = vld [vmem:[#allocation7 + $0x1430] sm:$0xff]  ;;  %v325_v43 = vld [vmem:[#allocation7 + $0x60] sm:$0xff] }
 0x159   : > { %5128 = vmatprep.subr.bf16.mxu1 %v5127_v62  ;;  %v979_v62 = vld [vmem:[#allocation7 + $0x14d0] sm:$0xff]  ;;  %v4925_v1 = vpack.c.bf16 %v964_v56, %v957_v55  ;;  %v5149_v2 = vpack.c.bf16 %v966_v59, %v959_v57  ;;  %v1029_v55 = vld [vmem:[#allocation7 + $0x1660] sm:$0xff]  ;;  %v5167_v56 = vpack.c.bf16 %v1037_v49, %v1030_v48  ;;  %v1036_v57 = vld [vmem:[#allocation7 + $0x1698] sm:$0xff] }
 0x15a   : > { %v4927_v3 = vpack.c.bf16 %v979_v62, %v972_v61  ;;  %v1049_v59 = vld [vmem:[#allocation7 + $0x1700] sm:$0xff]  ;;  %v1044_v61 = vld [vmem:[#allocation7 + $0x16d8] sm:$0xff]  ;;  %v1051_v62 = vld [vmem:[#allocation7 + $0x1710] sm:$0xff] }
 0x15b   : > { %4906 = vmatpush1.bf16.msra.mxu0 %v4905_v4  ;;  %v971_v4 = vld [vmem:[#allocation7 + $0x1490] sm:$0xff]  ;;  %v317_v49 = vld [vmem:[#allocation7 + $0x20] sm:$0xff] }
 0x15c   : > { %5130 = vmatpush1.bf16.msra.mxu1 %v5129_v5  ;;  %4908 = vmatprep.subr.bf16.mxu0 %v4907_v6  ;;  %v978_v5 = vld [vmem:[#allocation7 + $0x14c8] sm:$0xff]  ;;  %v973_v6 = vld [vmem:[#allocation7 + $0x14a0] sm:$0xff] }
 0x15d   : > { %5132 = vmatprep.subr.bf16.mxu1 %v5131_v10  ;;  %v993_v10 = vld [vmem:[#allocation7 + $0x1540] sm:$0xff]  ;;  %v4929_v13 = vpack.c.bf16 %v978_v5, %v971_v4  ;;  %v5153_v14 = vpack.c.bf16 %v980_v8, %v973_v6  ;;  %v5171_v4 = vpack.c.bf16 %v1051_v62, %v1044_v61  ;;  %v1050_v5 = vld [vmem:[#allocation7 + $0x1708] sm:$0xff]  ;;  %v1056_v6 = vld [vmem:[#allocation7 + $0x1738] sm:$0xff] }
 0x15e   : > { %v4931_v15 = vpack.c.bf16 %v993_v10, %v986_v9  ;;  %v1058_v8 = vld [vmem:[#allocation7 + $0x1748] sm:$0xff]  ;;  %v1065_v9 = vld [vmem:[#allocation7 + $0x1780] sm:$0xff]  ;;  %v331_v62 = vld [vmem:[#allocation7 + $0x90] sm:$0xff] }
 0x15f   : > { %4910 = vmatpush1.bf16.msra.mxu0 %v4909_v16  ;;  %v985_v16 = vld [vmem:[#allocation7 + $0x1500] sm:$0xff] }
 0x160   : > { %5134 = vmatpush1.bf16.msra.mxu1 %v5133_v17  ;;  %4912 = vmatprep.subr.bf16.mxu0 %v4911_v18  ;;  %v992_v17 = vld [vmem:[#allocation7 + $0x1538] sm:$0xff]  ;;  %v987_v18 = vld [vmem:[#allocation7 + $0x1510] sm:$0xff] }
 0x161   : > { %5136 = vmatprep.subr.bf16.mxu1 %v5135_v22  ;;  %v1007_v22 = vld [vmem:[#allocation7 + $0x15b0] sm:$0xff]  ;;  %v4933_v26 = vpack.c.bf16 %v992_v17, %v985_v16  ;;  %v5157_v27 = vpack.c.bf16 %v994_v20, %v987_v18  ;;  %v5175_v16 = vpack.c.bf16 %v1065_v9, %v1058_v8  ;;  %v1064_v17 = vld [vmem:[#allocation7 + $0x1778] sm:$0xff]  ;;  %v1070_v18 = vld [vmem:[#allocation7 + $0x17a8] sm:$0xff] }
 0x162   : > { %v1072_v20 = vld [vmem:[#allocation7 + $0x17b8] sm:$0xff]  ;;  %v345_v9 = vld [vmem:[#allocation7 + $0x100] sm:$0xff] }
 0x163   : > { %4914 = vmatpush1.bf16.msra.mxu0 %v4913_v28  ;;  %v4935_v28 = vpack.c.bf16 %v1007_v22, %v1000_v21  ;;  %v1079_v21 = vld [vmem:[#allocation7 + $0x17f0] sm:$0xff] }
 0x164   : > { %5138 = vmatpush1.bf16.msra.mxu1 %v5137_v29  ;;  %4916 = vmatprep.subr.bf16.mxu0 %v4915_v30  ;;  %v999_v29 = vld [vmem:[#allocation7 + $0x1570] sm:$0xff]  ;;  %v1006_v30 = vld [vmem:[#allocation7 + $0x15a8] sm:$0xff] }
 0x165   : > { %5140 = vmatprep.subr.bf16.mxu1 %v5139_v34  ;;  %v1014_v34 = vld [vmem:[#allocation7 + $0x15e8] sm:$0xff]  ;;  %v4937_v38 = vpack.c.bf16 %v1006_v30, %v999_v29  ;;  %v1084_v30 = vld [vmem:[#allocation7 + $0x1818] sm:$0xff] }
 0x166   : > { %v1078_v29 = vld [vmem:[#allocation7 + $0x17e8] sm:$0xff]  ;;  %v4959_v36 = vpack.c.bf16 %v1091_v31, %v1084_v30  ;;  %v487_v30 = vld [vmem:[#allocation7 + $0x570] sm:$0xff] }
 0x167   : > { %4918 = vmatpush1.bf16.msra.mxu0 %v4917_v40  ;;  %v4939_v40 = vpack.c.bf16 %v1021_v35, %v1014_v34  ;;  %v494_v31 = vld [vmem:[#allocation7 + $0x5a8] sm:$0xff] }
 0x168   : > { %5142 = vmatpush1.bf16.msra.mxu1 %v5141_v41  ;;  %4920 = vmatprep.subr.bf16.mxu0 %v4919_v42  ;;  %v1013_v41 = vld [vmem:[#allocation7 + $0x15e0] sm:$0xff]  ;;  %v1020_v42 = vld [vmem:[#allocation7 + $0x1618] sm:$0xff] }
 0x169   : > { %5144 = vmatprep.subr.bf16.mxu1 %v5143_v46  ;;  %v1028_v46 = vld [vmem:[#allocation7 + $0x1658] sm:$0xff]  ;;  %v4941_v50 = vpack.c.bf16 %v1020_v42, %v1013_v41  ;;  %v318_v42 = vld [vmem:[#allocation7 + $0x28] sm:$0xff] }
 0x16a   : > { %v1092_v41 = vld [vmem:[#allocation7 + $0x1858] sm:$0xff]  ;;  %v5187_v48 = vpack.c.bf16 %v325_v43, %v318_v42  ;;  %v501_v42 = vld [vmem:[#allocation7 + $0x5e0] sm:$0xff] }
 0x16b   : > { %4922 = vmatpush1.bf16.msra.mxu0 %v4921_v52  ;;  %v4943_v52 = vpack.c.bf16 %v1035_v47, %v1028_v46  ;;  %v508_v43 = vld [vmem:[#allocation7 + $0x618] sm:$0xff] }
 0x16c   : > { %5146 = vmatpush1.bf16.msra.mxu1 %v5145_v53  ;;  %4924 = vmatprep.subr.bf16.mxu0 %v4923_v54  ;;  %v1027_v53 = vld [vmem:[#allocation7 + $0x1650] sm:$0xff]  ;;  %v1034_v54 = vld [vmem:[#allocation7 + $0x1688] sm:$0xff] }
 0x16d   : > { %5148 = vmatprep.subr.bf16.mxu1 %v5147_v58  ;;  %v1042_v58 = vld [vmem:[#allocation7 + $0x16c8] sm:$0xff]  ;;  %v4945_v63 = vpack.c.bf16 %v1034_v54, %v1027_v53  ;;  %v319_v54 = vld [vmem:[#allocation7 + $0x30] sm:$0xff] }
 0x16e   : > { %v4947_v0 = vpack.c.bf16 %v1049_v59, %v1042_v58  ;;  %v312_v58 = vld [vmem:[%s7084_s20 + $0x30] sm:$0xff] }
 0x16f   : > { %4926 = vmatpush1.bf16.msra.mxu0 %v4925_v1  ;;  %v1041_v1 = vld [vmem:[#allocation7 + $0x16c0] sm:$0xff] }
 0x170   : > { %5150 = vmatpush1.bf16.msra.mxu1 %v5149_v2  ;;  %4928 = vmatprep.subr.bf16.mxu0 %v4927_v3  ;;  %v1048_v2 = vld [vmem:[#allocation7 + $0x16f8] sm:$0xff]  ;;  %v1043_v3 = vld [vmem:[#allocation7 + $0x16d0] sm:$0xff] }
 0x171   : > { %5152 = vmatprep.subr.bf16.mxu1 %v5151_v7  ;;  %v1063_v7 = vld [vmem:[#allocation7 + $0x1770] sm:$0xff]  ;;  %v4949_v10 = vpack.c.bf16 %v1048_v2, %v1041_v1  ;;  %v5173_v11 = vpack.c.bf16 %v1050_v5, %v1043_v3  ;;  %v353_v1 = vld [vmem:[#allocation7 + $0x140] sm:$0xff] }
 0x172   : > { %v4951_v12 = vpack.c.bf16 %v1063_v7, %v1056_v6  ;;  %v333_v3 = vld [vmem:[#allocation7 + $0xa0] sm:$0xff]  ;;  %v459_v5 = vld [vmem:[#allocation7 + $0x490] sm:$0xff]  ;;  %v466_v6 = vld [vmem:[#allocation7 + $0x4c8] sm:$0xff] }
 0x173   : > { %4930 = vmatpush1.bf16.msra.mxu0 %v4929_v13  ;;  %v1055_v13 = vld [vmem:[#allocation7 + $0x1730] sm:$0xff] }
 0x174   : > { %5154 = vmatpush1.bf16.msra.mxu1 %v5153_v14  ;;  %4932 = vmatprep.subr.bf16.mxu0 %v4931_v15  ;;  %v1062_v14 = vld [vmem:[#allocation7 + $0x1768] sm:$0xff]  ;;  %v1057_v15 = vld [vmem:[#allocation7 + $0x1740] sm:$0xff] }
 0x175   : > { %5156 = vmatprep.subr.bf16.mxu1 %v5155_v19  ;;  %v1077_v19 = vld [vmem:[#allocation7 + $0x17e0] sm:$0xff]  ;;  %v4953_v22 = vpack.c.bf16 %v1062_v14, %v1055_v13  ;;  %v5177_v23 = vpack.c.bf16 %v1064_v17, %v1057_v15  ;;  %v367_v13 = vld [vmem:[#allocation7 + $0x1b0] sm:$0xff]  ;;  %v5419_v14 = vpack.c.bf16 %v466_v6, %v459_v5 }
 0x176   : > { %1304 = vmatmul.mubr.f32.vlgmr.msra.gmra.mrb[0].mxu0 %v310_v25  ;;  %v4955_v24 = vpack.c.bf16 %v1077_v19, %v1070_v18  ;;  %v347_v15 = vld [vmem:[#allocation7 + $0x110] sm:$0xff]  ;;  %v473_v18 = vld [vmem:[#allocation7 + $0x500] sm:$0xff]  ;;  %v480_v19 = vld [vmem:[#allocation7 + $0x538] sm:$0xff] }
 0x177   : > { %4934 = vmatpush1.bf16.msra.mxu0 %v4933_v26  ;;  %1588 = vmatmul.mubr.f32.vlgmr.msra.gmra.mrb[0].mxu1 %v310_v25  ;;  %v1069_v25 = vld [vmem:[#allocation7 + $0x17a0] sm:$0xff]  ;;  %v1076_v26 = vld [vmem:[#allocation7 + $0x17d8] sm:$0xff]  ;;  %v415_v6 = vld [vmem:[#allocation7 + $0x330] sm:$0xff] }
 0x178   : > { %5158 = vmatpush1.bf16.msra.mxu1 %v5157_v27  ;;  %4936 = vmatprep.subr.bf16.mxu0 %v4935_v28  ;;  %v1071_v27 = vld [vmem:[#allocation7 + $0x17b0] sm:$0xff]  ;;  %v5179_v28 = vpack.c.bf16 %v1079_v21, %v1072_v20  ;;  %v4957_v34 = vpack.c.bf16 %v1076_v26, %v1069_v25  ;;  %v381_v26 = vld [vmem:[#allocation7 + $0x220] sm:$0xff] }
 0x179   : > { %5160 = vmatprep.subr.bf16.mxu1 %v5159_v32  ;;  %1374 = vmatprep.mubr.f32.mxu0 %v6765_v60  ;;  %v1086_v32 = vld [vmem:[#allocation7 + $0x1828] sm:$0xff]  ;;  %v5181_v35 = vpack.c.bf16 %v1078_v29, %v1071_v27  ;;  %v6500_v17 = vld [vmem:[%s7084_s20 + $0x8] sm:$0xff]  ;;  %v5423_v27 = vpack.c.bf16 %v480_v19, %v473_v18  ;;  %v429_v18 = vld [vmem:[#allocation7 + $0x3a0] sm:$0xff] }
 0x17a   : > { %1658 = vmatprep.mubr.f32.mxu1 %v6765_v60  ;;  %v5169_v60 = vpack.c.bf16 %v1036_v57, %v1029_v55  ;;  %v326_v55 = vld [vmem:[#allocation7 + $0x68] sm:$0xff]  ;;  %v452_v57 = vld [vmem:[#allocation7 + $0x458] sm:$0xff] }
 0x17b   : > { %4938 = vmatpush1.bf16.msra.mxu0 %v4937_v38  ;;  %v1090_v38 = vld [vmem:[#allocation7 + $0x1848] sm:$0xff]  ;;  %v368_v29 = vld [vmem:[#allocation7 + $0x1b8] sm:$0xff] }
 0x17c   : > { %5162 = vmatpush1.bf16.msra.mxu1 %v5161_v39  ;;  %4940 = vmatprep.subr.bf16.mxu0 %v4939_v40  ;;  %v1085_v39 = vld [vmem:[#allocation7 + $0x1820] sm:$0xff]  ;;  %v5183_v40 = vpack.c.bf16 %v1093_v33, %v1086_v32  ;;  %v4961_v46 = vpack.c.bf16 %v1090_v38, %v1083_v37  ;;  %v395_v38 = vld [vmem:[#allocation7 + $0x290] sm:$0xff]  ;;  %v436_v19 = vld [vmem:[#allocation7 + $0x3d8] sm:$0xff] }
 0x17d   : > { %5164 = vmatprep.subr.bf16.mxu1 %v5163_v44  ;;  %v431_v44 = vld [vmem:[#allocation7 + $0x3b0] sm:$0xff]  ;;  %v5185_v47 = vpack.c.bf16 %v1092_v41, %v1085_v39  ;;  %v5427_v39 = vpack.c.bf16 %v494_v31, %v487_v30  ;;  %v382_v41 = vld [vmem:[#allocation7 + $0x228] sm:$0xff] }
 0x17e   : > { %v5411_v53 = vpack.c.bf16 %v438_v45, %v431_v44  ;;  %v443_v30 = vld [vmem:[#allocation7 + $0x410] sm:$0xff]  ;;  %v450_v31 = vld [vmem:[#allocation7 + $0x448] sm:$0xff] }
 0x17f   : > { %4942 = vmatpush1.bf16.msra.mxu0 %v4941_v50  ;;  %v324_v50 = vld [vmem:[#allocation7 + $0x58] sm:$0xff] }
 0x180   : > { %5166 = vmatpush1.bf16.msra.mxu1 %v5165_v51  ;;  %4944 = vmatprep.subr.bf16.mxu0 %v4943_v52  ;;  %v332_v51 = vld [vmem:[#allocation7 + $0x98] sm:$0xff]  ;;  %v339_v52 = vld [vmem:[#allocation7 + $0xd0] sm:$0xff]  ;;  %v5189_v59 = vpack.c.bf16 %v324_v50, %v317_v49  ;;  %v409_v50 = vld [vmem:[#allocation7 + $0x300] sm:$0xff] }
 0x181   : > { %5168 = vmatprep.subr.bf16.mxu1 %v5167_v56  ;;  %v445_v56 = vld [vmem:[#allocation7 + $0x420] sm:$0xff]  ;;  %v5191_v61 = vpack.c.bf16 %v339_v52, %v332_v51  ;;  %v5431_v51 = vpack.c.bf16 %v508_v43, %v501_v42 }
 0x182   : > { %v5415_v2 = vpack.c.bf16 %v452_v57, %v445_v56  ;;  %v389_v52 = vld [vmem:[#allocation7 + $0x260] sm:$0xff] }
 0x183   : > { %4946 = vmatpush1.bf16.msra.mxu0 %v4945_v63  ;;  %v338_v63 = vld [vmem:[#allocation7 + $0xc8] sm:$0xff]  ;;  %v457_v43 = vld [vmem:[#allocation7 + $0x480] sm:$0xff] }
 0x184   : > { %5170 = vmatpush1.bf16.msra.mxu1 %v5169_v60  ;;  %4948 = vmatprep.subr.bf16.mxu0 %v4947_v0  ;;  %v346_v60 = vld [vmem:[#allocation7 + $0x108] sm:$0xff]  ;;  %v5413_v0 = vpack.c.bf16 %v326_v55, %v319_v54  ;;  %v5193_v7 = vpack.c.bf16 %v338_v63, %v331_v62  ;;  %v515_v54 = vld [vmem:[#allocation7 + $0x650] sm:$0xff] }
 0x185   : > { %5172 = vmatprep.subr.bf16.mxu1 %v5171_v4  ;;  %v340_v4 = vld [vmem:[#allocation7 + $0xd8] sm:$0xff]  ;;  %v5195_v8 = vpack.c.bf16 %v353_v1, %v346_v60  ;;  %v522_v55 = vld [vmem:[#allocation7 + $0x688] sm:$0xff]  ;;  %v423_v63 = vld [vmem:[#allocation7 + $0x370] sm:$0xff] }
 0x186   : > { %v5435_v60 = vpack.c.bf16 %v522_v55, %v515_v54  ;;  %v410_v1 = vld [vmem:[#allocation7 + $0x308] sm:$0xff] }
 0x187   : > { %4950 = vmatpush1.bf16.msra.mxu0 %v4949_v10  ;;  %v352_v10 = vld [vmem:[#allocation7 + $0x138] sm:$0xff] }
 0x188   : > { %5174 = vmatpush1.bf16.msra.mxu1 %v5173_v11  ;;  %4952 = vmatprep.subr.bf16.mxu0 %v4951_v12  ;;  %v360_v11 = vld [vmem:[#allocation7 + $0x178] sm:$0xff]  ;;  %v5417_v12 = vpack.c.bf16 %v340_v4, %v333_v3  ;;  %v5197_v20 = vpack.c.bf16 %v352_v10, %v345_v9  ;;  %v437_v10 = vld [vmem:[#allocation7 + $0x3e0] sm:$0xff] }
 0x189   : > { %5176 = vmatprep.subr.bf16.mxu1 %v5175_v16  ;;  %v354_v16 = vld [vmem:[#allocation7 + $0x148] sm:$0xff]  ;;  %v5199_v21 = vpack.c.bf16 %v367_v13, %v360_v11  ;;  %v536_v3 = vld [vmem:[#allocation7 + $0x6f8] sm:$0xff] }
 0x18a   : > { %v5421_v25 = vpack.c.bf16 %v354_v16, %v347_v15  ;;  %v424_v13 = vld [vmem:[#allocation7 + $0x378] sm:$0xff]  ;;  %v662_v15 = vld [vmem:[#allocation7 + $0xae8] sm:$0xff] }
 0x18b   : > { %4954 = vmatpush1.bf16.msra.mxu0 %v4953_v22  ;;  %v359_v22 = vld [vmem:[#allocation7 + $0x170] sm:$0xff] }
 0x18c   : > { %5178 = vmatpush1.bf16.msra.mxu1 %v5177_v23  ;;  %4956 = vmatprep.subr.bf16.mxu0 %v4955_v24  ;;  %v366_v23 = vld [vmem:[#allocation7 + $0x1a8] sm:$0xff] }
 0x18d   : > { %5180 = vmatprep.subr.bf16.mxu1 %v5179_v28  ;;  %v374_v24 = vld [vmem:[#allocation7 + $0x1e8] sm:$0xff]  ;;  %v361_v28 = vld [vmem:[#allocation7 + $0x180] sm:$0xff]  ;;  %v5201_v32 = vpack.c.bf16 %v366_v23, %v359_v22  ;;  %v451_v22 = vld [vmem:[#allocation7 + $0x450] sm:$0xff] }
 0x18e   : > { %v5203_v33 = vpack.c.bf16 %v381_v26, %v374_v24  ;;  %v5425_v37 = vpack.c.bf16 %v368_v29, %v361_v28  ;;  %v543_v24 = vld [vmem:[#allocation7 + $0x730] sm:$0xff]  ;;  %v669_v26 = vld [vmem:[#allocation7 + $0xb20] sm:$0xff]  ;;  %v5221_v28 = vpack.c.bf16 %v436_v19, %v429_v18  ;;  %v514_v18 = vld [vmem:[#allocation7 + $0x648] sm:$0xff] }
 0x18f   : > { %4958 = vmatpush1.bf16.msra.mxu0 %v4957_v34  ;;  %v373_v34 = vld [vmem:[#allocation7 + $0x1e0] sm:$0xff] }
 0x190   : > { %5182 = vmatpush1.bf16.msra.mxu1 %v5181_v35  ;;  %4960 = vmatprep.subr.bf16.mxu0 %v4959_v36  ;;  %v380_v35 = vld [vmem:[#allocation7 + $0x218] sm:$0xff] }
 0x191   : > { %5184 = vmatprep.subr.bf16.mxu1 %v5183_v40  ;;  %v388_v36 = vld [vmem:[#allocation7 + $0x258] sm:$0xff]  ;;  %v375_v40 = vld [vmem:[#allocation7 + $0x1f0] sm:$0xff]  ;;  %v5205_v44 = vpack.c.bf16 %v380_v35, %v373_v34  ;;  %v465_v34 = vld [vmem:[#allocation7 + $0x4c0] sm:$0xff] }
 0x192   : > { %v5207_v45 = vpack.c.bf16 %v395_v38, %v388_v36  ;;  %v5429_v49 = vpack.c.bf16 %v382_v41, %v375_v40  ;;  %v557_v36 = vld [vmem:[#allocation7 + $0x7a0] sm:$0xff]  ;;  %v683_v38 = vld [vmem:[#allocation7 + $0xb90] sm:$0xff]  ;;  %v5225_v40 = vpack.c.bf16 %v450_v31, %v443_v30  ;;  %v528_v30 = vld [vmem:[#allocation7 + $0x6b8] sm:$0xff] }
 0x193   : > { %4962 = vmatpush1.bf16.msra.mxu0 %v4961_v46  ;;  %v387_v46 = vld [vmem:[#allocation7 + $0x250] sm:$0xff] }
 0x194   : > { %5186 = vmatpush1.bf16.msra.mxu1 %v5185_v47  ;;  %5188 = vmatprep.subr.bf16.mxu0 %v5187_v48  ;;  %v394_v47 = vld [vmem:[#allocation7 + $0x288] sm:$0xff] }
 0x195   : > { %5412 = vmatprep.subr.bf16.mxu1 %v5411_v53  ;;  %v402_v48 = vld [vmem:[#allocation7 + $0x2c8] sm:$0xff]  ;;  %v396_v53 = vld [vmem:[#allocation7 + $0x298] sm:$0xff]  ;;  %v5209_v56 = vpack.c.bf16 %v394_v47, %v387_v46  ;;  %v479_v47 = vld [vmem:[#allocation7 + $0x530] sm:$0xff] }
 0x196   : > { %1375 = vmatmul.mubr.f32.vlgmr.msra.gmra.mrb[0].mxu0 %v312_v58  ;;  %v5211_v57 = vpack.c.bf16 %v409_v50, %v402_v48  ;;  %v5433_v62 = vpack.c.bf16 %v396_v53, %v389_v52  ;;  %v7118_v41 = vld [vmem:[%s7084_s20] sm:$0xff]  ;;  %v697_v52 = vld [vmem:[#allocation7 + $0xc00] sm:$0xff]  ;;  %v704_v53 = vld [vmem:[#allocation7 + $0xc38] sm:$0xff] }
 0x197   : > { %1659 = vmatmul.mubr.f32.vlgmr.msra.gmra.mrb[0].mxu1 %v312_v58  ;;  %5190 = vmatpush1.bf16.msra.mxu0 %v5189_v59  ;;  %v401_v58 = vld [vmem:[#allocation7 + $0x2c0] sm:$0xff]  ;;  %v408_v59 = vld [vmem:[#allocation7 + $0x2f8] sm:$0xff]  ;;  %v578_v50 = vld [vmem:[#allocation7 + $0x848] sm:$0xff] }
 0x198   : > { %5192 = vmatprep.subr.bf16.mxu0 %v5191_v61  ;;  %5414 = vmatpush3.bf16.msra.mxu1 %v5413_v0  ;;  %v416_v61 = vld [vmem:[#allocation7 + $0x338] sm:$0xff]  ;;  %v403_v0 = vld [vmem:[#allocation7 + $0x2d0] sm:$0xff]  ;;  %v5213_v4 = vpack.c.bf16 %v408_v59, %v401_v58  ;;  %v486_v58 = vld [vmem:[#allocation7 + $0x568] sm:$0xff] }
 0x199   : > { %5416 = vmatprep.subr.bf16.mxu1 %v5415_v2  ;;  %2013 = vmatprep.mubr.f32.mxu1 %v6500_v17  ;;  %v529_v2 = vld [vmem:[#allocation7 + $0x6c0] sm:$0xff]  ;;  %v5215_v5 = vpack.c.bf16 %v423_v63, %v416_v61  ;;  %v5437_v9 = vpack.c.bf16 %v410_v1, %v403_v0  ;;  %v711_v0 = vld [vmem:[#allocation7 + $0xc70] sm:$0xff]  ;;  %v718_v1 = vld [vmem:[#allocation7 + $0xca8] sm:$0xff] }
 0x19a   : > { %1729 = vmatprep.mubr.f32.mxu0 %v6500_v17  ;;  %v5439_v11 = vpack.c.bf16 %v536_v3, %v529_v2  ;;  %v493_v61 = vld [vmem:[#allocation7 + $0x5a0] sm:$0xff] }
 0x19b   : > { %5194 = vmatpush1.bf16.msra.mxu0 %v5193_v7  ;;  %v422_v7 = vld [vmem:[#allocation7 + $0x368] sm:$0xff]  ;;  %v585_v63 = vld [vmem:[#allocation7 + $0x880] sm:$0xff]  ;;  %v5235_v3 = vpack.c.bf16 %v493_v61, %v486_v58  ;;  %v563_v58 = vld [vmem:[#allocation7 + $0x7d0] sm:$0xff] }
 0x19c   : > { %5196 = vmatprep.subr.bf16.mxu0 %v5195_v8  ;;  %5418 = vmatpush3.bf16.msra.mxu1 %v5417_v12  ;;  %v430_v8 = vld [vmem:[#allocation7 + $0x3a8] sm:$0xff]  ;;  %v417_v12 = vld [vmem:[#allocation7 + $0x340] sm:$0xff]  ;;  %v5217_v16 = vpack.c.bf16 %v422_v7, %v415_v6  ;;  %v500_v6 = vld [vmem:[#allocation7 + $0x5d8] sm:$0xff] }
 0x19d   : > { %5420 = vmatprep.subr.bf16.mxu1 %v5419_v14  ;;  %v655_v14 = vld [vmem:[#allocation7 + $0xab0] sm:$0xff]  ;;  %v5219_v17 = vpack.c.bf16 %v437_v10, %v430_v8 }
 0x19e   : > { %v5443_v23 = vpack.c.bf16 %v662_v15, %v655_v14  ;;  %v507_v8 = vld [vmem:[#allocation7 + $0x610] sm:$0xff] }
 0x19f   : > { %5198 = vmatpush1.bf16.msra.mxu0 %v5197_v20  ;;  %v444_v20 = vld [vmem:[#allocation7 + $0x418] sm:$0xff]  ;;  %v599_v10 = vld [vmem:[#allocation7 + $0x8f0] sm:$0xff]  ;;  %v5239_v15 = vpack.c.bf16 %v507_v8, %v500_v6  ;;  %v577_v6 = vld [vmem:[#allocation7 + $0x840] sm:$0xff] }
 0x1a0   : > { %5200 = vmatprep.subr.bf16.mxu0 %v5199_v21  ;;  %5422 = vmatpush3.bf16.msra.mxu1 %v5421_v25  ;;  %v5441_v21 = vpack.c.bf16 %v424_v13, %v417_v12  ;;  %v550_v25 = vld [vmem:[#allocation7 + $0x768] sm:$0xff]  ;;  %v5223_v29 = vpack.c.bf16 %v451_v22, %v444_v20  ;;  %v725_v12 = vld [vmem:[#allocation7 + $0xce0] sm:$0xff]  ;;  %v732_v13 = vld [vmem:[#allocation7 + $0xd18] sm:$0xff] }
 0x1a1   : > { %5424 = vmatprep.subr.bf16.mxu1 %v5423_v27  ;;  %v676_v27 = vld [vmem:[#allocation7 + $0xb58] sm:$0xff]  ;;  %v521_v20 = vld [vmem:[#allocation7 + $0x680] sm:$0xff]  ;;  %v767_v61 = vld [vmem:[#allocation7 + $0xe30] sm:$0xff] }
 0x1a2   : > { %v5447_v35 = vpack.c.bf16 %v676_v27, %v669_v26  ;;  %v613_v22 = vld [vmem:[#allocation7 + $0x960] sm:$0xff]  ;;  %v5243_v27 = vpack.c.bf16 %v521_v20, %v514_v18 }
 0x1a3   : > { %5202 = vmatpush1.bf16.msra.mxu0 %v5201_v32  ;;  %v458_v32 = vld [vmem:[#allocation7 + $0x488] sm:$0xff]  ;;  %v781_v8 = vld [vmem:[#allocation7 + $0xea0] sm:$0xff] }
 0x1a4   : > { %5204 = vmatprep.subr.bf16.mxu0 %v5203_v33  ;;  %5426 = vmatpush3.bf16.msra.mxu1 %v5425_v37  ;;  %v5445_v33 = vpack.c.bf16 %v550_v25, %v543_v24  ;;  %v564_v37 = vld [vmem:[#allocation7 + $0x7d8] sm:$0xff]  ;;  %v5227_v42 = vpack.c.bf16 %v465_v34, %v458_v32  ;;  %v739_v24 = vld [vmem:[#allocation7 + $0xd50] sm:$0xff]  ;;  %v746_v25 = vld [vmem:[#allocation7 + $0xd88] sm:$0xff] }
 0x1a5   : > { %5428 = vmatprep.subr.bf16.mxu1 %v5427_v39  ;;  %v690_v39 = vld [vmem:[#allocation7 + $0xbc8] sm:$0xff]  ;;  %v5449_v46 = vpack.c.bf16 %v564_v37, %v557_v36  ;;  %v535_v32 = vld [vmem:[#allocation7 + $0x6f0] sm:$0xff]  ;;  %v753_v36 = vld [vmem:[#allocation7 + $0xdc0] sm:$0xff] }
 0x1a6   : > { %v5451_v48 = vpack.c.bf16 %v690_v39, %v683_v38  ;;  %v627_v34 = vld [vmem:[#allocation7 + $0x9d0] sm:$0xff]  ;;  %v760_v37 = vld [vmem:[#allocation7 + $0xdf8] sm:$0xff]  ;;  %v5247_v39 = vpack.c.bf16 %v535_v32, %v528_v30 }
 0x1a7   : > { %5206 = vmatpush1.bf16.msra.mxu0 %v5205_v44  ;;  %v464_v44 = vld [vmem:[#allocation7 + $0x4b8] sm:$0xff] }
 0x1a8   : > { %5208 = vmatprep.subr.bf16.mxu0 %v5207_v45  ;;  %5430 = vmatpush3.bf16.msra.mxu1 %v5429_v49  ;;  %v472_v45 = vld [vmem:[#allocation7 + $0x4f8] sm:$0xff]  ;;  %v571_v49 = vld [vmem:[#allocation7 + $0x810] sm:$0xff]  ;;  %v5229_v54 = vpack.c.bf16 %v464_v44, %v457_v43  ;;  %v542_v43 = vld [vmem:[#allocation7 + $0x728] sm:$0xff] }
 0x1a9   : > { %5432 = vmatprep.subr.bf16.mxu1 %v5431_v51  ;;  %v7122_v51 = vld [vmem:[%s7084_s20 + $0x18] sm:$0xff]  ;;  %v5231_v55 = vpack.c.bf16 %v479_v47, %v472_v45  ;;  %v5453_v59 = vpack.c.bf16 %v578_v50, %v571_v49  ;;  %v879_v49 = vld [vmem:[#allocation7 + $0x11b0] sm:$0xff] }
 0x1aa   : > { %v549_v45 = vld [vmem:[#allocation7 + $0x760] sm:$0xff]  ;;  %v886_v50 = vld [vmem:[#allocation7 + $0x11e8] sm:$0xff] }
 0x1ab   : > { %5210 = vmatpush1.bf16.msra.mxu0 %v5209_v56  ;;  %v471_v56 = vld [vmem:[#allocation7 + $0x4f0] sm:$0xff]  ;;  %v641_v47 = vld [vmem:[#allocation7 + $0xa40] sm:$0xff] }
 0x1ac   : > { %5212 = vmatprep.subr.bf16.mxu0 %v5211_v57  ;;  %5434 = vmatpush3.bf16.msra.mxu1 %v5433_v62  ;;  %v478_v57 = vld [vmem:[#allocation7 + $0x528] sm:$0xff]  ;;  %v5455_v62 = vpack.c.bf16 %v704_v53, %v697_v52  ;;  %v5251_v53 = vpack.c.bf16 %v549_v45, %v542_v43  ;;  %v619_v43 = vld [vmem:[#allocation7 + $0x990] sm:$0xff] }
 0x1ad   : > { %5436 = vmatprep.subr.bf16.mxu1 %v5435_v60  ;;  %v592_v60 = vld [vmem:[#allocation7 + $0x8b8] sm:$0xff]  ;;  %v5233_v2 = vpack.c.bf16 %v478_v57, %v471_v56  ;;  %v823_v45 = vld [vmem:[#allocation7 + $0xff0] sm:$0xff] }
 0x1ae   : > { %v5457_v7 = vpack.c.bf16 %v592_v60, %v585_v63  ;;  %v556_v56 = vld [vmem:[#allocation7 + $0x798] sm:$0xff]  ;;  %v893_v63 = vld [vmem:[#allocation7 + $0x1220] sm:$0xff] }
 0x1af   : > { %5214 = vmatpush1.bf16.msra.mxu0 %v5213_v4  ;;  %v485_v4 = vld [vmem:[#allocation7 + $0x560] sm:$0xff]  ;;  %v900_v60 = vld [vmem:[#allocation7 + $0x1258] sm:$0xff] }
 0x1b0   : > { %5216 = vmatprep.subr.bf16.mxu0 %v5215_v5  ;;  %5438 = vmatpush3.bf16.msra.mxu1 %v5437_v9  ;;  %v492_v5 = vld [vmem:[#allocation7 + $0x598] sm:$0xff]  ;;  %v5459_v9 = vpack.c.bf16 %v718_v1, %v711_v0  ;;  %v5255_v1 = vpack.c.bf16 %v563_v58, %v556_v56  ;;  %v633_v56 = vld [vmem:[#allocation7 + $0xa00] sm:$0xff] }
 0x1b1   : > { %5440 = vmatprep.subr.bf16.mxu1 %v5439_v11  ;;  %v606_v11 = vld [vmem:[#allocation7 + $0x928] sm:$0xff]  ;;  %v5237_v14 = vpack.c.bf16 %v492_v5, %v485_v4  ;;  %v837_v58 = vld [vmem:[#allocation7 + $0x1060] sm:$0xff] }
 0x1b2   : > { %v5461_v19 = vpack.c.bf16 %v606_v11, %v599_v10  ;;  %v570_v4 = vld [vmem:[#allocation7 + $0x808] sm:$0xff]  ;;  %v907_v10 = vld [vmem:[#allocation7 + $0x1290] sm:$0xff] }
 0x1b3   : > { %5218 = vmatpush1.bf16.msra.mxu0 %v5217_v16  ;;  %v499_v16 = vld [vmem:[#allocation7 + $0x5d0] sm:$0xff]  ;;  %v914_v11 = vld [vmem:[#allocation7 + $0x12c8] sm:$0xff] }
 0x1b4   : > { %5220 = vmatprep.subr.bf16.mxu0 %v5219_v17  ;;  %5442 = vmatpush3.bf16.msra.mxu1 %v5441_v21  ;;  %v506_v17 = vld [vmem:[#allocation7 + $0x608] sm:$0xff]  ;;  %v5463_v21 = vpack.c.bf16 %v732_v13, %v725_v12  ;;  %v7127_v13 = vld [vmem:[%s7084_s20 + $0x10] sm:$0xff]  ;;  %v5483_v20 = vpack.c.bf16 %v914_v11, %v907_v10 }
 0x1b5   : > { %5444 = vmatprep.subr.bf16.mxu1 %v5443_v23  ;;  %v620_v23 = vld [vmem:[#allocation7 + $0x998] sm:$0xff]  ;;  %v5241_v26 = vpack.c.bf16 %v506_v17, %v499_v16 }
 0x1b6   : > { %v5465_v31 = vpack.c.bf16 %v620_v23, %v613_v22  ;;  %v576_v16 = vld [vmem:[#allocation7 + $0x838] sm:$0xff]  ;;  %v921_v23 = vld [vmem:[#allocation7 + $0x1300] sm:$0xff] }
 0x1b7   : > { %5222 = vmatpush1.bf16.msra.mxu0 %v5221_v28  ;;  %2014 = vmatmul.mubr.f32.vlgmr.msra.gmra.mrb[2].mxu1 %v7118_v41  ;;  %v513_v28 = vld [vmem:[#allocation7 + $0x640] sm:$0xff]  ;;  %v584_v17 = vld [vmem:[#allocation7 + $0x878] sm:$0xff] }
 0x1b8   : > { %5224 = vmatprep.subr.bf16.mxu0 %v5223_v29  ;;  %5446 = vmatpush3.bf16.msra.mxu1 %v5445_v33  ;;  %v520_v29 = vld [vmem:[#allocation7 + $0x678] sm:$0xff]  ;;  %v5467_v33 = vpack.c.bf16 %v746_v25, %v739_v24 }
 0x1b9   : > { %5448 = vmatprep.subr.bf16.mxu1 %v5447_v35  ;;  %2083 = vmatprep.mubr.f32.mxu1 %v7122_v51  ;;  %v634_v35 = vld [vmem:[#allocation7 + $0xa08] sm:$0xff]  ;;  %v5245_v38 = vpack.c.bf16 %v520_v29, %v513_v28  ;;  %v7131_v22 = vld [vmem:[%s7084_s20 + $0x28] sm:$0xff] }
 0x1ba   : > { %v5469_v44 = vpack.c.bf16 %v634_v35, %v627_v34  ;;  %v928_v24 = vld [vmem:[#allocation7 + $0x1338] sm:$0xff]  ;;  %v590_v28 = vld [vmem:[#allocation7 + $0x8a8] sm:$0xff]  ;;  %v935_v35 = vld [vmem:[#allocation7 + $0x1370] sm:$0xff] }
 0x1bb   : > { %5226 = vmatpush1.bf16.msra.mxu0 %v5225_v40  ;;  %v527_v40 = vld [vmem:[#allocation7 + $0x6b0] sm:$0xff]  ;;  %v598_v29 = vld [vmem:[#allocation7 + $0x8e8] sm:$0xff]  ;;  %v5487_v32 = vpack.c.bf16 %v928_v24, %v921_v23  ;;  %v816_v34 = vld [vmem:[#allocation7 + $0xfb8] sm:$0xff] }
 0x1bc   : > { %5228 = vmatprep.subr.bf16.mxu0 %v5227_v42  ;;  %5450 = vmatpush3.bf16.msra.mxu1 %v5449_v46  ;;  %v534_v42 = vld [vmem:[#allocation7 + $0x6e8] sm:$0xff]  ;;  %v5471_v46 = vpack.c.bf16 %v760_v37, %v753_v36  ;;  %v653_v23 = vld [vmem:[#allocation7 + $0xaa0] sm:$0xff]  ;;  %v660_v24 = vld [vmem:[#allocation7 + $0xad8] sm:$0xff] }
 0x1bd   : > { %5452 = vmatprep.subr.bf16.mxu1 %v5451_v48  ;;  %v648_v48 = vld [vmem:[#allocation7 + $0xa78] sm:$0xff]  ;;  %v5249_v52 = vpack.c.bf16 %v534_v42, %v527_v40  ;;  %v942_v36 = vld [vmem:[#allocation7 + $0x13a8] sm:$0xff] }
 0x1be   : > { %v5473_v57 = vpack.c.bf16 %v648_v48, %v641_v47  ;;  %v612_v40 = vld [vmem:[#allocation7 + $0x958] sm:$0xff]  ;;  %v949_v47 = vld [vmem:[#allocation7 + $0x13e0] sm:$0xff] }
 0x1bf   : > { %5230 = vmatpush1.bf16.msra.mxu0 %v5229_v54  ;;  %v541_v54 = vld [vmem:[#allocation7 + $0x720] sm:$0xff]  ;;  %v956_v48 = vld [vmem:[#allocation7 + $0x1418] sm:$0xff] }
 0x1c0   : > { %5232 = vmatprep.subr.bf16.mxu0 %v5231_v55  ;;  %5454 = vmatpush3.bf16.msra.mxu1 %v5453_v59  ;;  %v548_v55 = vld [vmem:[#allocation7 + $0x758] sm:$0xff]  ;;  %v5475_v59 = vpack.c.bf16 %v886_v50, %v879_v49  ;;  %v5271_v50 = vpack.c.bf16 %v619_v43, %v612_v40  ;;  %v7137_v40 = vld [vmem:[%s7084_s20 + $0x20] sm:$0xff]  ;;  %v681_v43 = vld [vmem:[#allocation7 + $0xb80] sm:$0xff] }
 0x1c1   : > { %5456 = vmatprep.subr.bf16.mxu1 %v5455_v62  ;;  %v774_v62 = vld [vmem:[#allocation7 + $0xe68] sm:$0xff]  ;;  %v5253_v0 = vpack.c.bf16 %v548_v55, %v541_v54 }
 0x1c2   : > { %v5477_v5 = vpack.c.bf16 %v774_v62, %v767_v61  ;;  %v626_v54 = vld [vmem:[#allocation7 + $0x9c8] sm:$0xff]  ;;  %v963_v61 = vld [vmem:[#allocation7 + $0x1450] sm:$0xff] }
 0x1c3   : > { %5234 = vmatpush1.bf16.msra.mxu0 %v5233_v2  ;;  %v555_v2 = vld [vmem:[#allocation7 + $0x790] sm:$0xff]  ;;  %v970_v62 = vld [vmem:[#allocation7 + $0x1488] sm:$0xff] }
 0x1c4   : > { %5236 = vmatprep.subr.bf16.mxu0 %v5235_v3  ;;  %5458 = vmatpush3.bf16.msra.mxu1 %v5457_v7  ;;  %v562_v3 = vld [vmem:[#allocation7 + $0x7c8] sm:$0xff]  ;;  %v5479_v7 = vpack.c.bf16 %v900_v60, %v893_v63  ;;  %v5275_v60 = vpack.c.bf16 %v633_v56, %v626_v54  ;;  %v695_v54 = vld [vmem:[#allocation7 + $0xbf0] sm:$0xff] }
 0x1c5   : > { %5460 = vmatprep.subr.bf16.mxu1 %v5459_v9  ;;  %v788_v9 = vld [vmem:[#allocation7 + $0xed8] sm:$0xff]  ;;  %v5257_v12 = vpack.c.bf16 %v562_v3, %v555_v2  ;;  %v710_v56 = vld [vmem:[#allocation7 + $0xc68] sm:$0xff] }
 0x1c6   : > { %v5481_v18 = vpack.c.bf16 %v788_v9, %v781_v8  ;;  %v640_v2 = vld [vmem:[#allocation7 + $0xa38] sm:$0xff]  ;;  %v977_v8 = vld [vmem:[#allocation7 + $0x14c0] sm:$0xff] }
 0x1c7   : > { %5238 = vmatpush1.bf16.msra.mxu0 %v5237_v14  ;;  %v5259_v14 = vpack.c.bf16 %v577_v6, %v570_v4  ;;  %v647_v4 = vld [vmem:[#allocation7 + $0xa70] sm:$0xff]  ;;  %v984_v9 = vld [vmem:[#allocation7 + $0x14f8] sm:$0xff] }
 0x1c8   : > { %5240 = vmatprep.subr.bf16.mxu0 %v5239_v15  ;;  %5462 = vmatpush3.bf16.msra.mxu1 %v5461_v19  ;;  %v569_v15 = vld [vmem:[#allocation7 + $0x800] sm:$0xff]  ;;  %v591_v19 = vld [vmem:[#allocation7 + $0x8b0] sm:$0xff]  ;;  %v5279_v11 = vpack.c.bf16 %v647_v4, %v640_v2 }
 0x1c9   : > { %5464 = vmatprep.subr.bf16.mxu1 %v5463_v21  ;;  %v802_v21 = vld [vmem:[#allocation7 + $0xf48] sm:$0xff]  ;;  %v5261_v25 = vpack.c.bf16 %v576_v16, %v569_v15  ;;  %v851_v6 = vld [vmem:[#allocation7 + $0x10d0] sm:$0xff] }
 0x1ca   : > { %v654_v15 = vld [vmem:[#allocation7 + $0xaa8] sm:$0xff]  ;;  %v1047_v4 = vld [vmem:[#allocation7 + $0x16f0] sm:$0xff] }
 0x1cb   : > { %5242 = vmatpush1.bf16.msra.mxu0 %v5241_v26  ;;  %v5263_v26 = vpack.c.bf16 %v591_v19, %v584_v17  ;;  %v661_v17 = vld [vmem:[#allocation7 + $0xae0] sm:$0xff] }
 0x1cc   : > { %5244 = vmatprep.subr.bf16.mxu0 %v5243_v27  ;;  %5466 = vmatpush3.bf16.msra.mxu1 %v5465_v31  ;;  %v583_v27 = vld [vmem:[#allocation7 + $0x870] sm:$0xff]  ;;  %v605_v31 = vld [vmem:[#allocation7 + $0x920] sm:$0xff] }
 0x1cd   : > { %5468 = vmatprep.subr.bf16.mxu1 %v5467_v33  ;;  %v809_v33 = vld [vmem:[#allocation7 + $0xf80] sm:$0xff]  ;;  %v5265_v37 = vpack.c.bf16 %v590_v28, %v583_v27  ;;  %v675_v27 = vld [vmem:[#allocation7 + $0xb50] sm:$0xff] }
 0x1ce   : > { %v5489_v42 = vpack.c.bf16 %v816_v34, %v809_v33  ;;  %v865_v19 = vld [vmem:[#allocation7 + $0x1140] sm:$0xff]  ;;  %v991_v28 = vld [vmem:[#allocation7 + $0x1530] sm:$0xff]  ;;  %v674_v33 = vld [vmem:[#allocation7 + $0xb48] sm:$0xff] }
 0x1cf   : > { %5246 = vmatpush1.bf16.msra.mxu0 %v5245_v38  ;;  %v597_v38 = vld [vmem:[#allocation7 + $0x8e0] sm:$0xff]  ;;  %v682_v34 = vld [vmem:[#allocation7 + $0xb88] sm:$0xff] }
 0x1d0   : > { %5248 = vmatprep.subr.bf16.mxu0 %v5247_v39  ;;  %5470 = vmatpush3.bf16.msra.mxu1 %v5469_v44  ;;  %v604_v39 = vld [vmem:[#allocation7 + $0x918] sm:$0xff]  ;;  %v5491_v44 = vpack.c.bf16 %v942_v36, %v935_v35  ;;  %v689_v36 = vld [vmem:[#allocation7 + $0xbc0] sm:$0xff] }
 0x1d1   : > { %5472 = vmatprep.subr.bf16.mxu1 %v5471_v46  ;;  %v830_v46 = vld [vmem:[#allocation7 + $0x1028] sm:$0xff]  ;;  %v5269_v49 = vpack.c.bf16 %v604_v39, %v597_v38  ;;  %v1012_v38 = vld [vmem:[#allocation7 + $0x15d8] sm:$0xff] }
 0x1d2   : > { %v5493_v55 = vpack.c.bf16 %v830_v46, %v823_v45  ;;  %v696_v45 = vld [vmem:[#allocation7 + $0xbf8] sm:$0xff] }
 0x1d3   : > { %5250 = vmatpush1.bf16.msra.mxu0 %v5249_v52  ;;  %v611_v52 = vld [vmem:[#allocation7 + $0x950] sm:$0xff] }
 0x1d4   : > { %5252 = vmatprep.subr.bf16.mxu0 %v5251_v53  ;;  %5474 = vmatpush3.bf16.msra.mxu1 %v5473_v57  ;;  %v618_v53 = vld [vmem:[#allocation7 + $0x988] sm:$0xff]  ;;  %v5495_v57 = vpack.c.bf16 %v956_v48, %v949_v47  ;;  %v703_v47 = vld [vmem:[#allocation7 + $0xc30] sm:$0xff] }
 0x1d5   : > { %5476 = vmatprep.subr.bf16.mxu1 %v5475_v59  ;;  %v844_v59 = vld [vmem:[#allocation7 + $0x1098] sm:$0xff]  ;;  %v5273_v63 = vpack.c.bf16 %v618_v53, %v611_v52  ;;  %v1019_v48 = vld [vmem:[#allocation7 + $0x1610] sm:$0xff]  ;;  %v5295_v53 = vpack.c.bf16 %v703_v47, %v696_v45 }
 0x1d6   : > { %1730 = vmatmul.mubr.f32.vlgmr.msra.gmra.mrb[2].mxu0 %v7118_v41  ;;  %v795_v41 = vld [vmem:[#allocation7 + $0xf10] sm:$0xff]  ;;  %v5497_v3 = vpack.c.bf16 %v844_v59, %v837_v58  ;;  %v717_v58 = vld [vmem:[#allocation7 + $0xca0] sm:$0xff]  ;;  %v2236_v47 = vld [vmem:[#allocation9 + $0x38] sm:$0xff] }
 0x1d7   : > { %5254 = vmatpush1.bf16.msra.mxu0 %v5253_v0  ;;  %2084 = vmatmul.mubr.f32.vlgmr.msra.gmra.mrb[4].mxu1 %v7127_v13  ;;  %v5485_v30 = vpack.c.bf16 %v802_v21, %v795_v41  ;;  %v625_v0 = vld [vmem:[#allocation7 + $0x9c0] sm:$0xff]  ;;  %v5283_v21 = vpack.c.bf16 %v661_v17, %v654_v15  ;;  %v1068_v15 = vld [vmem:[#allocation7 + $0x1798] sm:$0xff] }
 0x1d8   : > { %5256 = vmatprep.subr.bf16.mxu0 %v5255_v1  ;;  %5478 = vmatpush3.bf16.msra.mxu1 %v5477_v5  ;;  %v632_v1 = vld [vmem:[#allocation7 + $0x9f8] sm:$0xff]  ;;  %v5499_v5 = vpack.c.bf16 %v970_v62, %v963_v61  ;;  %v1033_v59 = vld [vmem:[#allocation7 + $0x1680] sm:$0xff] }
 0x1d9   : > { %5480 = vmatprep.subr.bf16.mxu1 %v5479_v7  ;;  %2153 = vmatprep.mubr.f32.mxu1 %v7131_v22  ;;  %v858_v7 = vld [vmem:[#allocation7 + $0x1108] sm:$0xff]  ;;  %v5277_v10 = vpack.c.bf16 %v632_v1, %v625_v0  ;;  %v1040_v61 = vld [vmem:[#allocation7 + $0x16b8] sm:$0xff] }
 0x1da   : > { %1800 = vmatprep.mubr.f32.mxu0 %v7122_v51  ;;  %v5267_v51 = vpack.c.bf16 %v605_v31, %v598_v29  ;;  %v5501_v16 = vpack.c.bf16 %v858_v7, %v851_v6  ;;  %v998_v29 = vld [vmem:[#allocation7 + $0x1568] sm:$0xff]  ;;  %v716_v0 = vld [vmem:[#allocation7 + $0xc98] sm:$0xff]  ;;  %v5517_v2 = vpack.c.bf16 %v1040_v61, %v1033_v59  ;;  %v2243_v61 = vld [vmem:[#allocation9 + $0x70] sm:$0xff] }
 0x1db   : > { %5258 = vmatpush1.bf16.msra.mxu0 %v5257_v12  ;;  %v639_v12 = vld [vmem:[#allocation7 + $0xa30] sm:$0xff]  ;;  %v5508_v35 = vpack.c.bf16 %v998_v29, %v991_v28  ;;  %v724_v1 = vld [vmem:[#allocation7 + $0xcd8] sm:$0xff]  ;;  %v758_v28 = vld [vmem:[#allocation7 + $0xde8] sm:$0xff] }
 0x1dc   : > { %5260 = vmatprep.subr.bf16.mxu0 %v5259_v14  ;;  %5482 = vmatpush3.bf16.msra.mxu1 %v5481_v18  ;;  %v646_v14 = vld [vmem:[#allocation7 + $0xa68] sm:$0xff]  ;;  %v5503_v18 = vpack.c.bf16 %v984_v9, %v977_v8  ;;  %v723_v8 = vld [vmem:[#allocation7 + $0xcd0] sm:$0xff] }
 0x1dd   : > { %5484 = vmatprep.subr.bf16.mxu1 %v5483_v20  ;;  %v872_v20 = vld [vmem:[#allocation7 + $0x1178] sm:$0xff]  ;;  %v5281_v41 = vpack.c.bf16 %v646_v14, %v639_v12  ;;  %v730_v9 = vld [vmem:[#allocation7 + $0xd08] sm:$0xff]  ;;  %v745_v12 = vld [vmem:[#allocation7 + $0xd80] sm:$0xff] }
 0x1de   : > { %v1061_v14 = vld [vmem:[#allocation7 + $0x1760] sm:$0xff]  ;;  %v766_v29 = vld [vmem:[#allocation7 + $0xe28] sm:$0xff] }
 0x1df   : > { %5262 = vmatpush1.bf16.msra.mxu0 %v5261_v25  ;;  %v668_v25 = vld [vmem:[#allocation7 + $0xb18] sm:$0xff] }
 0x1e0   : > { %5264 = vmatprep.subr.bf16.mxu0 %v5263_v26  ;;  %5486 = vmatpush3.bf16.msra.mxu1 %v5485_v30  ;;  %v5505_v26 = vpack.c.bf16 %v872_v20, %v865_v19  ;;  %v5285_v30 = vpack.c.bf16 %v660_v24, %v653_v23  ;;  %v5287_v31 = vpack.c.bf16 %v675_v27, %v668_v25  ;;  %v744_v19 = vld [vmem:[#allocation7 + $0xd78] sm:$0xff]  ;;  %v1075_v23 = vld [vmem:[#allocation7 + $0x17d0] sm:$0xff]  ;;  %v1082_v24 = vld [vmem:[#allocation7 + $0x1808] sm:$0xff] }
 0x1e1   : > { %5488 = vmatprep.subr.bf16.mxu1 %v5487_v32  ;;  %v667_v32 = vld [vmem:[#allocation7 + $0xb10] sm:$0xff]  ;;  %v752_v20 = vld [vmem:[#allocation7 + $0xdb8] sm:$0xff] }
 0x1e2   : > { %v5289_v39 = vpack.c.bf16 %v674_v33, %v667_v32  ;;  %v751_v27 = vld [vmem:[#allocation7 + $0xdb0] sm:$0xff]  ;;  %v1089_v32 = vld [vmem:[#allocation7 + $0x1840] sm:$0xff]  ;;  %v1096_v33 = vld [vmem:[#allocation7 + $0x1878] sm:$0xff] }
 0x1e3   : > { %5266 = vmatpush1.bf16.msra.mxu0 %v5265_v37  ;;  %v6766_v37 = vmov 0.0|0.0  }
 0x1e4   : > { %5268 = vmatprep.subr.bf16.mxu0 %v5267_v51  ;;  %5490 = vmatpush3.bf16.msra.mxu1 %v5489_v42  ;;  %v1005_v51 = vld [vmem:[#allocation7 + $0x15a0] sm:$0xff]  ;;  %v5291_v42 = vpack.c.bf16 %v689_v36, %v682_v34  ;;  %v2230_v34 = vld [vmem:[#allocation9 + $0x8] sm:$0xff]  ;;  %v5313_v36 = vpack.c.bf16 %v758_v28, %v751_v27  ;;  %v828_v27 = vld [vmem:[#allocation7 + $0x1018] sm:$0xff] }
 0x1e5   : > { %5492 = vmatprep.subr.bf16.mxu1 %v5491_v44  ;;  %v688_v44 = vld [vmem:[#allocation7 + $0xbb8] sm:$0xff]  ;;  %v5511_v46 = vpack.c.bf16 %v1012_v38, %v1005_v51  ;;  %v765_v38 = vld [vmem:[#allocation7 + $0xe20] sm:$0xff] }
 0x1e6   : > { %v5293_v52 = vpack.c.bf16 %v688_v44, %v681_v43  ;;  %v5529_v43 = vpack.c.bf16 %v1096_v33, %v1089_v32  ;;  %v787_v44 = vld [vmem:[#allocation7 + $0xed0] sm:$0xff]  ;;  %v836_v28 = vld [vmem:[#allocation7 + $0x1058] sm:$0xff]  ;;  %v2285_v32 = vld [vmem:[#allocation9 + $0x1c0] sm:$0xff] }
 0x1e7   : > { %5270 = vmatpush1.bf16.msra.mxu0 %v5269_v49  ;;  %v1026_v49 = vld [vmem:[#allocation7 + $0x1648] sm:$0xff]  ;;  %v2292_v33 = vld [vmem:[#allocation9 + $0x1f8] sm:$0xff] }
 0x1e8   : > { %5272 = vmatprep.subr.bf16.mxu0 %v5271_v50  ;;  %5494 = vmatpush3.bf16.msra.mxu1 %v5493_v55  ;;  %v7141_v50 = vld [vmem:[#allocation2 + $0x10] sm:$0xff]  ;;  %v702_v55 = vld [vmem:[#allocation7 + $0xc28] sm:$0xff] }
 0x1e9   : > { %5496 = vmatprep.subr.bf16.mxu1 %v5495_v57  ;;  %v5514_v57 = vpack.c.bf16 %v1026_v49, %v1019_v48  ;;  %v5297_v62 = vpack.c.bf16 %v702_v55, %v695_v54  ;;  %v2244_v48 = vld [vmem:[#allocation9 + $0x78] sm:$0xff]  ;;  %v2251_v49 = vld [vmem:[#allocation9 + $0xb0] sm:$0xff]  ;;  %v786_v55 = vld [vmem:[#allocation7 + $0xec8] sm:$0xff] }
 0x1ea   : > { %v779_v54 = vld [vmem:[#allocation7 + $0xe90] sm:$0xff]  ;;  %v5535_v59 = vpack.c.bf16 %v2251_v49, %v2244_v48  ;;  %v2314_v48 = vld [vmem:[#allocation9 + $0x2a8] sm:$0xff]  ;;  %v2321_v49 = vld [vmem:[#allocation9 + $0x2e0] sm:$0xff] }
 0x1eb   : > { %5274 = vmatpush1.bf16.msra.mxu0 %v5273_v63  ;;  %v5299_v63 = vpack.c.bf16 %v717_v58, %v710_v56  ;;  %v794_v56 = vld [vmem:[#allocation7 + $0xf08] sm:$0xff]  ;;  %v801_v58 = vld [vmem:[#allocation7 + $0xf40] sm:$0xff] }
 0x1ec   : > { %5276 = vmatprep.subr.bf16.mxu0 %v5275_v60  ;;  %5498 = vmatpush3.bf16.msra.mxu1 %v5497_v3  ;;  %v709_v60 = vld [vmem:[#allocation7 + $0xc60] sm:$0xff]  ;;  %v731_v3 = vld [vmem:[#allocation7 + $0xd10] sm:$0xff] }
 0x1ed   : > { %5500 = vmatprep.subr.bf16.mxu1 %v5499_v5  ;;  %v1054_v5 = vld [vmem:[#allocation7 + $0x1728] sm:$0xff]  ;;  %v5301_v6 = vpack.c.bf16 %v716_v0, %v709_v60  ;;  %v5303_v7 = vpack.c.bf16 %v731_v3, %v724_v1  ;;  %v2265_v60 = vld [vmem:[#allocation9 + $0x120] sm:$0xff]  ;;  %v5321_v0 = vpack.c.bf16 %v786_v55, %v779_v54  ;;  %v856_v55 = vld [vmem:[#allocation7 + $0x10f8] sm:$0xff] }
 0x1ee   : > { %v7153_v1 = vld [vmem:[%s7084_s20 + $0x30] sm:$0xff]  ;;  %s4257_s20 = scalar_lea.sflag [#allocation6], %s7080_s8 }
 0x1ef   : > { %5278 = vmatpush1.bf16.msra.mxu0 %v5277_v10  ;;  %v738_v10 = vld [vmem:[#allocation7 + $0xd48] sm:$0xff]  ;;  %v793_v3 = vld [vmem:[#allocation7 + $0xf00] sm:$0xff] }
 0x1f0   : > { %5280 = vmatprep.subr.bf16.mxu0 %v5279_v11  ;;  %5502 = vmatpush3.bf16.msra.mxu1 %v5501_v16  ;;  %v5520_v11 = vpack.c.bf16 %v1054_v5, %v1047_v4  ;;  %v5305_v16 = vpack.c.bf16 %v730_v9, %v723_v8  ;;  %v5307_v17 = vpack.c.bf16 %v745_v12, %v738_v10  ;;  %v800_v4 = vld [vmem:[#allocation7 + $0xf38] sm:$0xff]  ;;  %v2257_v9 = vld [vmem:[#allocation9 + $0xe0] sm:$0xff] }
 0x1f1   : > { %5504 = vmatprep.subr.bf16.mxu1 %v5503_v18  ;;  %v737_v18 = vld [vmem:[#allocation7 + $0xd40] sm:$0xff]  ;;  %v808_v5 = vld [vmem:[#allocation7 + $0xf78] sm:$0xff]  ;;  %v5325_v12 = vpack.c.bf16 %v800_v4, %v793_v3  ;;  %v863_v3 = vld [vmem:[#allocation7 + $0x1130] sm:$0xff] }
 0x1f2   : > { %v5309_v25 = vpack.c.bf16 %v744_v19, %v737_v18  ;;  %v2272_v10 = vld [vmem:[#allocation9 + $0x158] sm:$0xff]  ;;  %v829_v19 = vld [vmem:[#allocation7 + $0x1020] sm:$0xff]  ;;  %v870_v4 = vld [vmem:[#allocation7 + $0x1168] sm:$0xff] }
 0x1f3   : > { %5282 = vmatpush1.bf16.msra.mxu0 %v5281_v41  ;;  %v5523_v41 = vpack.c.bf16 %v1068_v15, %v1061_v14  ;;  %v807_v15 = vld [vmem:[#allocation7 + $0xf70] sm:$0xff]  ;;  %v849_v54 = vld [vmem:[#allocation7 + $0x10c0] sm:$0xff] }
 0x1f4   : > { %5284 = vmatprep.subr.bf16.mxu0 %v5283_v21  ;;  %5506 = vmatpush3.bf16.msra.mxu1 %v5505_v26  ;;  %v759_v21 = vld [vmem:[#allocation7 + $0xdf0] sm:$0xff] }
 0x1f5   : > { %5507 = vmatprep.subr.bf16.mxu1 %v6766_v37  ;;  %v5311_v26 = vpack.c.bf16 %v759_v21, %v752_v20  ;;  %v2278_v21 = vld [vmem:[#allocation9 + $0x188] sm:$0xff] }
 0x1f7   : > { %5286 = vmatpush1.bf16.msra.mxu0 %v5285_v30  ;;  %2154 = vmatmul.mubr.f32.vlgmr.msra.gmra.mrb[6].mxu1 %v7137_v40  ;;  %v5526_v30 = vpack.c.bf16 %v1082_v24, %v1075_v23  ;;  %v2286_v23 = vld [vmem:[#allocation9 + $0x1c8] sm:$0xff]  ;;  %v2293_v24 = vld [vmem:[#allocation9 + $0x200] sm:$0xff] }
 0x1f8   : > { %5288 = vmatprep.subr.bf16.mxu0 %v5287_v31  ;;  %5509 = vmatpush3.bf16.msra.mxu1 %v5508_v35  ;;  %v773_v31 = vld [vmem:[#allocation7 + $0xe60] sm:$0xff] }
 0x1f9   : > { %5510 = vmatprep.subr.bf16.mxu1 %v6766_v37  ;;  %4701 = vmatprep.mubr.msk.f32.mxu1 %vm6767_vm1, %v7141_v50  ;;  %v2237_v35 = vld [vmem:[#allocation9 + $0x40] sm:$0xff]  ;;  %v5315_v51 = vpack.c.bf16 %v773_v31, %v766_v29  ;;  %v5547_v31 = vpack.c.bf16 %v2293_v24, %v2286_v23  ;;  %v2356_v23 = vld [vmem:[#allocation9 + $0x3f8] sm:$0xff]  ;;  %v2363_v24 = vld [vmem:[#allocation9 + $0x430] sm:$0xff] }
 0x1fa   : > { %v5531_v45 = vpack.c.bf16 %v2237_v35, %v2230_v34  ;;  %v2300_v34 = vld [vmem:[#allocation9 + $0x238] sm:$0xff]  ;;  %v2307_v35 = vld [vmem:[#allocation9 + $0x270] sm:$0xff] }
 0x1fb   : > { %5290 = vmatpush1.bf16.msra.mxu0 %v5289_v39  ;;  %v772_v39 = vld [vmem:[#allocation7 + $0xe58] sm:$0xff] }
 0x1fc   : > { %5292 = vmatprep.subr.bf16.mxu0 %v5291_v42  ;;  %5512 = vmatpush3.bf16.msra.mxu1 %v5511_v46  ;;  %v780_v42 = vld [vmem:[#allocation7 + $0xe98] sm:$0xff]  ;;  %v2229_v46 = vld [vmem:[#allocation9] sm:$0xff] }
 0x1fd   : > { %5513 = vmatprep.subr.bf16.mxu1 %v6766_v37 }
 0x1ff   : > { %5294 = vmatpush1.bf16.msra.mxu0 %v5293_v52  ;;  %v5317_v52 = vpack.c.bf16 %v772_v39, %v765_v38  ;;  %v835_v38 = vld [vmem:[#allocation7 + $0x1050] sm:$0xff]  ;;  %v842_v39 = vld [vmem:[#allocation7 + $0x1088] sm:$0xff] }
 0x200   : > { %5296 = vmatprep.subr.bf16.mxu0 %v5295_v53  ;;  %5515 = vmatpush3.bf16.msra.mxu1 %v5514_v57  ;;  %v5319_v53 = vpack.c.bf16 %v787_v44, %v780_v42  ;;  %v5533_v57 = vpack.c.bf16 %v2236_v47, %v2229_v46  ;;  %v850_v42 = vld [vmem:[#allocation7 + $0x10c8] sm:$0xff]  ;;  %v857_v44 = vld [vmem:[#allocation7 + $0x1100] sm:$0xff]  ;;  %v2299_v46 = vld [vmem:[#allocation9 + $0x230] sm:$0xff] }
 0x201   : > { %5516 = vmatprep.subr.bf16.mxu1 %v6766_v37  ;;  %v2306_v47 = vld [vmem:[#allocation9 + $0x268] sm:$0xff] }
 0x203   : > { %5298 = vmatpush1.bf16.msra.mxu0 %v5297_v62  ;;  %v2250_v62 = vld [vmem:[#allocation9 + $0xa8] sm:$0xff] }
 0x204   : > { %5300 = vmatprep.subr.bf16.mxu0 %v5299_v63  ;;  %5518 = vmatpush3.bf16.msra.mxu1 %v5517_v2  ;;  %v2258_v63 = vld [vmem:[#allocation9 + $0xe8] sm:$0xff]  ;;  %v5323_v2 = vpack.c.bf16 %v801_v58, %v794_v56  ;;  %v864_v56 = vld [vmem:[#allocation7 + $0x1138] sm:$0xff]  ;;  %v871_v58 = vld [vmem:[#allocation7 + $0x1170] sm:$0xff] }
 0x205   : > { %5519 = vmatprep.subr.bf16.mxu1 %v6766_v37  ;;  %v5539_v8 = vpack.c.bf16 %v2265_v60, %v2258_v63  ;;  %v2328_v63 = vld [vmem:[#allocation9 + $0x318] sm:$0xff]  ;;  %v2335_v60 = vld [vmem:[#allocation9 + $0x350] sm:$0xff] }
 0x207   : > { %5302 = vmatpush1.bf16.msra.mxu0 %v5301_v6  ;;  %v5537_v6 = vpack.c.bf16 %v2250_v62, %v2243_v61  ;;  %v2313_v61 = vld [vmem:[#allocation9 + $0x2a0] sm:$0xff]  ;;  %v2320_v62 = vld [vmem:[#allocation9 + $0x2d8] sm:$0xff] }
 0x208   : > { %5304 = vmatprep.subr.bf16.mxu0 %v5303_v7  ;;  %5521 = vmatpush3.bf16.msra.mxu1 %v5520_v11  ;;  %v815_v7 = vld [vmem:[#allocation7 + $0xfb0] sm:$0xff] }
 0x209   : > { %5522 = vmatprep.subr.bf16.mxu1 %v6766_v37  ;;  %v2279_v11 = vld [vmem:[#allocation9 + $0x190] sm:$0xff]  ;;  %v5327_v14 = vpack.c.bf16 %v815_v7, %v808_v5  ;;  %v878_v5 = vld [vmem:[#allocation7 + $0x11a8] sm:$0xff]  ;;  %v885_v7 = vld [vmem:[#allocation7 + $0x11e0] sm:$0xff] }
 0x20a   : > { %v5543_v20 = vpack.c.bf16 %v2279_v11, %v2272_v10  ;;  %v2342_v10 = vld [vmem:[#allocation9 + $0x388] sm:$0xff]  ;;  %v2349_v11 = vld [vmem:[#allocation9 + $0x3c0] sm:$0xff] }
 0x20b   : > { %5306 = vmatpush1.bf16.msra.mxu0 %v5305_v16  ;;  %v814_v16 = vld [vmem:[#allocation7 + $0xfa8] sm:$0xff] }
 0x20c   : > { %5308 = vmatprep.subr.bf16.mxu0 %v5307_v17  ;;  %5524 = vmatpush3.bf16.msra.mxu1 %v5523_v41  ;;  %v822_v17 = vld [vmem:[#allocation7 + $0xfe8] sm:$0xff]  ;;  %v2271_v41 = vld [vmem:[#allocation9 + $0x150] sm:$0xff] }
 0x20d   : > { %5525 = vmatprep.subr.bf16.mxu1 %v6766_v37  ;;  %v5545_v29 = vpack.c.bf16 %v2278_v21, %v2271_v41  ;;  %v2341_v41 = vld [vmem:[#allocation9 + $0x380] sm:$0xff]  ;;  %v2348_v21 = vld [vmem:[#allocation9 + $0x3b8] sm:$0xff] }
 0x20f   : > { %5310 = vmatpush1.bf16.msra.mxu0 %v5309_v25  ;;  %v5331_v25 = vpack.c.bf16 %v829_v19, %v822_v17  ;;  %v892_v17 = vld [vmem:[#allocation7 + $0x1218] sm:$0xff]  ;;  %v899_v19 = vld [vmem:[#allocation7 + $0x1250] sm:$0xff] }
 0x210   : > { %5312 = vmatprep.subr.bf16.mxu0 %v5311_v26  ;;  %5527 = vmatpush3.bf16.msra.mxu1 %v5526_v30  ;;  %v821_v26 = vld [vmem:[#allocation7 + $0xfe0] sm:$0xff]  ;;  %v843_v30 = vld [vmem:[#allocation7 + $0x1090] sm:$0xff] }
 0x211   : > { %5528 = vmatprep.subr.bf16.mxu1 %v6766_v37 }
 0x213   : > { %5314 = vmatpush1.bf16.msra.mxu0 %v5313_v36  ;;  %v5333_v36 = vpack.c.bf16 %v828_v27, %v821_v26  ;;  %v891_v26 = vld [vmem:[#allocation7 + $0x1210] sm:$0xff]  ;;  %v898_v27 = vld [vmem:[#allocation7 + $0x1248] sm:$0xff] }
 0x214   : > { %5316 = vmatprep.subr.bf16.mxu0 %v5315_v51  ;;  %5530 = vmatpush3.bf16.msra.mxu1 %v5529_v43  ;;  %v5335_v51 = vpack.c.bf16 %v843_v30, %v836_v28  ;;  %v5549_v43 = vpack.c.bf16 %v2292_v33, %v2285_v32  ;;  %v906_v28 = vld [vmem:[#allocation7 + $0x1288] sm:$0xff]  ;;  %v913_v30 = vld [vmem:[#allocation7 + $0x12c0] sm:$0xff]  ;;  %v2355_v32 = vld [vmem:[#allocation9 + $0x3f0] sm:$0xff] }
 0x215   : > { %5532 = vmatprep.subr.bf16.mxu1 %v5531_v45  ;;  %v5551_v45 = vpack.c.bf16 %v2307_v35, %v2300_v34  ;;  %v2362_v33 = vld [vmem:[#allocation9 + $0x428] sm:$0xff]  ;;  %v2377_v35 = vld [vmem:[#allocation9 + $0x4a0] sm:$0xff] }
 0x216   : > { %1801 = vmatmul.mubr.f32.vlgmr.msra.gmra.mrb[2].mxu0 %v7127_v13  ;;  %v2264_v13 = vld [vmem:[#allocation9 + $0x118] sm:$0xff]  ;;  %v2370_v34 = vld [vmem:[#allocation9 + $0x468] sm:$0xff] }
 0x217   : > { %5318 = vmatpush1.bf16.msra.mxu0 %v5317_v52  ;;  %4702 = vmatmul.mubr.f32.vlgmr.msra.gmra.mrb[8].mxu1 %v7153_v1  ;;  %v5541_v18 = vpack.c.bf16 %v2264_v13, %v2257_v9  ;;  %v5337_v52 = vpack.c.bf16 %v842_v39, %v835_v38  ;;  %v2327_v9 = vld [vmem:[#allocation9 + $0x310] sm:$0xff]  ;;  %v2334_v13 = vld [vmem:[#allocation9 + $0x348] sm:$0xff]  ;;  %v905_v38 = vld [vmem:[#allocation7 + $0x1280] sm:$0xff] }
 0x218   : > { %5320 = vmatprep.subr.bf16.mxu0 %v5319_v53  ;;  %5534 = vmatpush1.bf16.msra.mxu1 %v5533_v57  ;;  %v5339_v53 = vpack.c.bf16 %v857_v44, %v850_v42  ;;  %v5553_v57 = vpack.c.bf16 %v2306_v47, %v2299_v46  ;;  %v912_v39 = vld [vmem:[#allocation7 + $0x12b8] sm:$0xff]  ;;  %v927_v44 = vld [vmem:[#allocation7 + $0x1330] sm:$0xff]  ;;  %v2369_v46 = vld [vmem:[#allocation9 + $0x460] sm:$0xff] }
 0x219   : > { %5536 = vmatprep.subr.bf16.mxu1 %v5535_v59  ;;  %1871 = vmatprep.mubr.f32.mxu0 %v7131_v22  ;;  %v5329_v22 = vpack.c.bf16 %v814_v16, %v807_v15  ;;  %v5555_v59 = vpack.c.bf16 %v2321_v49, %v2314_v48  ;;  %v877_v15 = vld [vmem:[#allocation7 + $0x11a0] sm:$0xff]  ;;  %v884_v16 = vld [vmem:[#allocation7 + $0x11d8] sm:$0xff]  ;;  %v2391_v49 = vld [vmem:[#allocation9 + $0x510] sm:$0xff] }
 0x21a   : > { %v920_v42 = vld [vmem:[#allocation7 + $0x12f8] sm:$0xff] }
 0x21b   : > { %5322 = vmatpush1.bf16.msra.mxu0 %v5321_v0  ;;  %v5341_v0 = vpack.c.bf16 %v856_v55, %v849_v54  ;;  %v2376_v47 = vld [vmem:[#allocation9 + $0x498] sm:$0xff]  ;;  %v919_v54 = vld [vmem:[#allocation7 + $0x12f0] sm:$0xff]  ;;  %v926_v55 = vld [vmem:[#allocation7 + $0x1328] sm:$0xff] }
 0x21c   : > { %5324 = vmatprep.subr.bf16.mxu0 %v5323_v2  ;;  %5538 = vmatpush1.bf16.msra.mxu1 %v5537_v6  ;;  %v5343_v2 = vpack.c.bf16 %v871_v58, %v864_v56  ;;  %v5557_v6 = vpack.c.bf16 %v2320_v62, %v2313_v61  ;;  %v2384_v48 = vld [vmem:[#allocation9 + $0x4d8] sm:$0xff]  ;;  %v934_v56 = vld [vmem:[#allocation7 + $0x1368] sm:$0xff]  ;;  %v941_v58 = vld [vmem:[#allocation7 + $0x13a0] sm:$0xff] }
 0x21d   : > { %5540 = vmatprep.subr.bf16.mxu1 %v5539_v8  ;;  %v5559_v8 = vpack.c.bf16 %v2335_v60, %v2328_v63  ;;  %v2383_v61 = vld [vmem:[#allocation9 + $0x4d0] sm:$0xff]  ;;  %v2390_v62 = vld [vmem:[#allocation9 + $0x508] sm:$0xff]  ;;  %v2405_v60 = vld [vmem:[#allocation9 + $0x580] sm:$0xff] }
 0x21e   : > { %v2398_v63 = vld [vmem:[#allocation9 + $0x548] sm:$0xff] }
 0x21f   : > { %5326 = vmatpush1.bf16.msra.mxu0 %v5325_v12  ;;  %v5345_v12 = vpack.c.bf16 %v870_v4, %v863_v3  ;;  %v933_v3 = vld [vmem:[#allocation7 + $0x1360] sm:$0xff]  ;;  %v940_v4 = vld [vmem:[#allocation7 + $0x1398] sm:$0xff] }
 0x220   : > { %5328 = vmatprep.subr.bf16.mxu0 %v5327_v14  ;;  %5542 = vmatpush1.bf16.msra.mxu1 %v5541_v18  ;;  %v5347_v14 = vpack.c.bf16 %v885_v7, %v878_v5  ;;  %v5561_v18 = vpack.c.bf16 %v2334_v13, %v2327_v9  ;;  %v948_v5 = vld [vmem:[#allocation7 + $0x13d8] sm:$0xff]  ;;  %v955_v7 = vld [vmem:[#allocation7 + $0x1410] sm:$0xff]  ;;  %v2397_v9 = vld [vmem:[#allocation9 + $0x540] sm:$0xff] }
 0x221   : > { %5544 = vmatprep.subr.bf16.mxu1 %v5543_v20  ;;  %v5563_v20 = vpack.c.bf16 %v2349_v11, %v2342_v10  ;;  %v2404_v13 = vld [vmem:[#allocation9 + $0x578] sm:$0xff]  ;;  %v2419_v11 = vld [vmem:[#allocation9 + $0x5f0] sm:$0xff] }
 0x222   : > { %v2412_v10 = vld [vmem:[#allocation9 + $0x5b8] sm:$0xff] }
 0x223   : > { %5330 = vmatpush1.bf16.msra.mxu0 %v5329_v22  ;;  %v5349_v22 = vpack.c.bf16 %v884_v16, %v877_v15  ;;  %v947_v15 = vld [vmem:[#allocation7 + $0x13d0] sm:$0xff]  ;;  %v954_v16 = vld [vmem:[#allocation7 + $0x1408] sm:$0xff] }
 0x224   : > { %5332 = vmatprep.subr.bf16.mxu0 %v5331_v25  ;;  %5546 = vmatpush1.bf16.msra.mxu1 %v5545_v29  ;;  %v5351_v25 = vpack.c.bf16 %v899_v19, %v892_v17  ;;  %v5565_v29 = vpack.c.bf16 %v2348_v21, %v2341_v41  ;;  %v962_v17 = vld [vmem:[#allocation7 + $0x1448] sm:$0xff]  ;;  %v969_v19 = vld [vmem:[#allocation7 + $0x1480] sm:$0xff]  ;;  %v2411_v41 = vld [vmem:[#allocation9 + $0x5b0] sm:$0xff] }
 0x225   : > { %5548 = vmatprep.subr.bf16.mxu1 %v5547_v31  ;;  %v5567_v31 = vpack.c.bf16 %v2363_v24, %v2356_v23  ;;  %v2418_v21 = vld [vmem:[#allocation9 + $0x5e8] sm:$0xff]  ;;  %v2433_v24 = vld [vmem:[#allocation9 + $0x660] sm:$0xff] }
 0x226   : > { %v2426_v23 = vld [vmem:[#allocation9 + $0x628] sm:$0xff] }
 0x227   : > { %5334 = vmatpush1.bf16.msra.mxu0 %v5333_v36  ;;  %v5353_v36 = vpack.c.bf16 %v898_v27, %v891_v26  ;;  %v961_v26 = vld [vmem:[#allocation7 + $0x1440] sm:$0xff]  ;;  %v968_v27 = vld [vmem:[#allocation7 + $0x1478] sm:$0xff] }
 0x228   : > { %5336 = vmatprep.subr.bf16.mxu0 %v5335_v51  ;;  %5550 = vmatpush1.bf16.msra.mxu1 %v5549_v43  ;;  %v5355_v51 = vpack.c.bf16 %v913_v30, %v906_v28  ;;  %v5569_v43 = vpack.c.bf16 %v2362_v33, %v2355_v32  ;;  %v976_v28 = vld [vmem:[#allocation7 + $0x14b8] sm:$0xff]  ;;  %v983_v30 = vld [vmem:[#allocation7 + $0x14f0] sm:$0xff]  ;;  %v2425_v32 = vld [vmem:[#allocation9 + $0x620] sm:$0xff] }
 0x229   : > { %5552 = vmatprep.subr.bf16.mxu1 %v5551_v45  ;;  %v5571_v45 = vpack.c.bf16 %v2377_v35, %v2370_v34  ;;  %v2432_v33 = vld [vmem:[#allocation9 + $0x658] sm:$0xff]  ;;  %v2447_v35 = vld [vmem:[#allocation9 + $0x6d0] sm:$0xff] }
 0x22a   : > { %v2440_v34 = vld [vmem:[#allocation9 + $0x698] sm:$0xff] }
 0x22b   : > { %5338 = vmatpush1.bf16.msra.mxu0 %v5337_v52  ;;  %v5357_v52 = vpack.c.bf16 %v912_v39, %v905_v38  ;;  %v975_v38 = vld [vmem:[#allocation7 + $0x14b0] sm:$0xff]  ;;  %v982_v39 = vld [vmem:[#allocation7 + $0x14e8] sm:$0xff] }
 0x22c   : > { %5340 = vmatprep.subr.bf16.mxu0 %v5339_v53  ;;  %5554 = vmatpush1.bf16.msra.mxu1 %v5553_v57  ;;  %v5359_v53 = vpack.c.bf16 %v927_v44, %v920_v42  ;;  %v5573_v57 = vpack.c.bf16 %v2376_v47, %v2369_v46  ;;  %v990_v42 = vld [vmem:[#allocation7 + $0x1528] sm:$0xff]  ;;  %v997_v44 = vld [vmem:[#allocation7 + $0x1560] sm:$0xff]  ;;  %v2439_v46 = vld [vmem:[#allocation9 + $0x690] sm:$0xff] }
 0x22d   : > { %5556 = vmatprep.subr.bf16.mxu1 %v5555_v59  ;;  %v5575_v59 = vpack.c.bf16 %v2391_v49, %v2384_v48  ;;  %v2446_v47 = vld [vmem:[#allocation9 + $0x6c8] sm:$0xff]  ;;  %v2461_v49 = vld [vmem:[#allocation9 + $0x740] sm:$0xff] }
 0x22e   : > { %v2454_v48 = vld [vmem:[#allocation9 + $0x708] sm:$0xff] }
 0x22f   : > { %5342 = vmatpush1.bf16.msra.mxu0 %v5341_v0  ;;  %v5361_v0 = vpack.c.bf16 %v926_v55, %v919_v54  ;;  %v989_v54 = vld [vmem:[#allocation7 + $0x1520] sm:$0xff]  ;;  %v996_v55 = vld [vmem:[#allocation7 + $0x1558] sm:$0xff] }
 0x230   : > { %5344 = vmatprep.subr.bf16.mxu0 %v5343_v2  ;;  %5558 = vmatpush1.bf16.msra.mxu1 %v5557_v6  ;;  %v5363_v2 = vpack.c.bf16 %v941_v58, %v934_v56  ;;  %v5577_v6 = vpack.c.bf16 %v2390_v62, %v2383_v61  ;;  %v5593_v56 = vpack.c.bf16 %v2446_v47, %v2439_v46  ;;  %v1011_v58 = vld [vmem:[#allocation7 + $0x15d0] sm:$0xff]  ;;  %v2489_v46 = vld [vmem:[#allocation9 + $0x820] sm:$0xff] }
 0x231   : > { %5560 = vmatprep.subr.bf16.mxu1 %v5559_v8  ;;  %v5579_v8 = vpack.c.bf16 %v2405_v60, %v2398_v63  ;;  %v5381_v61 = vpack.c.bf16 %v996_v55, %v989_v54  ;;  %v1003_v63 = vld [vmem:[#allocation7 + $0x1590] sm:$0xff]  ;;  %v1010_v60 = vld [vmem:[#allocation7 + $0x15c8] sm:$0xff] }
 0x232   : > { %v2239_v54 = vld [vmem:[#allocation9 + $0x50] sm:$0xff] }
 0x233   : > { %5346 = vmatpush1.bf16.msra.mxu0 %v5345_v12  ;;  %v5365_v12 = vpack.c.bf16 %v940_v4, %v933_v3  ;;  %v5385_v3 = vpack.c.bf16 %v1010_v60, %v1003_v63  ;;  %v2231_v63 = vld [vmem:[#allocation9 + $0x10] sm:$0xff]  ;;  %v2238_v60 = vld [vmem:[#allocation9 + $0x48] sm:$0xff] }
 0x234   : > { %5348 = vmatprep.subr.bf16.mxu0 %v5347_v14  ;;  %5562 = vmatpush1.bf16.msra.mxu1 %v5561_v18  ;;  %v5367_v14 = vpack.c.bf16 %v955_v7, %v948_v5  ;;  %v5581_v18 = vpack.c.bf16 %v2404_v13, %v2397_v9  ;;  %v1017_v5 = vld [vmem:[#allocation7 + $0x1600] sm:$0xff]  ;;  %v1032_v7 = vld [vmem:[#allocation7 + $0x1678] sm:$0xff] }
 0x235   : > { %5564 = vmatprep.subr.bf16.mxu1 %v5563_v20  ;;  %v5583_v20 = vpack.c.bf16 %v2419_v11, %v2412_v10  ;;  %v1031_v10 = vld [vmem:[#allocation7 + $0x1670] sm:$0xff]  ;;  %v1038_v11 = vld [vmem:[#allocation7 + $0x16a8] sm:$0xff] }
 0x237   : > { %5350 = vmatpush1.bf16.msra.mxu0 %v5349_v22  ;;  %v5369_v22 = vpack.c.bf16 %v954_v16, %v947_v15  ;;  %v1045_v16 = vld [vmem:[#allocation7 + $0x16e0] sm:$0xff] }
 0x238   : > { %5352 = vmatprep.subr.bf16.mxu0 %v5351_v25  ;;  %5566 = vmatpush1.bf16.msra.mxu1 %v5565_v29  ;;  %v5371_v25 = vpack.c.bf16 %v969_v19, %v962_v17  ;;  %v5585_v29 = vpack.c.bf16 %v2418_v21, %v2411_v41  ;;  %v1060_v17 = vld [vmem:[#allocation7 + $0x1758] sm:$0xff]  ;;  %v1059_v41 = vld [vmem:[#allocation7 + $0x1750] sm:$0xff]  ;;  %v1066_v21 = vld [vmem:[#allocation7 + $0x1788] sm:$0xff] }
 0x239   : > { %5568 = vmatprep.subr.bf16.mxu1 %v5567_v31  ;;  %v5587_v31 = vpack.c.bf16 %v2433_v24, %v2426_v23  ;;  %v1074_v23 = vld [vmem:[#allocation7 + $0x17c8] sm:$0xff]  ;;  %v1081_v24 = vld [vmem:[#allocation7 + $0x1800] sm:$0xff] }
 0x23b   : > { %5354 = vmatpush1.bf16.msra.mxu0 %v5353_v36  ;;  %v5373_v36 = vpack.c.bf16 %v968_v27, %v961_v26  ;;  %v5401_v26 = vpack.c.bf16 %v1066_v21, %v1059_v41  ;;  %v2468_v27 = vld [vmem:[#allocation9 + $0x778] sm:$0xff]  ;;  %v2259_v41 = vld [vmem:[#allocation9 + $0xf0] sm:$0xff]  ;;  %v2266_v21 = vld [vmem:[#allocation9 + $0x128] sm:$0xff] }
 0x23c   : > { %5356 = vmatprep.subr.bf16.mxu0 %v5355_v51  ;;  %5570 = vmatpush1.bf16.msra.mxu1 %v5569_v43  ;;  %v5375_v51 = vpack.c.bf16 %v983_v30, %v976_v28  ;;  %v5589_v43 = vpack.c.bf16 %v2432_v33, %v2425_v32  ;;  %v2475_v28 = vld [vmem:[#allocation9 + $0x7b0] sm:$0xff]  ;;  %v1073_v30 = vld [vmem:[#allocation7 + $0x17c0] sm:$0xff] }
 0x23d   : > { %5572 = vmatprep.subr.bf16.mxu1 %v5571_v45  ;;  %v5591_v45 = vpack.c.bf16 %v2447_v35, %v2440_v34  ;;  %v1088_v34 = vld [vmem:[#allocation7 + $0x1838] sm:$0xff]  ;;  %v1095_v35 = vld [vmem:[#allocation7 + $0x1870] sm:$0xff] }
 0x23e   : > { %v5407_v47 = vpack.c.bf16 %v1095_v35, %v1088_v34  ;;  %v2288_v35 = vld [vmem:[#allocation9 + $0x1d8] sm:$0xff] }
 0x23f   : > { %5358 = vmatpush1.bf16.msra.mxu0 %v5357_v52  ;;  %v5377_v52 = vpack.c.bf16 %v982_v39, %v975_v38  ;;  %v5599_v38 = vpack.c.bf16 %v2475_v28, %v2468_v27  ;;  %v2467_v39 = vld [vmem:[#allocation9 + $0x770] sm:$0xff]  ;;  %v5765_v27 = vpack.c.bf16 %v2266_v21, %v2259_v41  ;;  %v2538_v28 = vld [vmem:[#allocation9 + $0x9a8] sm:$0xff]  ;;  %v2601_v41 = vld [vmem:[#allocation9 + $0xba0] sm:$0xff] }
 0x240   : > { %5360 = vmatprep.subr.bf16.mxu0 %v5359_v53  ;;  %5574 = vmatpush1.bf16.msra.mxu1 %v5573_v57  ;;  %v5379_v53 = vpack.c.bf16 %v997_v44, %v990_v42  ;;  %v1004_v57 = vld [vmem:[#allocation7 + $0x1598] sm:$0xff]  ;;  %v2474_v42 = vld [vmem:[#allocation9 + $0x7a8] sm:$0xff] }
 0x241   : > { %5576 = vmatprep.subr.bf16.mxu1 %v5575_v59  ;;  %v5595_v59 = vpack.c.bf16 %v2461_v49, %v2454_v48  ;;  %v5383_v62 = vpack.c.bf16 %v1011_v58, %v1004_v57  ;;  %v1087_v48 = vld [vmem:[#allocation7 + $0x1830] sm:$0xff]  ;;  %v1094_v49 = vld [vmem:[#allocation7 + $0x1868] sm:$0xff]  ;;  %v2488_v57 = vld [vmem:[#allocation9 + $0x818] sm:$0xff] }
 0x242   : > { %v5409_v58 = vpack.c.bf16 %v1094_v49, %v1087_v48  ;;  %v2287_v49 = vld [vmem:[#allocation9 + $0x1d0] sm:$0xff] }
 0x243   : > { %5362 = vmatpush1.bf16.msra.mxu0 %v5361_v0  ;;  %v1018_v0 = vld [vmem:[#allocation7 + $0x1608] sm:$0xff] }
 0x244   : > { %5364 = vmatprep.subr.bf16.mxu0 %v5363_v2  ;;  %5578 = vmatpush1.bf16.msra.mxu1 %v5577_v6  ;;  %v1025_v2 = vld [vmem:[#allocation7 + $0x1640] sm:$0xff]  ;;  %v1024_v6 = vld [vmem:[#allocation7 + $0x1638] sm:$0xff] }
 0x245   : > { %5580 = vmatprep.subr.bf16.mxu1 %v5579_v8  ;;  %v5387_v4 = vpack.c.bf16 %v1025_v2, %v1018_v0  ;;  %v1039_v8 = vld [vmem:[#allocation7 + $0x16b0] sm:$0xff]  ;;  %v5389_v9 = vpack.c.bf16 %v1024_v6, %v1017_v5  ;;  %v2246_v2 = vld [vmem:[#allocation9 + $0x88] sm:$0xff] }
 0x246   : > { %v5391_v13 = vpack.c.bf16 %v1039_v8, %v1032_v7  ;;  %v2495_v5 = vld [vmem:[#allocation9 + $0x850] sm:$0xff]  ;;  %v2502_v6 = vld [vmem:[#allocation9 + $0x888] sm:$0xff]  ;;  %v5757_v7 = vpack.c.bf16 %v2238_v60, %v2231_v63  ;;  %v2301_v60 = vld [vmem:[#allocation9 + $0x240] sm:$0xff] }
 0x247   : > { %5366 = vmatpush1.bf16.msra.mxu0 %v5365_v12  ;;  %v1046_v12 = vld [vmem:[#allocation7 + $0x16e8] sm:$0xff] }
 0x248   : > { %5368 = vmatprep.subr.bf16.mxu0 %v5367_v14  ;;  %5582 = vmatpush1.bf16.msra.mxu1 %v5581_v18  ;;  %v1053_v14 = vld [vmem:[#allocation7 + $0x1720] sm:$0xff]  ;;  %v1067_v18 = vld [vmem:[#allocation7 + $0x1790] sm:$0xff]  ;;  %v2510_v8 = vld [vmem:[#allocation9 + $0x8c8] sm:$0xff] }
 0x249   : > { %5584 = vmatprep.subr.bf16.mxu1 %v5583_v20  ;;  %v5395_v15 = vpack.c.bf16 %v1053_v14, %v1046_v12  ;;  %v5399_v20 = vpack.c.bf16 %v1067_v18, %v1060_v17  ;;  %v5609_v12 = vpack.c.bf16 %v2502_v6, %v2495_v5  ;;  %v2260_v14 = vld [vmem:[#allocation9 + $0xf8] sm:$0xff]  ;;  %v2565_v6 = vld [vmem:[#allocation9 + $0xa80] sm:$0xff] }
 0x24a   : > { %v2524_v18 = vld [vmem:[#allocation9 + $0x938] sm:$0xff] }
 0x24b   : > { %5370 = vmatpush1.bf16.msra.mxu0 %v5369_v22  ;;  %v2453_v22 = vld [vmem:[#allocation9 + $0x700] sm:$0xff] }
 0x24c   : > { %5372 = vmatprep.subr.bf16.mxu0 %v5371_v25  ;;  %5586 = vmatpush1.bf16.msra.mxu1 %v5585_v29  ;;  %v2460_v25 = vld [vmem:[#allocation9 + $0x738] sm:$0xff]  ;;  %v5403_v29 = vpack.c.bf16 %v1081_v24, %v1074_v23  ;;  %v2274_v24 = vld [vmem:[#allocation9 + $0x168] sm:$0xff] }
 0x24d   : > { %5588 = vmatprep.subr.bf16.mxu1 %v5587_v31  ;;  %v1080_v31 = vld [vmem:[#allocation7 + $0x17f8] sm:$0xff]  ;;  %v5597_v33 = vpack.c.bf16 %v2460_v25, %v2453_v22  ;;  %v2281_v22 = vld [vmem:[#allocation9 + $0x1a0] sm:$0xff]  ;;  %v2523_v25 = vld [vmem:[#allocation9 + $0x930] sm:$0xff] }
 0x24e   : > { %v5405_v44 = vpack.c.bf16 %v1080_v31, %v1073_v30  ;;  %v5767_v30 = vpack.c.bf16 %v2281_v22, %v2274_v24  ;;  %v2273_v31 = vld [vmem:[#allocation9 + $0x160] sm:$0xff]  ;;  %v2336_v22 = vld [vmem:[#allocation9 + $0x358] sm:$0xff] }
 0x24f   : > { %5374 = vmatpush1.bf16.msra.mxu0 %v5373_v36  ;;  %v2329_v24 = vld [vmem:[#allocation9 + $0x320] sm:$0xff] }
 0x250   : > { %5376 = vmatprep.subr.bf16.mxu0 %v5375_v51  ;;  %5590 = vmatpush1.bf16.msra.mxu1 %v5589_v43 }
 0x251   : > { %5592 = vmatprep.subr.bf16.mxu1 %v5591_v45  ;;  %v2482_v45 = vld [vmem:[#allocation9 + $0x7e8] sm:$0xff] }
 0x252   : > { %v5603_v55 = vpack.c.bf16 %v2489_v46, %v2482_v45  ;;  %v2552_v46 = vld [vmem:[#allocation9 + $0xa18] sm:$0xff] }
 0x253   : > { %5378 = vmatpush1.bf16.msra.mxu0 %v5377_v52  ;;  %v5601_v52 = vpack.c.bf16 %v2474_v42, %v2467_v39  ;;  %v2537_v42 = vld [vmem:[#allocation9 + $0x9a0] sm:$0xff] }
 0x254   : > { %5380 = vmatprep.subr.bf16.mxu0 %v5379_v53  ;;  %5594 = vmatpush1.bf16.msra.mxu1 %v5593_v56  ;;  %v2232_v53 = vld [vmem:[#allocation9 + $0x18] sm:$0xff]  ;;  %v2481_v56 = vld [vmem:[#allocation9 + $0x7e0] sm:$0xff] }
 0x255   : > { %5596 = vmatprep.subr.bf16.mxu1 %v5595_v59  ;;  %v2496_v59 = vld [vmem:[#allocation9 + $0x858] sm:$0xff]  ;;  %v5605_v0 = vpack.c.bf16 %v2488_v57, %v2481_v56  ;;  %v2551_v57 = vld [vmem:[#allocation9 + $0xa10] sm:$0xff] }
 0x256   : > { %1872 = vmatmul.mubr.f32.vlgmr.msra.gmra.mrb[2].mxu0 %v7137_v40  ;;  %v5393_v40 = vpack.c.bf16 %v1038_v11, %v1031_v10  ;;  %v2245_v10 = vld [vmem:[#allocation9 + $0x80] sm:$0xff]  ;;  %v2252_v11 = vld [vmem:[#allocation9 + $0xb8] sm:$0xff] }
 0x257   : > { %5382 = vmatpush1.bf16.msra.mxu0 %v5381_v61  ;;  %1942 = vmatprep.mubr.f32.mxu0 %v7141_v50  ;;  %v1052_v50 = vld [vmem:[#allocation7 + $0x1718] sm:$0xff]  ;;  %v2503_v61 = vld [vmem:[#allocation9 + $0x890] sm:$0xff]  ;;  %v5761_v17 = vpack.c.bf16 %v2252_v11, %v2245_v10 }
 0x258   : > { %5384 = vmatprep.subr.bf16.mxu0 %v5383_v62  ;;  %v5397_v19 = vpack.c.bf16 %v1052_v50, %v1045_v16  ;;  %v5755_v62 = vpack.c.bf16 %v2239_v54, %v2232_v53  ;;  %v2509_v16 = vld [vmem:[#allocation9 + $0x8c0] sm:$0xff]  ;;  %v2516_v50 = vld [vmem:[#allocation9 + $0x8f8] sm:$0xff]  ;;  %v2302_v54 = vld [vmem:[#allocation9 + $0x248] sm:$0xff] }
 0x259   : > { %v5613_v23 = vpack.c.bf16 %v2516_v50, %v2509_v16  ;;  %v2315_v11 = vld [vmem:[#allocation9 + $0x2b0] sm:$0xff] }
 0x25a   : > { %v2579_v50 = vld [vmem:[#allocation9 + $0xaf0] sm:$0xff] }
 0x25b   : > { %5386 = vmatpush1.bf16.msra.mxu0 %v5385_v3  ;;  %v2253_v3 = vld [vmem:[#allocation9 + $0xc0] sm:$0xff] }
 0x25c   : > { %5388 = vmatprep.subr.bf16.mxu0 %v5387_v4  ;;  %v5607_v4 = vpack.c.bf16 %v2503_v61, %v2496_v59  ;;  %v2566_v61 = vld [vmem:[#allocation9 + $0xa88] sm:$0xff] }
 0x25f   : > { %5390 = vmatpush1.bf16.msra.mxu0 %v5389_v9  ;;  %v2517_v9 = vld [vmem:[#allocation9 + $0x900] sm:$0xff] }
 0x260   : > { %5392 = vmatprep.subr.bf16.mxu0 %v5391_v13  ;;  %v5759_v13 = vpack.c.bf16 %v2253_v3, %v2246_v2  ;;  %v2316_v3 = vld [vmem:[#allocation9 + $0x2b8] sm:$0xff] }
 0x263   : > { %5394 = vmatpush1.bf16.msra.mxu0 %v5393_v40  ;;  %v2267_v40 = vld [vmem:[#allocation9 + $0x130] sm:$0xff] }
 0x264   : > { %5396 = vmatprep.subr.bf16.mxu0 %v5395_v15  ;;  %v5611_v15 = vpack.c.bf16 %v2517_v9, %v2510_v8  ;;  %v2580_v9 = vld [vmem:[#allocation9 + $0xaf8] sm:$0xff] }
 0x267   : > { %5398 = vmatpush1.bf16.msra.mxu0 %v5397_v19  ;;  %v2531_v19 = vld [vmem:[#allocation9 + $0x970] sm:$0xff] }
 0x268   : > { %5400 = vmatprep.subr.bf16.mxu0 %v5399_v20  ;;  %v5763_v20 = vpack.c.bf16 %v2267_v40, %v2260_v14  ;;  %v2330_v40 = vld [vmem:[#allocation9 + $0x328] sm:$0xff] }
 0x269   : > { %v7159_v32 = vpop.f32.mrb[0].mxu0 }
 0x26a   : > { %v7161_v36 = vpop.f32.mrb[0].mxu1  ;;  %v7163_v51 = vpop.f32.mrb[1].mxu0 }
 0x26b   : > { %v7165_v43 = vpop.f32.mrb[1].mxu1  ;;  %5402 = vmatpush1.bf16.msra.mxu0 %v5401_v26  ;;  %3077 = vmatprep.mubr.f32.mxu1 %v7163_v51  ;;  %v2530_v26 = vld [vmem:[#allocation9 + $0x968] sm:$0xff] }
 0x26c   : > { %3078 = vmatmul.mubr.f32.vlgmr.msra.gmra.mrb[10].mxu1 %v7159_v32  ;;  %5404 = vmatprep.subr.bf16.mxu0 %v5403_v29  ;;  %v2545_v29 = vld [vmem:[#allocation9 + $0x9e0] sm:$0xff]  ;;  %v5617_v34 = vpack.c.bf16 %v2530_v26, %v2523_v25  ;;  %v2344_v26 = vld [vmem:[#allocation9 + $0x398] sm:$0xff] }
 0x26d   : > { %5598 = vmatpush1.bf16.msra.mxu1 %v5597_v33  ;;  %3148 = vmatprep.mubr.f32.mxu1 %v7165_v43  ;;  %v2280_v33 = vld [vmem:[#allocation9 + $0x198] sm:$0xff]  ;;  %v5619_v39 = vpack.c.bf16 %v2545_v29, %v2538_v28  ;;  %v2593_v29 = vld [vmem:[#allocation9 + $0xb60] sm:$0xff] }
 0x26e   : > { %5600 = vmatprep.subr.bf16.mxu1 %v5599_v38  ;;  %v2295_v38 = vld [vmem:[#allocation9 + $0x210] sm:$0xff]  ;;  %v5769_v45 = vpack.c.bf16 %v2280_v33, %v2273_v31  ;;  %v5785_v31 = vpack.c.bf16 %v2336_v22, %v2329_v24  ;;  %v2608_v33 = vld [vmem:[#allocation9 + $0xbd8] sm:$0xff] }
 0x26f   : > { %5406 = vmatpush1.bf16.msra.mxu0 %v5405_v44  ;;  %v2544_v44 = vld [vmem:[#allocation9 + $0x9d8] sm:$0xff]  ;;  %v5771_v48 = vpack.c.bf16 %v2295_v38, %v2288_v35  ;;  %v2343_v38 = vld [vmem:[#allocation9 + $0x390] sm:$0xff] }
 0x270   : > { %5408 = vmatprep.subr.bf16.mxu0 %v5407_v47  ;;  %v2559_v47 = vld [vmem:[#allocation9 + $0xa50] sm:$0xff]  ;;  %v5621_v53 = vpack.c.bf16 %v2544_v44, %v2537_v42  ;;  %v2358_v44 = vld [vmem:[#allocation9 + $0x408] sm:$0xff] }
 0x271   : > { %5602 = vmatpush1.bf16.msra.mxu1 %v5601_v52  ;;  %v2294_v52 = vld [vmem:[#allocation9 + $0x208] sm:$0xff]  ;;  %v5623_v56 = vpack.c.bf16 %v2559_v47, %v2552_v46  ;;  %v2607_v47 = vld [vmem:[#allocation9 + $0xbd0] sm:$0xff] }
 0x272   : > { %5604 = vmatprep.subr.bf16.mxu1 %v5603_v55  ;;  %v2309_v55 = vld [vmem:[#allocation9 + $0x280] sm:$0xff]  ;;  %v5773_v59 = vpack.c.bf16 %v2294_v52, %v2287_v49  ;;  %v2622_v52 = vld [vmem:[#allocation9 + $0xc48] sm:$0xff]  ;;  %v2671_v24 = vld [vmem:[#allocation9 + $0xdd0] sm:$0xff] }
 0x273   : > { %5410 = vmatpush1.bf16.msra.mxu0 %v5409_v58  ;;  %v2558_v58 = vld [vmem:[#allocation9 + $0xa48] sm:$0xff]  ;;  %v5775_v63 = vpack.c.bf16 %v2309_v55, %v2302_v54  ;;  %v2357_v55 = vld [vmem:[#allocation9 + $0x400] sm:$0xff] }
 0x274   : > { %5756 = vmatprep.subr.bf16.mxu0 %v5755_v62  ;;  %v2573_v62 = vld [vmem:[#allocation9 + $0xac0] sm:$0xff]  ;;  %v5625_v2 = vpack.c.bf16 %v2558_v58, %v2551_v57  ;;  %v2372_v58 = vld [vmem:[#allocation9 + $0x478] sm:$0xff] }
 0x275   : > { %5606 = vmatpush1.bf16.msra.mxu1 %v5605_v0  ;;  %v2308_v0 = vld [vmem:[#allocation9 + $0x278] sm:$0xff]  ;;  %v5627_v5 = vpack.c.bf16 %v2573_v62, %v2566_v61  ;;  %v2621_v62 = vld [vmem:[#allocation9 + $0xc40] sm:$0xff] }
 0x276   : > { %1943 = vmatmul.mubr.f32.vlgmr.msra.gmra.mrb[2].mxu0 %v7153_v1  ;;  %5608 = vmatprep.subr.bf16.mxu1 %v5607_v4  ;;  %v5615_v1 = vpack.c.bf16 %v2531_v19, %v2524_v18  ;;  %v2323_v4 = vld [vmem:[#allocation9 + $0x2f0] sm:$0xff]  ;;  %v5777_v8 = vpack.c.bf16 %v2308_v0, %v2301_v60  ;;  %v2636_v0 = vld [vmem:[#allocation9 + $0xcb8] sm:$0xff] }
 0x277   : > { %5758 = vmatpush1.bf16.msra.mxu0 %v5757_v7  ;;  %3361 = vmatprep.mubr.f32.mxu0 %v7163_v51  ;;  %v2572_v7 = vld [vmem:[#allocation9 + $0xab8] sm:$0xff]  ;;  %v5779_v10 = vpack.c.bf16 %v2323_v4, %v2316_v3  ;;  %v2371_v4 = vld [vmem:[#allocation9 + $0x470] sm:$0xff] }
 0x278   : > { %5760 = vmatprep.subr.bf16.mxu0 %v5759_v13  ;;  %v2587_v13 = vld [vmem:[#allocation9 + $0xb30] sm:$0xff]  ;;  %v5629_v14 = vpack.c.bf16 %v2572_v7, %v2565_v6  ;;  %v2386_v7 = vld [vmem:[#allocation9 + $0x4e8] sm:$0xff] }
 0x279   : > { %5610 = vmatpush1.bf16.msra.mxu1 %v5609_v12  ;;  %v2322_v12 = vld [vmem:[#allocation9 + $0x2e8] sm:$0xff]  ;;  %v5631_v16 = vpack.c.bf16 %v2587_v13, %v2580_v9  ;;  %v2635_v13 = vld [vmem:[#allocation9 + $0xcb0] sm:$0xff] }
 0x27a   : > { %5612 = vmatprep.subr.bf16.mxu1 %v5611_v15  ;;  %v2337_v15 = vld [vmem:[#allocation9 + $0x360] sm:$0xff]  ;;  %v5781_v19 = vpack.c.bf16 %v2322_v12, %v2315_v11  ;;  %v2650_v12 = vld [vmem:[#allocation9 + $0xd28] sm:$0xff] }
 0x27b   : > { %5762 = vmatpush1.bf16.msra.mxu0 %v5761_v17  ;;  %v2586_v17 = vld [vmem:[#allocation9 + $0xb28] sm:$0xff] }
 0x27c   : > { %5764 = vmatprep.subr.bf16.mxu0 %v5763_v20  ;;  %v2594_v20 = vld [vmem:[#allocation9 + $0xb68] sm:$0xff]  ;;  %v5633_v25 = vpack.c.bf16 %v2586_v17, %v2579_v50  ;;  %v2400_v17 = vld [vmem:[#allocation9 + $0x558] sm:$0xff] }
 0x27d   : > { %5614 = vmatpush1.bf16.msra.mxu1 %v5613_v23  ;;  %v5783_v23 = vpack.c.bf16 %v2337_v15, %v2330_v40  ;;  %v5635_v28 = vpack.c.bf16 %v2601_v41, %v2594_v20  ;;  %v2385_v15 = vld [vmem:[#allocation9 + $0x4e0] sm:$0xff]  ;;  %v2656_v41 = vld [vmem:[#allocation9 + $0xd58] sm:$0xff] }
 0x27e   : > { %5616 = vmatprep.subr.bf16.mxu1 %v5615_v1  ;;  %v2649_v20 = vld [vmem:[#allocation9 + $0xd20] sm:$0xff] }
 0x27f   : > { %5766 = vmatpush1.bf16.msra.mxu0 %v5765_v27  ;;  %v2351_v27 = vld [vmem:[#allocation9 + $0x3d0] sm:$0xff] }
 0x280   : > { %5768 = vmatprep.subr.bf16.mxu0 %v5767_v30  ;;  %v2600_v30 = vld [vmem:[#allocation9 + $0xb98] sm:$0xff]  ;;  %v5787_v35 = vpack.c.bf16 %v2351_v27, %v2344_v26  ;;  %v2406_v26 = vld [vmem:[#allocation9 + $0x588] sm:$0xff]  ;;  %v5653_v27 = vpack.c.bf16 %v2656_v41, %v2649_v20  ;;  %v2455_v20 = vld [vmem:[#allocation9 + $0x710] sm:$0xff] }
 0x281   : > { %5618 = vmatpush1.bf16.msra.mxu1 %v5617_v34  ;;  %v2615_v34 = vld [vmem:[#allocation9 + $0xc10] sm:$0xff]  ;;  %v5637_v42 = vpack.c.bf16 %v2600_v30, %v2593_v29  ;;  %v2421_v29 = vld [vmem:[#allocation9 + $0x600] sm:$0xff]  ;;  %v2462_v41 = vld [vmem:[#allocation9 + $0x748] sm:$0xff] }
 0x282   : > { %5620 = vmatprep.subr.bf16.mxu1 %v5619_v39  ;;  %v2350_v39 = vld [vmem:[#allocation9 + $0x3c8] sm:$0xff]  ;;  %v5639_v46 = vpack.c.bf16 %v2615_v34, %v2608_v33 }
 0x283   : > { %5770 = vmatpush1.bf16.msra.mxu0 %v5769_v45  ;;  %v2365_v45 = vld [vmem:[#allocation9 + $0x440] sm:$0xff]  ;;  %v5789_v49 = vpack.c.bf16 %v2350_v39, %v2343_v38  ;;  %v2670_v33 = vld [vmem:[#allocation9 + $0xdc8] sm:$0xff] }
 0x284   : > { %5772 = vmatprep.subr.bf16.mxu0 %v5771_v48  ;;  %v2614_v48 = vld [vmem:[#allocation9 + $0xc08] sm:$0xff]  ;;  %v5791_v54 = vpack.c.bf16 %v2365_v45, %v2358_v44  ;;  %v2685_v38 = vld [vmem:[#allocation9 + $0xe40] sm:$0xff]  ;;  %v2420_v44 = vld [vmem:[#allocation9 + $0x5f8] sm:$0xff] }
 0x285   : > { %5622 = vmatpush1.bf16.msra.mxu1 %v5621_v53  ;;  %v2629_v53 = vld [vmem:[#allocation9 + $0xc80] sm:$0xff]  ;;  %v5641_v57 = vpack.c.bf16 %v2614_v48, %v2607_v47  ;;  %v2435_v47 = vld [vmem:[#allocation9 + $0x670] sm:$0xff] }
 0x286   : > { %5624 = vmatprep.subr.bf16.mxu1 %v5623_v56  ;;  %v2364_v56 = vld [vmem:[#allocation9 + $0x438] sm:$0xff]  ;;  %v5643_v61 = vpack.c.bf16 %v2629_v53, %v2622_v52 }
 0x287   : > { %5774 = vmatpush1.bf16.msra.mxu0 %v5773_v59  ;;  %v2379_v59 = vld [vmem:[#allocation9 + $0x4b0] sm:$0xff]  ;;  %v5793_v60 = vpack.c.bf16 %v2364_v56, %v2357_v55  ;;  %v2684_v52 = vld [vmem:[#allocation9 + $0xe38] sm:$0xff] }
 0x288   : > { %5776 = vmatprep.subr.bf16.mxu0 %v5775_v63  ;;  %v2628_v63 = vld [vmem:[#allocation9 + $0xc78] sm:$0xff]  ;;  %v5795_v3 = vpack.c.bf16 %v2379_v59, %v2372_v58  ;;  %v2699_v55 = vld [vmem:[#allocation9 + $0xeb0] sm:$0xff]  ;;  %v2434_v58 = vld [vmem:[#allocation9 + $0x668] sm:$0xff] }
 0x289   : > { %5626 = vmatpush1.bf16.msra.mxu1 %v5625_v2  ;;  %v2643_v2 = vld [vmem:[#allocation9 + $0xcf0] sm:$0xff]  ;;  %v5645_v6 = vpack.c.bf16 %v2628_v63, %v2621_v62  ;;  %v2442_v59 = vld [vmem:[#allocation9 + $0x6a8] sm:$0xff] }
 0x28a   : > { %5628 = vmatprep.subr.bf16.mxu1 %v5627_v5  ;;  %v4457_v18 = vpop.f32.mrb[2].mxu1  ;;  %v2378_v5 = vld [vmem:[#allocation9 + $0x4a8] sm:$0xff]  ;;  %v5647_v9 = vpack.c.bf16 %v2643_v2, %v2636_v0  ;;  %v2691_v0 = vld [vmem:[#allocation9 + $0xe70] sm:$0xff] }
 0x28b   : > { %5778 = vmatpush1.bf16.msra.mxu0 %v5777_v8  ;;  %v4458_v21 = vpop.f32.mrb[3].mxu1  ;;  %v2393_v8 = vld [vmem:[#allocation9 + $0x520] sm:$0xff]  ;;  %v5797_v11 = vpack.c.bf16 %v2378_v5, %v2371_v4  ;;  %v2698_v2 = vld [vmem:[#allocation9 + $0xea8] sm:$0xff] }
 0x28c   : > { %5780 = vmatprep.subr.bf16.mxu0 %v5779_v10  ;;  %v7172_v1 = vadd.f32 %v4458_v21, %v4457_v18  ;;  %v2642_v10 = vld [vmem:[#allocation9 + $0xce8] sm:$0xff]  ;;  %v5799_v40 = vpack.c.bf16 %v2393_v8, %v2386_v7  ;;  %v2407_v18 = vld [vmem:[#allocation9 + $0x590] sm:$0xff]  ;;  %v2441_v8 = vld [vmem:[#allocation9 + $0x6a0] sm:$0xff] }
 0x28d   : > { %5630 = vmatpush1.bf16.msra.mxu1 %v5629_v14  ;;  %v2657_v14 = vld [vmem:[#allocation9 + $0xd60] sm:$0xff]  ;;  %v5649_v50 = vpack.c.bf16 %v2642_v10, %v2635_v13  ;;  %v5803_v22 = vpack.c.bf16 %v2407_v18, %v2400_v17  ;;  %v2706_v5 = vld [vmem:[#allocation9 + $0xee8] sm:$0xff]  ;;  %v2456_v10 = vld [vmem:[#allocation9 + $0x718] sm:$0xff] }
 0x28e   : > { %5632 = vmatprep.subr.bf16.mxu1 %v5631_v16  ;;  %v2392_v16 = vld [vmem:[#allocation9 + $0x518] sm:$0xff]  ;;  %v2727_v18 = vld [vmem:[#allocation9 + $0xf90] sm:$0xff] }
 0x28f   : > { %5782 = vmatpush1.bf16.msra.mxu0 %v5781_v19  ;;  %v5651_v19 = vpack.c.bf16 %v2657_v14, %v2650_v12  ;;  %v5801_v21 = vpack.c.bf16 %v2392_v16, %v2385_v15  ;;  %v5665_v12 = vpack.c.bf16 %v2698_v2, %v2691_v0  ;;  %v2705_v15 = vld [vmem:[#allocation9 + $0xee0] sm:$0xff]  ;;  %v2712_v16 = vld [vmem:[#allocation9 + $0xf18] sm:$0xff]  ;;  %v2519_v2 = vld [vmem:[#allocation9 + $0x910] sm:$0xff] }
 0x290   : > { %5784 = vmatprep.subr.bf16.mxu0 %v5783_v23  ;;  %v2664_v23 = vld [vmem:[#allocation9 + $0xd98] sm:$0xff] }
 0x291   : > { %5634 = vmatpush1.bf16.msra.mxu1 %v5633_v25  ;;  %v2399_v25 = vld [vmem:[#allocation9 + $0x550] sm:$0xff]  ;;  %v5655_v30 = vpack.c.bf16 %v2671_v24, %v2664_v23  ;;  %v2720_v17 = vld [vmem:[#allocation9 + $0xf58] sm:$0xff]  ;;  %v2477_v23 = vld [vmem:[#allocation9 + $0x7c0] sm:$0xff]  ;;  %v5669_v24 = vpack.c.bf16 %v2712_v16, %v2705_v15 }
 0x292   : > { %5636 = vmatprep.subr.bf16.mxu1 %v5635_v28  ;;  %v2414_v28 = vld [vmem:[#allocation9 + $0x5c8] sm:$0xff]  ;;  %v5805_v34 = vpack.c.bf16 %v2406_v26, %v2399_v25  ;;  %v5821_v26 = vpack.c.bf16 %v2462_v41, %v2455_v20  ;;  %v2512_v0 = vld [vmem:[#allocation9 + $0x8d8] sm:$0xff]  ;;  %v2797_v20 = vld [vmem:[#allocation9 + $0x11c0] sm:$0xff] }
 0x293   : > { %5786 = vmatpush1.bf16.msra.mxu0 %v5785_v31  ;;  %v2663_v31 = vld [vmem:[#allocation9 + $0xd90] sm:$0xff]  ;;  %v5807_v39 = vpack.c.bf16 %v2421_v29, %v2414_v28  ;;  %v2726_v25 = vld [vmem:[#allocation9 + $0xf88] sm:$0xff]  ;;  %v2741_v28 = vld [vmem:[#allocation9 + $0x1000] sm:$0xff] }
 0x294   : > { %5788 = vmatprep.subr.bf16.mxu0 %v5787_v35  ;;  %v2678_v35 = vld [vmem:[#allocation9 + $0xe08] sm:$0xff]  ;;  %v5657_v45 = vpack.c.bf16 %v2670_v33, %v2663_v31  ;;  %v2476_v31 = vld [vmem:[#allocation9 + $0x7b8] sm:$0xff] }
 0x295   : > { %5638 = vmatpush1.bf16.msra.mxu1 %v5637_v42  ;;  %v2413_v42 = vld [vmem:[#allocation9 + $0x5c0] sm:$0xff]  ;;  %v5659_v48 = vpack.c.bf16 %v2685_v38, %v2678_v35  ;;  %v2484_v33 = vld [vmem:[#allocation9 + $0x7f8] sm:$0xff] }
 0x296   : > { %5640 = vmatprep.subr.bf16.mxu1 %v5639_v46  ;;  %v2428_v46 = vld [vmem:[#allocation9 + $0x638] sm:$0xff]  ;;  %v5809_v53 = vpack.c.bf16 %v2420_v44, %v2413_v42 }
 0x297   : > { %5790 = vmatpush1.bf16.msra.mxu0 %v5789_v49  ;;  %v2677_v49 = vld [vmem:[#allocation9 + $0xe00] sm:$0xff]  ;;  %v5811_v56 = vpack.c.bf16 %v2435_v47, %v2428_v46  ;;  %v2740_v42 = vld [vmem:[#allocation9 + $0xff8] sm:$0xff]  ;;  %v2755_v46 = vld [vmem:[#allocation9 + $0x1070] sm:$0xff] }
 0x298   : > { %5792 = vmatprep.subr.bf16.mxu0 %v5791_v54  ;;  %v2692_v54 = vld [vmem:[#allocation9 + $0xe78] sm:$0xff]  ;;  %v5661_v62 = vpack.c.bf16 %v2684_v52, %v2677_v49  ;;  %v2490_v49 = vld [vmem:[#allocation9 + $0x828] sm:$0xff] }
 0x299   : > { %5642 = vmatpush1.bf16.msra.mxu1 %v5641_v57  ;;  %v2427_v57 = vld [vmem:[#allocation9 + $0x630] sm:$0xff]  ;;  %v2498_v52 = vld [vmem:[#allocation9 + $0x868] sm:$0xff] }
 0x29a   : > { %5644 = vmatprep.subr.bf16.mxu1 %v5643_v61  ;;  %v2449_v61 = vld [vmem:[#allocation9 + $0x6e0] sm:$0xff] }
 0x29b   : > { %5794 = vmatpush1.bf16.msra.mxu0 %v5793_v60  ;;  %v5663_v60 = vpack.c.bf16 %v2699_v55, %v2692_v54  ;;  %v5815_v7 = vpack.c.bf16 %v2449_v61, %v2442_v59  ;;  %v2762_v59 = vld [vmem:[#allocation9 + $0x10a8] sm:$0xff]  ;;  %v2769_v61 = vld [vmem:[#allocation9 + $0x10e0] sm:$0xff] }
 0x29c   : > { %5796 = vmatprep.subr.bf16.mxu0 %v5795_v3  ;;  %v5813_v3 = vpack.c.bf16 %v2434_v58, %v2427_v57  ;;  %v2754_v57 = vld [vmem:[#allocation9 + $0x1068] sm:$0xff] }
 0x29d   : > { %5646 = vmatpush1.bf16.msra.mxu1 %v5645_v6  ;;  %v2713_v6 = vld [vmem:[#allocation9 + $0xf20] sm:$0xff] }
 0x29e   : > { %5648 = vmatprep.subr.bf16.mxu1 %v5647_v9  ;;  %v2448_v9 = vld [vmem:[#allocation9 + $0x6d8] sm:$0xff] }
 0x29f   : > { %5798 = vmatpush1.bf16.msra.mxu0 %v5797_v11  ;;  %v2463_v11 = vld [vmem:[#allocation9 + $0x750] sm:$0xff] }
 0x2a0   : > { %5800 = vmatprep.subr.bf16.mxu0 %v5799_v40  ;;  %v5667_v40 = vpack.c.bf16 %v2713_v6, %v2706_v5  ;;  %v2761_v5 = vld [vmem:[#allocation9 + $0x10a0] sm:$0xff]  ;;  %v2768_v6 = vld [vmem:[#allocation9 + $0x10d8] sm:$0xff] }
 0x2a1   : > { %5650 = vmatpush1.bf16.msra.mxu1 %v5649_v50  ;;  %v5817_v50 = vpack.c.bf16 %v2448_v9, %v2441_v8  ;;  %v2776_v8 = vld [vmem:[#allocation9 + $0x1118] sm:$0xff]  ;;  %v2783_v9 = vld [vmem:[#allocation9 + $0x1150] sm:$0xff]  ;;  %v5685_v15 = vpack.c.bf16 %v2768_v6, %v2761_v5  ;;  %v2574_v6 = vld [vmem:[#allocation9 + $0xac8] sm:$0xff] }
 0x2a2   : > { %5652 = vmatprep.subr.bf16.mxu1 %v5651_v19  ;;  %v5819_v19 = vpack.c.bf16 %v2463_v11, %v2456_v10  ;;  %v2511_v10 = vld [vmem:[#allocation9 + $0x8d0] sm:$0xff]  ;;  %v2518_v11 = vld [vmem:[#allocation9 + $0x908] sm:$0xff]  ;;  %v5687_v16 = vpack.c.bf16 %v2783_v9, %v2776_v8  ;;  %v2589_v8 = vld [vmem:[#allocation9 + $0xb40] sm:$0xff] }
 0x2a3   : > { %5802 = vmatpush1.bf16.msra.mxu0 %v5801_v21  ;;  %v2470_v21 = vld [vmem:[#allocation9 + $0x788] sm:$0xff]  ;;  %v2567_v5 = vld [vmem:[#allocation9 + $0xa90] sm:$0xff] }
 0x2a4   : > { %5804 = vmatprep.subr.bf16.mxu0 %v5803_v22  ;;  %v5671_v22 = vpack.c.bf16 %v2727_v18, %v2720_v17  ;;  %v5823_v29 = vpack.c.bf16 %v2477_v23, %v2470_v21  ;;  %v2782_v17 = vld [vmem:[#allocation9 + $0x1148] sm:$0xff]  ;;  %v5837_v18 = vpack.c.bf16 %v2518_v11, %v2511_v10  ;;  %v2525_v21 = vld [vmem:[#allocation9 + $0x940] sm:$0xff]  ;;  %v2532_v23 = vld [vmem:[#allocation9 + $0x978] sm:$0xff]  ;;  %v5853_v11 = vpack.c.bf16 %v2574_v6, %v2567_v5 }
 0x2a5   : > { %5654 = vmatpush1.bf16.msra.mxu1 %v5653_v27  ;;  %v2734_v27 = vld [vmem:[#allocation9 + $0xfc8] sm:$0xff]  ;;  %v2909_v5 = vld [vmem:[#allocation9 + $0x1540] sm:$0xff] }
 0x2a6   : > { %5656 = vmatprep.subr.bf16.mxu1 %v5655_v30  ;;  %v2469_v30 = vld [vmem:[#allocation9 + $0x780] sm:$0xff]  ;;  %v5675_v38 = vpack.c.bf16 %v2741_v28, %v2734_v27  ;;  %v2796_v27 = vld [vmem:[#allocation9 + $0x11b8] sm:$0xff]  ;;  %v5841_v28 = vpack.c.bf16 %v2532_v23, %v2525_v21  ;;  %v2838_v10 = vld [vmem:[#allocation9 + $0x1308] sm:$0xff] }
 0x2a7   : > { %5806 = vmatpush1.bf16.msra.mxu0 %v5805_v34  ;;  %v2491_v34 = vld [vmem:[#allocation9 + $0x830] sm:$0xff]  ;;  %v5825_v44 = vpack.c.bf16 %v2476_v31, %v2469_v30  ;;  %v2852_v21 = vld [vmem:[#allocation9 + $0x1378] sm:$0xff] }
 0x2a8   : > { %5808 = vmatprep.subr.bf16.mxu0 %v5807_v39  ;;  %v2733_v39 = vld [vmem:[#allocation9 + $0xfc0] sm:$0xff]  ;;  %v5827_v47 = vpack.c.bf16 %v2491_v34, %v2484_v33  ;;  %v2811_v30 = vld [vmem:[#allocation9 + $0x1230] sm:$0xff]  ;;  %v2546_v34 = vld [vmem:[#allocation9 + $0x9e8] sm:$0xff] }
 0x2a9   : > { %5658 = vmatpush1.bf16.msra.mxu1 %v5657_v45  ;;  %v2748_v45 = vld [vmem:[#allocation9 + $0x1038] sm:$0xff]  ;;  %v5677_v54 = vpack.c.bf16 %v2740_v42, %v2733_v39  ;;  %v2539_v33 = vld [vmem:[#allocation9 + $0x9b0] sm:$0xff] }
 0x2aa   : > { %v4492_v63 = vpop.f32.mrb[4].mxu1  ;;  %5660 = vmatprep.subr.bf16.mxu1 %v5659_v48  ;;  %v2483_v48 = vld [vmem:[#allocation9 + $0x7f0] sm:$0xff]  ;;  %v5679_v55 = vpack.c.bf16 %v2755_v46, %v2748_v45  ;;  %v2810_v46 = vld [vmem:[#allocation9 + $0x1228] sm:$0xff] }
 0x2ab   : > { %5810 = vmatpush1.bf16.msra.mxu0 %v5809_v53  ;;  %v4493_v4 = vpop.f32.mrb[5].mxu1  ;;  %v2505_v53 = vld [vmem:[#allocation9 + $0x8a0] sm:$0xff]  ;;  %v5829_v58 = vpack.c.bf16 %v2490_v49, %v2483_v48  ;;  %v2803_v45 = vld [vmem:[#allocation9 + $0x11f0] sm:$0xff]  ;;  %v2818_v49 = vld [vmem:[#allocation9 + $0x1268] sm:$0xff] }
 0x2ac   : > { %3149 = vmatmul.mubr.f32.vlgmr.msra.gmra.mrb[10].mxu1 %v7161_v36  ;;  %5812 = vmatprep.subr.bf16.mxu0 %v5811_v56  ;;  %v4494_v13 = vadd.f32 %v4493_v4, %v4492_v63  ;;  %v2747_v56 = vld [vmem:[#allocation9 + $0x1030] sm:$0xff]  ;;  %v2497_v63 = vld [vmem:[#allocation9 + $0x860] sm:$0xff]  ;;  %v5683_v4 = vpack.c.bf16 %v2769_v61, %v2762_v59  ;;  %v5697_v59 = vpack.c.bf16 %v2810_v46, %v2803_v45  ;;  %v2624_v45 = vld [vmem:[#allocation9 + $0xc58] sm:$0xff] }
 0x2ad   : > { %5662 = vmatpush1.bf16.msra.mxu1 %v5661_v62  ;;  %v5831_v62 = vpack.c.bf16 %v2505_v53, %v2498_v52  ;;  %v2825_v52 = vld [vmem:[#allocation9 + $0x12a0] sm:$0xff]  ;;  %v2631_v46 = vld [vmem:[#allocation9 + $0xc90] sm:$0xff] }
 0x2ae   : > { %v7176_v14 = vadd.f32 %v4494_v13, %v7172_v1  ;;  %5664 = vmatprep.subr.bf16.mxu1 %v5663_v60  ;;  %v2719_v1 = vld [vmem:[#allocation9 + $0xf50] sm:$0xff]  ;;  %v2504_v60 = vld [vmem:[#allocation9 + $0x898] sm:$0xff]  ;;  %v5835_v13 = vpack.c.bf16 %v2519_v2, %v2512_v0 }
 0x2af   : > { %5814 = vmatpush1.bf16.msra.mxu0 %v5813_v3  ;;  %v5673_v35 = vpack.c.bf16 %v2726_v25, %v2719_v1  ;;  %v5681_v3 = vpack.c.bf16 %v2754_v57, %v2747_v56  ;;  %v2568_v57 = vld [vmem:[#allocation9 + $0xa98] sm:$0xff] }
 0x2b0   : > { %5816 = vmatprep.subr.bf16.mxu0 %v5815_v7  ;;  %v5833_v7 = vpack.c.bf16 %v2504_v60, %v2497_v63  ;;  %v2817_v63 = vld [vmem:[#allocation9 + $0x1260] sm:$0xff]  ;;  %v2824_v60 = vld [vmem:[#allocation9 + $0x1298] sm:$0xff] }
 0x2b1   : > { %5666 = vmatpush1.bf16.msra.mxu1 %v5665_v12  ;;  %v2526_v12 = vld [vmem:[#allocation9 + $0x948] sm:$0xff]  ;;  %v2832_v2 = vld [vmem:[#allocation9 + $0x12d8] sm:$0xff]  ;;  %v5701_v9 = vpack.c.bf16 %v2824_v60, %v2817_v63 }
 0x2b2   : > { %5668 = vmatprep.subr.bf16.mxu1 %v5667_v40  ;;  %v2533_v40 = vld [vmem:[#allocation9 + $0x980] sm:$0xff] }
 0x2b3   : > { %5818 = vmatpush1.bf16.msra.mxu0 %v5817_v50  ;;  %v2775_v50 = vld [vmem:[#allocation9 + $0x1110] sm:$0xff]  ;;  %v5839_v41 = vpack.c.bf16 %v2533_v40, %v2526_v12  ;;  %v2846_v12 = vld [vmem:[#allocation9 + $0x1348] sm:$0xff]  ;;  %v2853_v40 = vld [vmem:[#allocation9 + $0x1380] sm:$0xff] }
 0x2b4   : > { %5820 = vmatprep.subr.bf16.mxu0 %v5819_v19  ;;  %v2790_v19 = vld [vmem:[#allocation9 + $0x1188] sm:$0xff]  ;;  %v5689_v1 = vpack.c.bf16 %v2782_v17, %v2775_v50  ;;  %v2588_v50 = vld [vmem:[#allocation9 + $0xb38] sm:$0xff] }
 0x2b5   : > { %5670 = vmatpush1.bf16.msra.mxu1 %v5669_v24  ;;  %v2540_v24 = vld [vmem:[#allocation9 + $0x9b8] sm:$0xff]  ;;  %v5691_v25 = vpack.c.bf16 %v2797_v20, %v2790_v19  ;;  %v5707_v20 = vpack.c.bf16 %v2853_v40, %v2846_v12  ;;  %v2651_v40 = vld [vmem:[#allocation9 + $0xd30] sm:$0xff] }
 0x2b6   : > { %3362 = vmatmul.mubr.f32.vlgmr.msra.gmra.mrb[4].mxu0 %v7159_v32  ;;  %5672 = vmatprep.subr.bf16.mxu1 %v5671_v22  ;;  %v2547_v22 = vld [vmem:[#allocation9 + $0x9f0] sm:$0xff]  ;;  %v2596_v17 = vld [vmem:[#allocation9 + $0xb78] sm:$0xff] }
 0x2b7   : > { %5822 = vmatpush1.bf16.msra.mxu0 %v5821_v26  ;;  %3432 = vmatprep.mubr.f32.mxu0 %v7165_v43  ;;  %v2789_v26 = vld [vmem:[#allocation9 + $0x1180] sm:$0xff]  ;;  %v5843_v31 = vpack.c.bf16 %v2547_v22, %v2540_v24  ;;  %v2860_v24 = vld [vmem:[#allocation9 + $0x13b8] sm:$0xff]  ;;  %v2867_v22 = vld [vmem:[#allocation9 + $0x13f0] sm:$0xff] }
 0x2b8   : > { %5824 = vmatprep.subr.bf16.mxu0 %v5823_v29  ;;  %v2804_v29 = vld [vmem:[#allocation9 + $0x11f8] sm:$0xff]  ;;  %v5693_v39 = vpack.c.bf16 %v2796_v27, %v2789_v26  ;;  %v2602_v26 = vld [vmem:[#allocation9 + $0xba8] sm:$0xff] }
 0x2b9   : > { %5674 = vmatpush1.bf16.msra.mxu1 %v5673_v35  ;;  %v2554_v35 = vld [vmem:[#allocation9 + $0xa28] sm:$0xff] }
 0x2ba   : > { %5676 = vmatprep.subr.bf16.mxu1 %v5675_v38  ;;  %v2561_v38 = vld [vmem:[#allocation9 + $0xa60] sm:$0xff]  ;;  %v2610_v27 = vld [vmem:[#allocation9 + $0xbe8] sm:$0xff] }
 0x2bb   : > { %5826 = vmatpush1.bf16.msra.mxu0 %v5825_v44  ;;  %v5695_v44 = vpack.c.bf16 %v2811_v30, %v2804_v29  ;;  %v5847_v53 = vpack.c.bf16 %v2561_v38, %v2554_v35  ;;  %v5711_v30 = vpack.c.bf16 %v2867_v22, %v2860_v24  ;;  %v2874_v35 = vld [vmem:[#allocation9 + $0x1428] sm:$0xff]  ;;  %v2881_v38 = vld [vmem:[#allocation9 + $0x1460] sm:$0xff]  ;;  %v2680_v24 = vld [vmem:[#allocation9 + $0xe18] sm:$0xff] }
 0x2bc   : > { %5828 = vmatprep.subr.bf16.mxu0 %v5827_v47  ;;  %v5845_v47 = vpack.c.bf16 %v2546_v34, %v2539_v33  ;;  %v2866_v33 = vld [vmem:[#allocation9 + $0x13e8] sm:$0xff]  ;;  %v2687_v22 = vld [vmem:[#allocation9 + $0xe50] sm:$0xff] }
 0x2bd   : > { %5678 = vmatpush1.bf16.msra.mxu1 %v5677_v54  ;;  %v2553_v54 = vld [vmem:[#allocation9 + $0xa20] sm:$0xff] }
 0x2be   : > { %5680 = vmatprep.subr.bf16.mxu1 %v5679_v55  ;;  %v2560_v55 = vld [vmem:[#allocation9 + $0xa58] sm:$0xff] }
 0x2bf   : > { %5830 = vmatpush1.bf16.msra.mxu0 %v5829_v58  ;;  %v2575_v58 = vld [vmem:[#allocation9 + $0xad0] sm:$0xff]  ;;  %v5849_v0 = vpack.c.bf16 %v2560_v55, %v2553_v54  ;;  %v2888_v54 = vld [vmem:[#allocation9 + $0x1498] sm:$0xff] }
 0x2c0   : > { %5832 = vmatprep.subr.bf16.mxu0 %v5831_v62  ;;  %v5699_v62 = vpack.c.bf16 %v2825_v52, %v2818_v49  ;;  %v2873_v49 = vld [vmem:[#allocation9 + $0x1420] sm:$0xff]  ;;  %v2880_v52 = vld [vmem:[#allocation9 + $0x1458] sm:$0xff]  ;;  %v2895_v55 = vld [vmem:[#allocation9 + $0x14d0] sm:$0xff] }
 0x2c1   : > { %5682 = vmatpush1.bf16.msra.mxu1 %v5681_v3  ;;  %v2839_v3 = vld [vmem:[#allocation9 + $0x1310] sm:$0xff]  ;;  %v5717_v63 = vpack.c.bf16 %v2880_v52, %v2873_v49  ;;  %v5719_v60 = vpack.c.bf16 %v2895_v55, %v2888_v54  ;;  %v2721_v49 = vld [vmem:[#allocation9 + $0xf60] sm:$0xff]  ;;  %v2728_v52 = vld [vmem:[#allocation9 + $0xf98] sm:$0xff] }
 0x2c2   : > { %5684 = vmatprep.subr.bf16.mxu1 %v5683_v4  ;;  %v5851_v4 = vpack.c.bf16 %v2575_v58, %v2568_v57  ;;  %v2623_v57 = vld [vmem:[#allocation9 + $0xc50] sm:$0xff]  ;;  %v2630_v58 = vld [vmem:[#allocation9 + $0xc88] sm:$0xff]  ;;  %v5897_v55 = vpack.c.bf16 %v2728_v52, %v2721_v49 }
 0x2c3   : > { %5834 = vmatpush1.bf16.msra.mxu0 %v5833_v7  ;;  %v2582_v7 = vld [vmem:[#allocation9 + $0xb08] sm:$0xff]  ;;  %v2743_v54 = vld [vmem:[#allocation9 + $0x1010] sm:$0xff] }
 0x2c4   : > { %5836 = vmatprep.subr.bf16.mxu0 %v5835_v13  ;;  %v5703_v13 = vpack.c.bf16 %v2839_v3, %v2832_v2  ;;  %v2894_v2 = vld [vmem:[#allocation9 + $0x14c8] sm:$0xff]  ;;  %v5869_v3 = vpack.c.bf16 %v2630_v58, %v2623_v57  ;;  %v2735_v57 = vld [vmem:[#allocation9 + $0xfd0] sm:$0xff] }
 0x2c5   : > { %5686 = vmatpush1.bf16.msra.mxu1 %v5685_v15  ;;  %v5855_v15 = vpack.c.bf16 %v2589_v8, %v2582_v7  ;;  %v2637_v7 = vld [vmem:[#allocation9 + $0xcc0] sm:$0xff]  ;;  %v2644_v8 = vld [vmem:[#allocation9 + $0xcf8] sm:$0xff]  ;;  %v2742_v58 = vld [vmem:[#allocation9 + $0x1008] sm:$0xff] }
 0x2c6   : > { %5688 = vmatprep.subr.bf16.mxu1 %v5687_v16  ;;  %v2581_v16 = vld [vmem:[#allocation9 + $0xb00] sm:$0xff] }
 0x2c7   : > { %5838 = vmatpush1.bf16.msra.mxu0 %v5837_v18  ;;  %v2603_v18 = vld [vmem:[#allocation9 + $0xbb0] sm:$0xff]  ;;  %v5857_v23 = vpack.c.bf16 %v2588_v50, %v2581_v16  ;;  %v2666_v16 = vld [vmem:[#allocation9 + $0xda8] sm:$0xff]  ;;  %v2673_v50 = vld [vmem:[#allocation9 + $0xde0] sm:$0xff] }
 0x2c8   : > { %5840 = vmatprep.subr.bf16.mxu0 %v5839_v41  ;;  %v2845_v41 = vld [vmem:[#allocation9 + $0x1340] sm:$0xff] }
 0x2c9   : > { %5690 = vmatpush1.bf16.msra.mxu1 %v5689_v1  ;;  %v5859_v1 = vpack.c.bf16 %v2603_v18, %v2596_v17  ;;  %v5709_v29 = vpack.c.bf16 %v2852_v21, %v2845_v41  ;;  %v5879_v41 = vpack.c.bf16 %v2673_v50, %v2666_v16  ;;  %v2665_v21 = vld [vmem:[#allocation9 + $0xda0] sm:$0xff] }
 0x2ca   : > { %v4527_v42 = vpop.f32.mrb[6].mxu1  ;;  %5692 = vmatprep.subr.bf16.mxu1 %v5691_v25  ;;  %v2595_v25 = vld [vmem:[#allocation9 + $0xb70] sm:$0xff] }
 0x2cb   : > { %5842 = vmatpush1.bf16.msra.mxu0 %v5841_v28  ;;  %v4528_v48 = vpop.f32.mrb[7].mxu1  ;;  %v2617_v28 = vld [vmem:[#allocation9 + $0xc20] sm:$0xff]  ;;  %v5861_v34 = vpack.c.bf16 %v2602_v26, %v2595_v25  ;;  %v5883_v25 = vpack.c.bf16 %v2687_v22, %v2680_v24  ;;  %v2679_v26 = vld [vmem:[#allocation9 + $0xe10] sm:$0xff]  ;;  %v2812_v22 = vld [vmem:[#allocation9 + $0x1238] sm:$0xff] }
 0x2cc   : > { %5844 = vmatprep.subr.bf16.mxu0 %v5843_v31  ;;  %v4529_v56 = vadd.f32 %v4528_v48, %v4527_v42  ;;  %v2859_v31 = vld [vmem:[#allocation9 + $0x13b0] sm:$0xff]  ;;  %v2609_v42 = vld [vmem:[#allocation9 + $0xbe0] sm:$0xff]  ;;  %v5715_v48 = vpack.c.bf16 %v2881_v38, %v2874_v35 }
 0x2cd   : > { %5694 = vmatpush1.bf16.msra.mxu1 %v5693_v39  ;;  %v5863_v39 = vpack.c.bf16 %v2617_v28, %v2610_v27  ;;  %v2686_v27 = vld [vmem:[#allocation9 + $0xe48] sm:$0xff]  ;;  %v2715_v35 = vld [vmem:[#allocation9 + $0xf30] sm:$0xff]  ;;  %v2805_v24 = vld [vmem:[#allocation9 + $0x1200] sm:$0xff] }
 0x2ce   : > { %v7181_v61 = vadd.f32 %v4529_v56, %v7176_v14  ;;  %5696 = vmatprep.subr.bf16.mxu1 %v5695_v44  ;;  %v2831_v14 = vld [vmem:[#allocation9 + $0x12d0] sm:$0xff]  ;;  %v2616_v44 = vld [vmem:[#allocation9 + $0xc18] sm:$0xff]  ;;  %v5867_v56 = vpack.c.bf16 %v2631_v46, %v2624_v45  ;;  %v2694_v28 = vld [vmem:[#allocation9 + $0xe88] sm:$0xff] }
 0x2cf   : > { %5846 = vmatpush1.bf16.msra.mxu0 %v5845_v47  ;;  %v5705_v19 = vpack.c.bf16 %v2838_v10, %v2831_v14  ;;  %v5713_v47 = vpack.c.bf16 %v2866_v33, %v2859_v31  ;;  %v2693_v31 = vld [vmem:[#allocation9 + $0xe80] sm:$0xff]  ;;  %v2700_v33 = vld [vmem:[#allocation9 + $0xeb8] sm:$0xff]  ;;  %v2722_v45 = vld [vmem:[#allocation9 + $0xf68] sm:$0xff] }
 0x2d0   : > { %5848 = vmatprep.subr.bf16.mxu0 %v5847_v53  ;;  %v5865_v53 = vpack.c.bf16 %v2616_v44, %v2609_v42  ;;  %v5889_v38 = vpack.c.bf16 %v2700_v33, %v2693_v31  ;;  %v2707_v42 = vld [vmem:[#allocation9 + $0xef0] sm:$0xff]  ;;  %v2714_v44 = vld [vmem:[#allocation9 + $0xf28] sm:$0xff]  ;;  %v2729_v46 = vld [vmem:[#allocation9 + $0xfa0] sm:$0xff] }
 0x2d1   : > { %5698 = vmatpush1.bf16.msra.mxu1 %v5697_v59  ;;  %v2638_v59 = vld [vmem:[#allocation9 + $0xcc8] sm:$0xff] }
 0x2d2   : > { %5700 = vmatprep.subr.bf16.mxu1 %v5699_v62  ;;  %v2645_v62 = vld [vmem:[#allocation9 + $0xd00] sm:$0xff] }
 0x2d3   : > { %5850 = vmatpush1.bf16.msra.mxu0 %v5849_v0  ;;  %v2887_v0 = vld [vmem:[#allocation9 + $0x1490] sm:$0xff]  ;;  %v5871_v6 = vpack.c.bf16 %v2645_v62, %v2638_v59  ;;  %v2750_v59 = vld [vmem:[#allocation9 + $0x1048] sm:$0xff]  ;;  %v2757_v62 = vld [vmem:[#allocation9 + $0x1080] sm:$0xff] }
 0x2d4   : > { %5852 = vmatprep.subr.bf16.mxu0 %v5851_v4  ;;  %v2902_v4 = vld [vmem:[#allocation9 + $0x1508] sm:$0xff]  ;;  %v5721_v14 = vpack.c.bf16 %v2894_v2, %v2887_v0  ;;  %v2749_v0 = vld [vmem:[#allocation9 + $0x1040] sm:$0xff]  ;;  %v2756_v2 = vld [vmem:[#allocation9 + $0x1078] sm:$0xff] }
 0x2d5   : > { %5702 = vmatpush1.bf16.msra.mxu1 %v5701_v9  ;;  %v2652_v9 = vld [vmem:[#allocation9 + $0xd38] sm:$0xff]  ;;  %v5723_v10 = vpack.c.bf16 %v2909_v5, %v2902_v4  ;;  %v2771_v4 = vld [vmem:[#allocation9 + $0x10f0] sm:$0xff]  ;;  %v5905_v5 = vpack.c.bf16 %v2756_v2, %v2749_v0 }
 0x2d6   : > { %5704 = vmatprep.subr.bf16.mxu1 %v5703_v13  ;;  %v2659_v13 = vld [vmem:[#allocation9 + $0xd70] sm:$0xff] }
 0x2d7   : > { %5854 = vmatpush1.bf16.msra.mxu0 %v5853_v11  ;;  %v5873_v11 = vpack.c.bf16 %v2644_v8, %v2637_v7  ;;  %v5875_v12 = vpack.c.bf16 %v2659_v13, %v2652_v9  ;;  %v2763_v7 = vld [vmem:[#allocation9 + $0x10b0] sm:$0xff]  ;;  %v2770_v8 = vld [vmem:[#allocation9 + $0x10e8] sm:$0xff]  ;;  %v2785_v13 = vld [vmem:[#allocation9 + $0x1160] sm:$0xff] }
 0x2d8   : > { %5856 = vmatprep.subr.bf16.mxu0 %v5855_v15  ;;  %v2658_v15 = vld [vmem:[#allocation9 + $0xd68] sm:$0xff] }
 0x2d9   : > { %5706 = vmatpush1.bf16.msra.mxu1 %v5705_v19  ;;  %v5877_v18 = vpack.c.bf16 %v2658_v15, %v2651_v40  ;;  %v2778_v9 = vld [vmem:[#allocation9 + $0x1128] sm:$0xff]  ;;  %v2792_v40 = vld [vmem:[#allocation9 + $0x1198] sm:$0xff]  ;;  %v2799_v15 = vld [vmem:[#allocation9 + $0x11d0] sm:$0xff] }
 0x2da   : > { %5708 = vmatprep.subr.bf16.mxu1 %v5707_v20  ;;  %v5915_v50 = vpack.c.bf16 %v2799_v15, %v2792_v40  ;;  %v2918_v40 = vld [vmem:[#allocation9 + $0x1588] sm:$0xff]  ;;  %v2925_v15 = vld [vmem:[#allocation9 + $0x15c0] sm:$0xff] }
 0x2db   : > { %5858 = vmatpush1.bf16.msra.mxu0 %v5857_v23  ;;  %v2672_v23 = vld [vmem:[#allocation9 + $0xdd8] sm:$0xff] }
 0x2dc   : > { %5860 = vmatprep.subr.bf16.mxu0 %v5859_v1  ;;  %v5881_v1 = vpack.c.bf16 %v2672_v23, %v2665_v21 }
 0x2dd   : > { %5710 = vmatpush1.bf16.msra.mxu1 %v5709_v29  ;;  %v2701_v29 = vld [vmem:[#allocation9 + $0xec0] sm:$0xff] }
 0x2de   : > { %5712 = vmatprep.subr.bf16.mxu1 %v5711_v30  ;;  %v5885_v30 = vpack.c.bf16 %v2686_v27, %v2679_v26  ;;  %v5921_v26 = vpack.c.bf16 %v2812_v22, %v2805_v24  ;;  %v2917_v24 = vld [vmem:[#allocation9 + $0x1580] sm:$0xff]  ;;  %v2924_v22 = vld [vmem:[#allocation9 + $0x15b8] sm:$0xff] }
 0x2df   : > { %5862 = vmatpush1.bf16.msra.mxu0 %v5861_v34  ;;  %v2708_v34 = vld [vmem:[#allocation9 + $0xef8] sm:$0xff] }
 0x2e0   : > { %5864 = vmatprep.subr.bf16.mxu0 %v5863_v39  ;;  %v5891_v39 = vpack.c.bf16 %v2715_v35, %v2708_v34  ;;  %v2833_v34 = vld [vmem:[#allocation9 + $0x12e0] sm:$0xff]  ;;  %v2840_v35 = vld [vmem:[#allocation9 + $0x1318] sm:$0xff] }
 0x2e1   : > { %5714 = vmatpush1.bf16.msra.mxu1 %v5713_v47  ;;  %v5893_v47 = vpack.c.bf16 %v2714_v44, %v2707_v42  ;;  %v5929_v42 = vpack.c.bf16 %v2840_v35, %v2833_v34  ;;  %v2931_v34 = vld [vmem:[#allocation9 + $0x15f0] sm:$0xff]  ;;  %v2938_v35 = vld [vmem:[#allocation9 + $0x1628] sm:$0xff] }
 0x2e2   : > { %5716 = vmatprep.subr.bf16.mxu1 %v5715_v48  ;;  %v5895_v48 = vpack.c.bf16 %v2729_v46, %v2722_v45  ;;  %v2847_v45 = vld [vmem:[#allocation9 + $0x1350] sm:$0xff]  ;;  %v2854_v46 = vld [vmem:[#allocation9 + $0x1388] sm:$0xff] }
 0x2e3   : > { %5866 = vmatpush1.bf16.msra.mxu0 %v5865_v53  ;;  %v2736_v53 = vld [vmem:[#allocation9 + $0xfd8] sm:$0xff]  ;;  %v5933_v49 = vpack.c.bf16 %v2854_v46, %v2847_v45  ;;  %v7195_v45 = vld [vmem:[#allocation2 + $0x10] sm:$0xff] }
 0x2e4   : > { %5868 = vmatprep.subr.bf16.mxu0 %v5867_v56  ;;  %v5899_v56 = vpack.c.bf16 %v2743_v54, %v2736_v53  ;;  %v2861_v53 = vld [vmem:[#allocation9 + $0x13c0] sm:$0xff]  ;;  %v2868_v54 = vld [vmem:[#allocation9 + $0x13f8] sm:$0xff]  ;;  %4149 = vst.msk [vmem:[#allocation2 + $0x18] sm:$0xff] %vm4146_vm2, %v7195_v45 }
 0x2e5   : > { %5718 = vmatpush1.bf16.msra.mxu1 %v5717_v63  ;;  %v5901_v63 = vpack.c.bf16 %v2742_v58, %v2735_v57  ;;  %v5937_v57 = vpack.c.bf16 %v2868_v54, %v2861_v53  ;;  %v2945_v54 = vld [vmem:[#allocation9 + $0x1660] sm:$0xff] }
 0x2e6   : > { %5720 = vmatprep.subr.bf16.mxu1 %v5719_v60  ;;  %v5903_v60 = vpack.c.bf16 %v2757_v62, %v2750_v59  ;;  %v2875_v59 = vld [vmem:[#allocation9 + $0x1430] sm:$0xff]  ;;  %v2882_v62 = vld [vmem:[#allocation9 + $0x1468] sm:$0xff] }
 0x2e7   : > { %5870 = vmatpush1.bf16.msra.mxu0 %v5869_v3  ;;  %v2764_v3 = vld [vmem:[#allocation9 + $0x10b8] sm:$0xff]  ;;  %v5941_v0 = vpack.c.bf16 %v2882_v62, %v2875_v59  ;;  %v2967_v59 = vld [vmem:[#allocation9 + $0x1710] sm:$0xff] }
 0x2e8   : > { %5872 = vmatprep.subr.bf16.mxu0 %v5871_v6  ;;  %v5907_v6 = vpack.c.bf16 %v2771_v4, %v2764_v3  ;;  %v2889_v3 = vld [vmem:[#allocation9 + $0x14a0] sm:$0xff]  ;;  %v2896_v4 = vld [vmem:[#allocation9 + $0x14d8] sm:$0xff] }
 0x2e9   : > { %5722 = vmatpush1.bf16.msra.mxu1 %v5721_v14  ;;  %v5909_v14 = vpack.c.bf16 %v2770_v8, %v2763_v7  ;;  %v5945_v7 = vpack.c.bf16 %v2896_v4, %v2889_v3  ;;  %v2959_v4 = vld [vmem:[#allocation9 + $0x16d0] sm:$0xff] }
 0x2ea   : > { %v2225_v17 = vpop.f32.mrb[8].mxu1  ;;  %5724 = vmatprep.subr.bf16.mxu1 %v5723_v10  ;;  %v5911_v10 = vpack.c.bf16 %v2785_v13, %v2778_v9  ;;  %v2901_v9 = vld [vmem:[#allocation9 + $0x1500] sm:$0xff]  ;;  %v2908_v13 = vld [vmem:[#allocation9 + $0x1538] sm:$0xff] }
 0x2eb   : > { %5874 = vmatpush1.bf16.msra.mxu0 %v5873_v11  ;;  %v7184_v19 = vadd.f32 %v2225_v17, %v7181_v61  ;;  %v4703_v20 = vpop.f32.mrb[9].mxu1  ;;  %v5887_v61 = vpack.c.bf16 %v2701_v29, %v2694_v28  ;;  %v2777_v11 = vld [vmem:[#allocation9 + $0x1120] sm:$0xff]  ;;  %v2791_v17 = vld [vmem:[#allocation9 + $0x1190] sm:$0xff]  ;;  %v2826_v29 = vld [vmem:[#allocation9 + $0x12a8] sm:$0xff] }
 0x2ec   : > { %5876 = vmatprep.subr.bf16.mxu0 %v5875_v12  ;;  %v2784_v12 = vld [vmem:[#allocation9 + $0x1158] sm:$0xff]  ;;  %v2806_v20 = vld [vmem:[#allocation9 + $0x1208] sm:$0xff]  ;;  %v2819_v28 = vld [vmem:[#allocation9 + $0x1270] sm:$0xff] }
 0x2ed   : > { %v5913_v16 = vpack.c.bf16 %v2784_v12, %v2777_v11  ;;  %v5925_v31 = vpack.c.bf16 %v2826_v29, %v2819_v28  ;;  %v2916_v11 = vld [vmem:[#allocation9 + $0x1578] sm:$0xff]  ;;  %v2923_v12 = vld [vmem:[#allocation9 + $0x15b0] sm:$0xff]  ;;  %v5953_v29 = vpack.c.bf16 %v2924_v22, %v2917_v24  ;;  %v2985_v22 = vld [vmem:[#allocation9 + $0x17a0] sm:$0xff] }
 0x2ef   : > { %5878 = vmatpush1.bf16.msra.mxu0 %v5877_v18  ;;  %v2798_v18 = vld [vmem:[#allocation9 + $0x11c8] sm:$0xff] }
 0x2f0   : > { %5880 = vmatprep.subr.bf16.mxu0 %v5879_v41  ;;  %v2813_v41 = vld [vmem:[#allocation9 + $0x1240] sm:$0xff]  ;;  %v5917_v21 = vpack.c.bf16 %v2798_v18, %v2791_v17  ;;  %v2915_v18 = vld [vmem:[#allocation9 + $0x1570] sm:$0xff] }
 0x2f1   : > { %v5919_v23 = vpack.c.bf16 %v2813_v41, %v2806_v20  ;;  %v2922_v20 = vld [vmem:[#allocation9 + $0x15a8] sm:$0xff] }
 0x2f2   : > { %v5729_v28 = vpack.c.bf16 %v2922_v20, %v2915_v18  ;;  %v2993_v18 = vld [vmem:[#allocation9 + $0x17e0] sm:$0xff]  ;;  %v2988_v20 = vld [vmem:[#allocation9 + $0x17b8] sm:$0xff] }
 0x2f3   : > { %5882 = vmatpush1.bf16.msra.mxu0 %v5881_v1  ;;  %v2820_v1 = vld [vmem:[#allocation9 + $0x1278] sm:$0xff] }
 0x2f4   : > { %5884 = vmatprep.subr.bf16.mxu0 %v5883_v25  ;;  %v2827_v25 = vld [vmem:[#allocation9 + $0x12b0] sm:$0xff] }
 0x2f5   : > { %v5923_v27 = vpack.c.bf16 %v2827_v25, %v2820_v1  ;;  %v2930_v1 = vld [vmem:[#allocation9 + $0x15e8] sm:$0xff]  ;;  %v2937_v25 = vld [vmem:[#allocation9 + $0x1620] sm:$0xff] }
 0x2f6   : > { %3433 = vmatmul.mubr.f32.vlgmr.msra.gmra.mrb[4].mxu0 %v7161_v36 }
 0x2f7   : > { %5886 = vmatpush1.bf16.msra.mxu0 %v5885_v30  ;;  %v2834_v30 = vld [vmem:[#allocation9 + $0x12e8] sm:$0xff] }
 0x2f8   : > { %5888 = vmatprep.subr.bf16.mxu0 %v5887_v61  ;;  %v2841_v61 = vld [vmem:[#allocation9 + $0x1320] sm:$0xff] }
 0x2f9   : > { %v5927_v33 = vpack.c.bf16 %v2841_v61, %v2834_v30  ;;  %v2929_v30 = vld [vmem:[#allocation9 + $0x15e0] sm:$0xff]  ;;  %v2936_v61 = vld [vmem:[#allocation9 + $0x1618] sm:$0xff] }
 0x2fa   : > { %v5733_v46 = vpack.c.bf16 %v2936_v61, %v2929_v30  ;;  %v3007_v30 = vld [vmem:[#allocation9 + $0x1850] sm:$0xff]  ;;  %v3002_v61 = vld [vmem:[#allocation9 + $0x1828] sm:$0xff] }
 0x2fb   : > { %5890 = vmatpush1.bf16.msra.mxu0 %v5889_v38  ;;  %v2848_v38 = vld [vmem:[#allocation9 + $0x1358] sm:$0xff] }
 0x2fc   : > { %5892 = vmatprep.subr.bf16.mxu0 %v5891_v39  ;;  %v2855_v39 = vld [vmem:[#allocation9 + $0x1390] sm:$0xff] }
 0x2fd   : > { %v5931_v44 = vpack.c.bf16 %v2855_v39, %v2848_v38  ;;  %v2944_v38 = vld [vmem:[#allocation9 + $0x1658] sm:$0xff]  ;;  %v2951_v39 = vld [vmem:[#allocation9 + $0x1690] sm:$0xff] }
 0x2ff   : > { %5894 = vmatpush1.bf16.msra.mxu0 %v5893_v47  ;;  %v2862_v47 = vld [vmem:[#allocation9 + $0x13c8] sm:$0xff] }
 0x300   : > { %5896 = vmatprep.subr.bf16.mxu0 %v5895_v48  ;;  %v2869_v48 = vld [vmem:[#allocation9 + $0x1400] sm:$0xff] }
 0x301   : > { %v5935_v52 = vpack.c.bf16 %v2869_v48, %v2862_v47  ;;  %v5957_v47 = vpack.c.bf16 %v2938_v35, %v2931_v34  ;;  %v2943_v48 = vld [vmem:[#allocation9 + $0x1650] sm:$0xff] }
 0x302   : > { %v2999_v35 = vld [vmem:[#allocation9 + $0x1810] sm:$0xff] }
 0x303   : > { %5898 = vmatpush1.bf16.msra.mxu0 %v5897_v55  ;;  %v2876_v55 = vld [vmem:[#allocation9 + $0x1438] sm:$0xff] }
 0x304   : > { %5900 = vmatprep.subr.bf16.mxu0 %v5899_v56  ;;  %v2883_v56 = vld [vmem:[#allocation9 + $0x1470] sm:$0xff] }
 0x305   : > { %v5939_v58 = vpack.c.bf16 %v2883_v56, %v2876_v55  ;;  %v2952_v55 = vld [vmem:[#allocation9 + $0x1698] sm:$0xff]  ;;  %v2958_v56 = vld [vmem:[#allocation9 + $0x16c8] sm:$0xff] }
 0x307   : > { %5902 = vmatpush1.bf16.msra.mxu0 %v5901_v63  ;;  %v2890_v63 = vld [vmem:[#allocation9 + $0x14a8] sm:$0xff] }
 0x308   : > { %5904 = vmatprep.subr.bf16.mxu0 %v5903_v60  ;;  %v2897_v60 = vld [vmem:[#allocation9 + $0x14e0] sm:$0xff] }
 0x309   : > { %v5943_v2 = vpack.c.bf16 %v2897_v60, %v2890_v63  ;;  %v5961_v63 = vpack.c.bf16 %v2952_v55, %v2945_v54  ;;  %v2957_v60 = vld [vmem:[#allocation9 + $0x16c0] sm:$0xff] }
 0x30b   : > { %5906 = vmatpush1.bf16.msra.mxu0 %v5905_v5  ;;  %v2904_v5 = vld [vmem:[#allocation9 + $0x1518] sm:$0xff] }
 0x30c   : > { %5908 = vmatprep.subr.bf16.mxu0 %v5907_v6  ;;  %v2911_v6 = vld [vmem:[#allocation9 + $0x1550] sm:$0xff] }
 0x30d   : > { %v5947_v8 = vpack.c.bf16 %v2911_v6, %v2904_v5  ;;  %v2966_v5 = vld [vmem:[#allocation9 + $0x1708] sm:$0xff]  ;;  %v2972_v6 = vld [vmem:[#allocation9 + $0x1738] sm:$0xff] }
 0x30f   : > { %5910 = vmatpush1.bf16.msra.mxu0 %v5909_v14  ;;  %v2903_v14 = vld [vmem:[#allocation9 + $0x1510] sm:$0xff] }
 0x310   : > { %5912 = vmatprep.subr.bf16.mxu0 %v5911_v10  ;;  %v2910_v10 = vld [vmem:[#allocation9 + $0x1548] sm:$0xff] }
 0x311   : > { %v5949_v17 = vpack.c.bf16 %v2910_v10, %v2903_v14  ;;  %v5965_v14 = vpack.c.bf16 %v2966_v5, %v2959_v4  ;;  %v2971_v10 = vld [vmem:[#allocation9 + $0x1730] sm:$0xff] }
 0x312   : > { %v2247_v5 = vld [vmem:[#allocation9 + $0x90] sm:$0xff] }
 0x313   : > { %5914 = vmatpush1.bf16.msra.mxu0 %v5913_v16 }
 0x314   : > { %5916 = vmatprep.subr.bf16.mxu0 %v5915_v50  ;;  %v5725_v50 = vpack.c.bf16 %v2908_v13, %v2901_v9  ;;  %v2981_v9 = vld [vmem:[#allocation9 + $0x1780] sm:$0xff] }
 0x317   : > { %5918 = vmatpush1.bf16.msra.mxu0 %v5917_v21  ;;  %v5727_v21 = vpack.c.bf16 %v2923_v12, %v2916_v11  ;;  %v2978_v11 = vld [vmem:[#allocation9 + $0x1768] sm:$0xff] }
 0x318   : > { %5920 = vmatprep.subr.bf16.mxu0 %v5919_v23  ;;  %v5951_v23 = vpack.c.bf16 %v2925_v15, %v2918_v40  ;;  %v2973_v15 = vld [vmem:[#allocation9 + $0x1740] sm:$0xff] }
 0x31b   : > { %5922 = vmatpush1.bf16.msra.mxu0 %v5921_v26  ;;  %v2932_v26 = vld [vmem:[#allocation9 + $0x15f8] sm:$0xff] }
 0x31c   : > { %5924 = vmatprep.subr.bf16.mxu0 %v5923_v27  ;;  %v2939_v27 = vld [vmem:[#allocation9 + $0x1630] sm:$0xff] }
 0x31f   : > { %5926 = vmatpush1.bf16.msra.mxu0 %v5925_v31  ;;  %v5731_v31 = vpack.c.bf16 %v2937_v25, %v2930_v1  ;;  %v2992_v1 = vld [vmem:[#allocation9 + $0x17d8] sm:$0xff] }
 0x320   : > { %5928 = vmatprep.subr.bf16.mxu0 %v5927_v33  ;;  %v5955_v33 = vpack.c.bf16 %v2939_v27, %v2932_v26  ;;  %v2987_v27 = vld [vmem:[#allocation9 + $0x17b0] sm:$0xff] }
 0x323   : > { %5930 = vmatpush1.bf16.msra.mxu0 %v5929_v42  ;;  %v2946_v42 = vld [vmem:[#allocation9 + $0x1668] sm:$0xff] }
 0x324   : > { %5932 = vmatprep.subr.bf16.mxu0 %v5931_v44  ;;  %v2953_v44 = vld [vmem:[#allocation9 + $0x16a0] sm:$0xff] }
 0x325   : > { %v5959_v53 = vpack.c.bf16 %v2953_v44, %v2946_v42  ;;  %v3001_v44 = vld [vmem:[#allocation9 + $0x1820] sm:$0xff] }
 0x327   : > { %5934 = vmatpush1.bf16.msra.mxu0 %v5933_v49  ;;  %v2950_v49 = vld [vmem:[#allocation9 + $0x1688] sm:$0xff] }
 0x328   : > { %5936 = vmatprep.subr.bf16.mxu0 %v5935_v52  ;;  %v5735_v52 = vpack.c.bf16 %v2951_v39, %v2944_v38  ;;  %v5737_v62 = vpack.c.bf16 %v2950_v49, %v2943_v48  ;;  %v3006_v38 = vld [vmem:[#allocation9 + $0x1848] sm:$0xff]  ;;  %v2241_v48 = vld [vmem:[#allocation9 + $0x60] sm:$0xff]  ;;  %v2347_v49 = vld [vmem:[#allocation9 + $0x3b0] sm:$0xff] }
 0x32b   : > { %5938 = vmatpush1.bf16.msra.mxu0 %v5937_v57  ;;  %v2965_v57 = vld [vmem:[#allocation9 + $0x1700] sm:$0xff] }
 0x32c   : > { %5940 = vmatprep.subr.bf16.mxu0 %v5939_v58  ;;  %v2960_v58 = vld [vmem:[#allocation9 + $0x16d8] sm:$0xff] }
 0x32d   : > { %v5963_v3 = vpack.c.bf16 %v2967_v59, %v2960_v58  ;;  %v2240_v58 = vld [vmem:[#allocation9 + $0x58] sm:$0xff]  ;;  %v2235_v59 = vld [vmem:[#allocation9 + $0x30] sm:$0xff] }
 0x32f   : > { %5942 = vmatpush1.bf16.msra.mxu0 %v5941_v0  ;;  %v2964_v0 = vld [vmem:[#allocation9 + $0x16f8] sm:$0xff] }
 0x330   : > { %5944 = vmatprep.subr.bf16.mxu0 %v5943_v2  ;;  %v5739_v2 = vpack.c.bf16 %v2965_v57, %v2958_v56  ;;  %v5741_v13 = vpack.c.bf16 %v2964_v0, %v2957_v60  ;;  %v2233_v57 = vld [vmem:[#allocation9 + $0x20] sm:$0xff]  ;;  %v2255_v60 = vld [vmem:[#allocation9 + $0xd0] sm:$0xff] }
 0x331   : > { %v2361_v0 = vld [vmem:[#allocation9 + $0x420] sm:$0xff] }
 0x333   : > { %5946 = vmatpush1.bf16.msra.mxu0 %v5945_v7  ;;  %v2979_v7 = vld [vmem:[#allocation9 + $0x1770] sm:$0xff] }
 0x334   : > { %5948 = vmatprep.subr.bf16.mxu0 %v5947_v8  ;;  %v2974_v8 = vld [vmem:[#allocation9 + $0x1748] sm:$0xff]  ;;  %v5743_v12 = vpack.c.bf16 %v2979_v7, %v2972_v6  ;;  %v2249_v7 = vld [vmem:[#allocation9 + $0xa0] sm:$0xff] }
 0x335   : > { %v5967_v40 = vpack.c.bf16 %v2981_v9, %v2974_v8  ;;  %v2254_v6 = vld [vmem:[#allocation9 + $0xc8] sm:$0xff] }
 0x349   : > { %v7187_v16 = vpop.f32.mrb[2].mxu0 }
 0x34a   : > { %v7189_v41 = vpop.f32.mrb[3].mxu0 }
 0x34b   : > { %3219 = vmatprep.mubr.f32.mxu1 %v7189_v41  ;;  %3503 = vmatprep.mubr.f32.mxu0 %v7189_v41 }
 0x34c   : > { %3220 = vmatmul.mubr.f32.vlgmr.msra.gmra.mrb[10].mxu1 %v7187_v16  ;;  %3504 = vmatmul.mubr.f32.vlgmr.msra.gmra.mrb[4].mxu0 %v7187_v16 }
 0x34d   : > { %5726 = vmatpush1.bf16.msra.mxu1 %v5725_v50  ;;  %5950 = vmatpush1.bf16.msra.mxu0 %v5949_v17  ;;  %v2980_v50 = vld [vmem:[#allocation9 + $0x1778] sm:$0xff]  ;;  %v2986_v17 = vld [vmem:[#allocation9 + $0x17a8] sm:$0xff] }
 0x34e   : > { %5728 = vmatprep.subr.bf16.mxu1 %v5727_v21  ;;  %5952 = vmatprep.subr.bf16.mxu0 %v5951_v23  ;;  %v2995_v21 = vld [vmem:[#allocation9 + $0x17f0] sm:$0xff]  ;;  %v5745_v23 = vpack.c.bf16 %v2978_v11, %v2971_v10  ;;  %v5969_v24 = vpack.c.bf16 %v2980_v50, %v2973_v15  ;;  %v5747_v25 = vpack.c.bf16 %v2993_v18, %v2986_v17  ;;  %v2269_v10 = vld [vmem:[#allocation9 + $0x140] sm:$0xff]  ;;  %v2268_v18 = vld [vmem:[#allocation9 + $0x138] sm:$0xff] }
 0x34f   : > { %3290 = vmatprep.mubr.f32.mxu1 %v7195_v45  ;;  %3574 = vmatprep.mubr.f32.mxu0 %v7195_v45  ;;  %v5971_v26 = vpack.c.bf16 %v2995_v21, %v2988_v20  ;;  %v2375_v11 = vld [vmem:[#allocation9 + $0x490] sm:$0xff]  ;;  %v2261_v17 = vld [vmem:[#allocation9 + $0x100] sm:$0xff] }
 0x350   : > { %v2263_v20 = vld [vmem:[#allocation9 + $0x110] sm:$0xff] }
 0x351   : > { %5730 = vmatpush1.bf16.msra.mxu1 %v5729_v28  ;;  %5954 = vmatpush1.bf16.msra.mxu0 %v5953_v29  ;;  %v2994_v28 = vld [vmem:[#allocation9 + $0x17e8] sm:$0xff]  ;;  %v3000_v29 = vld [vmem:[#allocation9 + $0x1818] sm:$0xff]  ;;  %v2583_v45 = vld [vmem:[#allocation9 + $0xb10] sm:$0xff] }
 0x352   : > { %5732 = vmatprep.subr.bf16.mxu1 %v5731_v31  ;;  %5956 = vmatprep.subr.bf16.mxu0 %v5955_v33  ;;  %v3009_v31 = vld [vmem:[#allocation9 + $0x1860] sm:$0xff]  ;;  %v5749_v33 = vpack.c.bf16 %v2992_v1, %v2985_v22  ;;  %v5973_v34 = vpack.c.bf16 %v2994_v28, %v2987_v27  ;;  %v5751_v39 = vpack.c.bf16 %v3007_v30, %v3000_v29  ;;  %v2283_v22 = vld [vmem:[#allocation9 + $0x1b0] sm:$0xff]  ;;  %v2282_v29 = vld [vmem:[#allocation9 + $0x1a8] sm:$0xff] }
 0x353   : > { %v5975_v42 = vpack.c.bf16 %v3009_v31, %v3002_v61  ;;  %v2389_v1 = vld [vmem:[#allocation9 + $0x500] sm:$0xff]  ;;  %v2284_v31 = vld [vmem:[#allocation9 + $0x1b8] sm:$0xff] }
 0x354   : > { %v2277_v30 = vld [vmem:[#allocation9 + $0x180] sm:$0xff] }
 0x355   : > { %5734 = vmatpush1.bf16.msra.mxu1 %v5733_v46  ;;  %5958 = vmatpush1.bf16.msra.mxu0 %v5957_v47  ;;  %v3008_v46 = vld [vmem:[#allocation9 + $0x1858] sm:$0xff]  ;;  %v2234_v47 = vld [vmem:[#allocation9 + $0x28] sm:$0xff] }
 0x356   : > { %5736 = vmatprep.subr.bf16.mxu1 %v5735_v52  ;;  %5960 = vmatprep.subr.bf16.mxu0 %v5959_v53  ;;  %v2354_v52 = vld [vmem:[#allocation9 + $0x3e8] sm:$0xff]  ;;  %v5753_v53 = vpack.c.bf16 %v3006_v38, %v2999_v35  ;;  %v5977_v54 = vpack.c.bf16 %v3008_v46, %v3001_v44  ;;  %v5979_v55 = vpack.c.bf16 %v2241_v48, %v2234_v47  ;;  %v2403_v35 = vld [vmem:[#allocation9 + $0x570] sm:$0xff]  ;;  %v2289_v46 = vld [vmem:[#allocation9 + $0x1e0] sm:$0xff] }
 0x357   : > { %v6203_v56 = vpack.c.bf16 %v2354_v52, %v2347_v49  ;;  %v2410_v38 = vld [vmem:[#allocation9 + $0x5a8] sm:$0xff]  ;;  %v2296_v47 = vld [vmem:[#allocation9 + $0x218] sm:$0xff]  ;;  %v2291_v48 = vld [vmem:[#allocation9 + $0x1f0] sm:$0xff] }
 0x358   : > { %v6219_v49 = vpack.c.bf16 %v2410_v38, %v2403_v35  ;;  %v2298_v52 = vld [vmem:[#allocation9 + $0x228] sm:$0xff]  ;;  %v2459_v35 = vld [vmem:[#allocation9 + $0x730] sm:$0xff] }
 0x359   : > { %5738 = vmatpush1.bf16.msra.mxu1 %v5737_v62  ;;  %5962 = vmatpush1.bf16.msra.mxu0 %v5961_v63  ;;  %v2242_v62 = vld [vmem:[#allocation9 + $0x68] sm:$0xff]  ;;  %v2248_v63 = vld [vmem:[#allocation9 + $0x98] sm:$0xff] }
 0x35a   : > { %5740 = vmatprep.subr.bf16.mxu1 %v5739_v2  ;;  %5964 = vmatprep.subr.bf16.mxu0 %v5963_v3  ;;  %v2368_v2 = vld [vmem:[#allocation9 + $0x458] sm:$0xff]  ;;  %v5981_v3 = vpack.c.bf16 %v2240_v58, %v2233_v57  ;;  %v6205_v4 = vpack.c.bf16 %v2242_v62, %v2235_v59  ;;  %v5983_v8 = vpack.c.bf16 %v2255_v60, %v2248_v63  ;;  %v2303_v62 = vld [vmem:[#allocation9 + $0x250] sm:$0xff]  ;;  %v2310_v63 = vld [vmem:[#allocation9 + $0x288] sm:$0xff] }
 0x35b   : > { %v6207_v9 = vpack.c.bf16 %v2368_v2, %v2361_v0  ;;  %v5997_v57 = vpack.c.bf16 %v2296_v47, %v2289_v46  ;;  %v6221_v58 = vpack.c.bf16 %v2298_v52, %v2291_v48  ;;  %v2305_v60 = vld [vmem:[#allocation9 + $0x260] sm:$0xff]  ;;  %v2312_v2 = vld [vmem:[#allocation9 + $0x298] sm:$0xff]  ;;  %v2466_v38 = vld [vmem:[#allocation9 + $0x768] sm:$0xff] }
 0x35c   : > { %v2592_v46 = vld [vmem:[#allocation9 + $0xb58] sm:$0xff]  ;;  %v6237_v48 = vpack.c.bf16 %v2466_v38, %v2459_v35  ;;  %v2366_v52 = vld [vmem:[#allocation9 + $0x448] sm:$0xff]  ;;  %v2415_v38 = vld [vmem:[#allocation9 + $0x5d0] sm:$0xff] }
 0x35d   : > { %5742 = vmatpush1.bf16.msra.mxu1 %v5741_v13  ;;  %5966 = vmatpush1.bf16.msra.mxu0 %v5965_v14  ;;  %v2256_v13 = vld [vmem:[#allocation9 + $0xd8] sm:$0xff]  ;;  %v2262_v14 = vld [vmem:[#allocation9 + $0x108] sm:$0xff] }
 0x35e   : > { %5744 = vmatprep.subr.bf16.mxu1 %v5743_v12  ;;  %5968 = vmatprep.subr.bf16.mxu0 %v5967_v40  ;;  %v2382_v12 = vld [vmem:[#allocation9 + $0x4c8] sm:$0xff]  ;;  %v5985_v40 = vpack.c.bf16 %v2254_v6, %v2247_v5  ;;  %v6209_v15 = vpack.c.bf16 %v2256_v13, %v2249_v7  ;;  %v5987_v50 = vpack.c.bf16 %v2269_v10, %v2262_v14  ;;  %v2431_v5 = vld [vmem:[#allocation9 + $0x650] sm:$0xff]  ;;  %v2317_v13 = vld [vmem:[#allocation9 + $0x2c0] sm:$0xff] }
 0x35f   : > { %v6211_v21 = vpack.c.bf16 %v2382_v12, %v2375_v11  ;;  %v2438_v6 = vld [vmem:[#allocation9 + $0x688] sm:$0xff]  ;;  %v6001_v7 = vpack.c.bf16 %v2310_v63, %v2303_v62  ;;  %v2324_v14 = vld [vmem:[#allocation9 + $0x2f8] sm:$0xff]  ;;  %v2319_v10 = vld [vmem:[#allocation9 + $0x2d0] sm:$0xff] }
 0x360   : > { %v6227_v11 = vpack.c.bf16 %v2438_v6, %v2431_v5  ;;  %v2326_v12 = vld [vmem:[#allocation9 + $0x308] sm:$0xff] }
 0x361   : > { %5746 = vmatpush1.bf16.msra.mxu1 %v5745_v23  ;;  %5970 = vmatpush1.bf16.msra.mxu0 %v5969_v24  ;;  %v2270_v23 = vld [vmem:[#allocation9 + $0x148] sm:$0xff]  ;;  %v2276_v24 = vld [vmem:[#allocation9 + $0x178] sm:$0xff] }
 0x362   : > { %5748 = vmatprep.subr.bf16.mxu1 %v5747_v25  ;;  %5972 = vmatprep.subr.bf16.mxu0 %v5971_v26  ;;  %v2396_v25 = vld [vmem:[#allocation9 + $0x538] sm:$0xff]  ;;  %v5989_v26 = vpack.c.bf16 %v2268_v18, %v2261_v17  ;;  %v6213_v27 = vpack.c.bf16 %v2270_v23, %v2263_v20  ;;  %v5991_v28 = vpack.c.bf16 %v2283_v22, %v2276_v24  ;;  %v2331_v23 = vld [vmem:[#allocation9 + $0x330] sm:$0xff]  ;;  %v2338_v24 = vld [vmem:[#allocation9 + $0x368] sm:$0xff] }
 0x363   : > { %v6215_v61 = vpack.c.bf16 %v2396_v25, %v2389_v1  ;;  %v2452_v17 = vld [vmem:[#allocation9 + $0x6f8] sm:$0xff]  ;;  %v6005_v18 = vpack.c.bf16 %v2324_v14, %v2317_v13  ;;  %v6229_v20 = vpack.c.bf16 %v2326_v12, %v2319_v10  ;;  %v2333_v22 = vld [vmem:[#allocation9 + $0x340] sm:$0xff]  ;;  %v2606_v62 = vld [vmem:[#allocation9 + $0xbc8] sm:$0xff] }
 0x364   : > { %v2340_v25 = vld [vmem:[#allocation9 + $0x378] sm:$0xff]  ;;  %v2494_v6 = vld [vmem:[#allocation9 + $0x848] sm:$0xff]  ;;  %v2387_v12 = vld [vmem:[#allocation9 + $0x4f0] sm:$0xff] }
 0x365   : > { %5750 = vmatpush1.bf16.msra.mxu1 %v5749_v33  ;;  %5974 = vmatpush1.bf16.msra.mxu0 %v5973_v34  ;;  %v2290_v33 = vld [vmem:[#allocation9 + $0x1e8] sm:$0xff]  ;;  %v2297_v34 = vld [vmem:[#allocation9 + $0x220] sm:$0xff]  ;;  %v2620_v13 = vld [vmem:[#allocation9 + $0xc38] sm:$0xff] }
 0x366   : > { %5752 = vmatprep.subr.bf16.mxu1 %v5751_v39  ;;  %5976 = vmatprep.subr.bf16.mxu0 %v5975_v42  ;;  %v6217_v42 = vpack.c.bf16 %v2284_v31, %v2277_v30  ;;  %v5995_v44 = vpack.c.bf16 %v2297_v34, %v2290_v33  ;;  %v6233_v30 = vpack.c.bf16 %v2340_v25, %v2333_v22  ;;  %v2345_v31 = vld [vmem:[#allocation9 + $0x3a0] sm:$0xff]  ;;  %v2352_v33 = vld [vmem:[#allocation9 + $0x3d8] sm:$0xff] }
 0x367   : > { %v6013_v47 = vpack.c.bf16 %v2352_v33, %v2345_v31  ;;  %v2401_v25 = vld [vmem:[#allocation9 + $0x560] sm:$0xff]  ;;  %v2648_v31 = vld [vmem:[#allocation9 + $0xd18] sm:$0xff] }
 0x369   : > { %5754 = vmatpush1.bf16.msra.mxu1 %v5753_v53  ;;  %5978 = vmatpush1.bf16.msra.mxu0 %v5977_v54  ;;  %v2304_v53 = vld [vmem:[#allocation9 + $0x258] sm:$0xff]  ;;  %v2311_v54 = vld [vmem:[#allocation9 + $0x290] sm:$0xff] }
 0x36a   : > { %5980 = vmatprep.subr.bf16.mxu1 %v5979_v55  ;;  %6204 = vmatprep.subr.bf16.mxu0 %v6203_v56  ;;  %v2417_v55 = vld [vmem:[#allocation9 + $0x5e0] sm:$0xff]  ;;  %v2424_v56 = vld [vmem:[#allocation9 + $0x618] sm:$0xff]  ;;  %v5999_v59 = vpack.c.bf16 %v2311_v54, %v2304_v53 }
 0x36b   : > { %v6223_v0 = vpack.c.bf16 %v2424_v56, %v2417_v55  ;;  %v2473_v53 = vld [vmem:[#allocation9 + $0x7a0] sm:$0xff]  ;;  %v2480_v56 = vld [vmem:[#allocation9 + $0x7d8] sm:$0xff] }
 0x36c   : > { %3291 = vmatmul.mubr.f32.vlgmr.msra.gmra.mrb[10].mxu1 %v7184_v19  ;;  %3575 = vmatmul.mubr.f32.vlgmr.msra.gmra.mrb[4].mxu0 %v7184_v19 }
 0x36d   : > { %5982 = vmatpush1.bf16.msra.mxu1 %v5981_v3  ;;  %3645 = vmatprep.mubr.f32.mxu1 %v7163_v51  ;;  %v2318_v3 = vld [vmem:[#allocation9 + $0x2c8] sm:$0xff] }
 0x36e   : > { %6206 = vmatpush3.bf16.msra.mxu0 %v6205_v4  ;;  %3929 = vmatprep.mubr.f32.mxu0 %v7163_v51  ;;  %v2275_v51 = vld [vmem:[#allocation9 + $0x170] sm:$0xff]  ;;  %v2325_v4 = vld [vmem:[#allocation9 + $0x300] sm:$0xff] }
 0x36f   : > { %5984 = vmatprep.subr.bf16.mxu1 %v5983_v8  ;;  %6208 = vmatprep.subr.bf16.mxu0 %v6207_v9  ;;  %v5993_v39 = vpack.c.bf16 %v2282_v29, %v2275_v51  ;;  %v6225_v8 = vpack.c.bf16 %v2312_v2, %v2305_v60  ;;  %v6003_v9 = vpack.c.bf16 %v2325_v4, %v2318_v3  ;;  %v2578_v51 = vld [vmem:[#allocation9 + $0xae8] sm:$0xff]  ;;  %v2373_v2 = vld [vmem:[#allocation9 + $0x480] sm:$0xff]  ;;  %v2380_v3 = vld [vmem:[#allocation9 + $0x4b8] sm:$0xff] }
 0x370   : > { %v6009_v29 = vpack.c.bf16 %v2338_v24, %v2331_v23  ;;  %v6241_v60 = vpack.c.bf16 %v2480_v56, %v2473_v53  ;;  %v2487_v4 = vld [vmem:[#allocation9 + $0x810] sm:$0xff]  ;;  %v6021_v14 = vpack.c.bf16 %v2380_v3, %v2373_v2  ;;  %v2634_v23 = vld [vmem:[#allocation9 + $0xca8] sm:$0xff]  ;;  %v2429_v56 = vld [vmem:[#allocation9 + $0x640] sm:$0xff] }
 0x371   : > { %5986 = vmatpush1.bf16.msra.mxu1 %v5985_v40  ;;  %v2332_v40 = vld [vmem:[#allocation9 + $0x338] sm:$0xff]  ;;  %v6245_v10 = vpack.c.bf16 %v2494_v6, %v2487_v4  ;;  %v2443_v6 = vld [vmem:[#allocation9 + $0x6b0] sm:$0xff] }
 0x372   : > { %6210 = vmatpush3.bf16.msra.mxu0 %v6209_v15  ;;  %5988 = vmatprep.subr.bf16.mxu1 %v5987_v50  ;;  %v2339_v15 = vld [vmem:[#allocation9 + $0x370] sm:$0xff]  ;;  %v2445_v50 = vld [vmem:[#allocation9 + $0x6c0] sm:$0xff]  ;;  %v2676_v2 = vld [vmem:[#allocation9 + $0xdf8] sm:$0xff] }
 0x373   : > { %6212 = vmatprep.subr.bf16.mxu0 %v6211_v21  ;;  %v6007_v21 = vpack.c.bf16 %v2339_v15, %v2332_v40  ;;  %v6231_v1 = vpack.c.bf16 %v2452_v17, %v2445_v50  ;;  %v2394_v40 = vld [vmem:[#allocation9 + $0x528] sm:$0xff]  ;;  %v2501_v15 = vld [vmem:[#allocation9 + $0x880] sm:$0xff]  ;;  %v2508_v17 = vld [vmem:[#allocation9 + $0x8b8] sm:$0xff] }
 0x374   : > { %v6025_v24 = vpack.c.bf16 %v2394_v40, %v2387_v12  ;;  %v6249_v22 = vpack.c.bf16 %v2508_v17, %v2501_v15  ;;  %v2802_v12 = vld [vmem:[#allocation9 + $0x11e8] sm:$0xff]  ;;  %v2457_v17 = vld [vmem:[#allocation9 + $0x720] sm:$0xff] }
 0x375   : > { %5990 = vmatpush1.bf16.msra.mxu1 %v5989_v26  ;;  %v2346_v26 = vld [vmem:[#allocation9 + $0x3a8] sm:$0xff] }
 0x376   : > { %6214 = vmatpush3.bf16.msra.mxu0 %v6213_v27  ;;  %5992 = vmatprep.subr.bf16.mxu1 %v5991_v28  ;;  %v2353_v27 = vld [vmem:[#allocation9 + $0x3e0] sm:$0xff]  ;;  %v2571_v28 = vld [vmem:[#allocation9 + $0xab0] sm:$0xff] }
 0x377   : > { %6216 = vmatprep.subr.bf16.mxu0 %v6215_v61  ;;  %v6011_v61 = vpack.c.bf16 %v2353_v27, %v2346_v26  ;;  %v6235_v34 = vpack.c.bf16 %v2578_v51, %v2571_v28  ;;  %v2408_v26 = vld [vmem:[#allocation9 + $0x598] sm:$0xff]  ;;  %v2515_v27 = vld [vmem:[#allocation9 + $0x8f0] sm:$0xff]  ;;  %v2522_v51 = vld [vmem:[#allocation9 + $0x928] sm:$0xff] }
 0x378   : > { %v6029_v33 = vpack.c.bf16 %v2408_v26, %v2401_v25  ;;  %v2809_v25 = vld [vmem:[#allocation9 + $0x1220] sm:$0xff]  ;;  %v2816_v26 = vld [vmem:[#allocation9 + $0x1258] sm:$0xff] }
 0x379   : > { %5994 = vmatpush1.bf16.msra.mxu1 %v5993_v39  ;;  %v2360_v39 = vld [vmem:[#allocation9 + $0x418] sm:$0xff] }
 0x37a   : > { %6218 = vmatpush3.bf16.msra.mxu0 %v6217_v42  ;;  %5996 = vmatprep.subr.bf16.mxu1 %v5995_v44  ;;  %v2367_v42 = vld [vmem:[#allocation9 + $0x450] sm:$0xff]  ;;  %v2585_v44 = vld [vmem:[#allocation9 + $0xb20] sm:$0xff] }
 0x37b   : > { %6220 = vmatprep.subr.bf16.mxu0 %v6219_v49  ;;  %v2359_v49 = vld [vmem:[#allocation9 + $0x410] sm:$0xff]  ;;  %v6015_v54 = vpack.c.bf16 %v2367_v42, %v2360_v39  ;;  %v6239_v55 = vpack.c.bf16 %v2592_v46, %v2585_v44  ;;  %v2422_v39 = vld [vmem:[#allocation9 + $0x608] sm:$0xff]  ;;  %v2529_v42 = vld [vmem:[#allocation9 + $0x960] sm:$0xff] }
 0x37c   : > { %v6017_v63 = vpack.c.bf16 %v2366_v52, %v2359_v49  ;;  %v2536_v46 = vld [vmem:[#allocation9 + $0x998] sm:$0xff]  ;;  %v2655_v49 = vld [vmem:[#allocation9 + $0xd50] sm:$0xff]  ;;  %v2662_v52 = vld [vmem:[#allocation9 + $0xd88] sm:$0xff]  ;;  %v6033_v53 = vpack.c.bf16 %v2422_v39, %v2415_v38 }
 0x37d   : > { %5998 = vmatpush1.bf16.msra.mxu1 %v5997_v57  ;;  %v2374_v57 = vld [vmem:[#allocation9 + $0x488] sm:$0xff] }
 0x37e   : > { %6222 = vmatpush3.bf16.msra.mxu0 %v6221_v58  ;;  %6000 = vmatprep.subr.bf16.mxu1 %v5999_v59  ;;  %v2381_v58 = vld [vmem:[#allocation9 + $0x4c0] sm:$0xff]  ;;  %v2599_v59 = vld [vmem:[#allocation9 + $0xb90] sm:$0xff]  ;;  %v2830_v38 = vld [vmem:[#allocation9 + $0x12c8] sm:$0xff] }
 0x37f   : > { %6224 = vmatprep.subr.bf16.mxu0 %v6223_v0  ;;  %v6019_v0 = vpack.c.bf16 %v2381_v58, %v2374_v57  ;;  %v6243_v5 = vpack.c.bf16 %v2606_v62, %v2599_v59  ;;  %v2436_v57 = vld [vmem:[#allocation9 + $0x678] sm:$0xff]  ;;  %v2543_v58 = vld [vmem:[#allocation9 + $0x9d0] sm:$0xff]  ;;  %v6259_v59 = vpack.c.bf16 %v2662_v52, %v2655_v49  ;;  %v2550_v62 = vld [vmem:[#allocation9 + $0xa08] sm:$0xff] }
 0x380   : > { %v6037_v3 = vpack.c.bf16 %v2436_v57, %v2429_v56  ;;  %v6261_v4 = vpack.c.bf16 %v2550_v62, %v2543_v58  ;;  %v2500_v52 = vld [vmem:[#allocation9 + $0x878] sm:$0xff]  ;;  %v2499_v58 = vld [vmem:[#allocation9 + $0x870] sm:$0xff]  ;;  %v2725_v62 = vld [vmem:[#allocation9 + $0xf80] sm:$0xff] }
 0x381   : > { %6002 = vmatpush1.bf16.msra.mxu1 %v6001_v7  ;;  %v2388_v7 = vld [vmem:[#allocation9 + $0x4f8] sm:$0xff] }
 0x382   : > { %6226 = vmatpush3.bf16.msra.mxu0 %v6225_v8  ;;  %6004 = vmatprep.subr.bf16.mxu1 %v6003_v9  ;;  %v2395_v8 = vld [vmem:[#allocation9 + $0x530] sm:$0xff]  ;;  %v2613_v9 = vld [vmem:[#allocation9 + $0xc00] sm:$0xff] }
 0x383   : > { %6228 = vmatprep.subr.bf16.mxu0 %v6227_v11  ;;  %v6023_v11 = vpack.c.bf16 %v2395_v8, %v2388_v7  ;;  %v6247_v50 = vpack.c.bf16 %v2620_v13, %v2613_v9  ;;  %v2450_v7 = vld [vmem:[#allocation9 + $0x6e8] sm:$0xff]  ;;  %v2557_v8 = vld [vmem:[#allocation9 + $0xa40] sm:$0xff]  ;;  %v2564_v13 = vld [vmem:[#allocation9 + $0xa78] sm:$0xff] }
 0x384   : > { %v6041_v40 = vpack.c.bf16 %v2450_v7, %v2443_v6  ;;  %v6265_v15 = vpack.c.bf16 %v2564_v13, %v2557_v8  ;;  %v2513_v8 = vld [vmem:[#allocation9 + $0x8e0] sm:$0xff]  ;;  %v2739_v13 = vld [vmem:[#allocation9 + $0xff0] sm:$0xff] }
 0x385   : > { %6006 = vmatpush1.bf16.msra.mxu1 %v6005_v18  ;;  %v2402_v18 = vld [vmem:[#allocation9 + $0x568] sm:$0xff] }
 0x386   : > { %6230 = vmatpush3.bf16.msra.mxu0 %v6229_v20  ;;  %6008 = vmatprep.subr.bf16.mxu1 %v6007_v21  ;;  %v2409_v20 = vld [vmem:[#allocation9 + $0x5a0] sm:$0xff]  ;;  %v2627_v21 = vld [vmem:[#allocation9 + $0xc70] sm:$0xff] }
 0x387   : > { %6232 = vmatprep.subr.bf16.mxu0 %v6231_v1  ;;  %v6027_v1 = vpack.c.bf16 %v2409_v20, %v2402_v18  ;;  %v6251_v28 = vpack.c.bf16 %v2634_v23, %v2627_v21  ;;  %v2464_v18 = vld [vmem:[#allocation9 + $0x758] sm:$0xff]  ;;  %v2683_v21 = vld [vmem:[#allocation9 + $0xe30] sm:$0xff]  ;;  %v2690_v23 = vld [vmem:[#allocation9 + $0xe68] sm:$0xff] }
 0x389   : > { %6010 = vmatpush1.bf16.msra.mxu1 %v6009_v29  ;;  %v2416_v29 = vld [vmem:[#allocation9 + $0x5d8] sm:$0xff] }
 0x38a   : > { %6234 = vmatpush3.bf16.msra.mxu0 %v6233_v30  ;;  %6012 = vmatprep.subr.bf16.mxu1 %v6011_v61  ;;  %v2423_v30 = vld [vmem:[#allocation9 + $0x610] sm:$0xff]  ;;  %v2641_v61 = vld [vmem:[#allocation9 + $0xce0] sm:$0xff] }
 0x38b   : > { %6236 = vmatprep.subr.bf16.mxu0 %v6235_v34  ;;  %v6253_v34 = vpack.c.bf16 %v2522_v51, %v2515_v27  ;;  %v6031_v35 = vpack.c.bf16 %v2423_v30, %v2416_v29  ;;  %v6255_v44 = vpack.c.bf16 %v2648_v31, %v2641_v61  ;;  %v6269_v27 = vpack.c.bf16 %v2690_v23, %v2683_v21  ;;  %v2478_v51 = vld [vmem:[#allocation9 + $0x7c8] sm:$0xff]  ;;  %v2697_v29 = vld [vmem:[#allocation9 + $0xea0] sm:$0xff]  ;;  %v2704_v61 = vld [vmem:[#allocation9 + $0xed8] sm:$0xff] }
 0x38c   : > { %v2486_v31 = vld [vmem:[#allocation9 + $0x808] sm:$0xff]  ;;  %v2753_v23 = vld [vmem:[#allocation9 + $0x1060] sm:$0xff] }
 0x38d   : > { %3930 = vmatmul.mubr.f32.vlgmr.msra.gmra.mrb[6].mxu0 %v7159_v32  ;;  %6014 = vmatpush1.bf16.msra.mxu1 %v6013_v47  ;;  %v2430_v47 = vld [vmem:[#allocation9 + $0x648] sm:$0xff] }
 0x38e   : > { %6238 = vmatpush3.bf16.msra.mxu0 %v6237_v48  ;;  %3999 = vmatprep.mubr.f32.mxu0 %v7165_v43  ;;  %v2437_v48 = vld [vmem:[#allocation9 + $0x680] sm:$0xff]  ;;  %v2534_v21 = vld [vmem:[#allocation9 + $0x988] sm:$0xff] }
 0x38f   : > { %6016 = vmatprep.subr.bf16.mxu1 %v6015_v54  ;;  %6240 = vmatprep.subr.bf16.mxu0 %v6239_v55  ;;  %v6257_v54 = vpack.c.bf16 %v2536_v46, %v2529_v42  ;;  %v6035_v55 = vpack.c.bf16 %v2437_v48, %v2430_v47  ;;  %v6273_v42 = vpack.c.bf16 %v2704_v61, %v2697_v29  ;;  %v2485_v46 = vld [vmem:[#allocation9 + $0x800] sm:$0xff]  ;;  %v2492_v47 = vld [vmem:[#allocation9 + $0x838] sm:$0xff]  ;;  %v2711_v48 = vld [vmem:[#allocation9 + $0xf10] sm:$0xff] }
 0x390   : > { %v6053_v56 = vpack.c.bf16 %v2492_v47, %v2485_v46  ;;  %v2548_v61 = vld [vmem:[#allocation9 + $0x9f8] sm:$0xff] }
 0x391   : > { %6018 = vmatpush1.bf16.msra.mxu1 %v6017_v63  ;;  %v2444_v63 = vld [vmem:[#allocation9 + $0x6b8] sm:$0xff] }
 0x392   : > { %6242 = vmatpush3.bf16.msra.mxu0 %v6241_v60  ;;  %6020 = vmatprep.subr.bf16.mxu1 %v6019_v0  ;;  %v2451_v60 = vld [vmem:[#allocation9 + $0x6f0] sm:$0xff]  ;;  %v2669_v0 = vld [vmem:[#allocation9 + $0xdc0] sm:$0xff] }
 0x393   : > { %6244 = vmatprep.subr.bf16.mxu0 %v6243_v5  ;;  %v6039_v5 = vpack.c.bf16 %v2451_v60, %v2444_v63  ;;  %v6263_v9 = vpack.c.bf16 %v2676_v2, %v2669_v0  ;;  %v2732_v60 = vld [vmem:[#allocation9 + $0xfb8] sm:$0xff]  ;;  %v2514_v0 = vld [vmem:[#allocation9 + $0x8e8] sm:$0xff]  ;;  %v2521_v2 = vld [vmem:[#allocation9 + $0x920] sm:$0xff] }
 0x394   : > { %v6281_v6 = vpack.c.bf16 %v2732_v60, %v2725_v62  ;;  %v6059_v7 = vpack.c.bf16 %v2521_v2, %v2514_v0  ;;  %v2907_v62 = vld [vmem:[#allocation9 + $0x1530] sm:$0xff]  ;;  %v2584_v60 = vld [vmem:[#allocation9 + $0xb18] sm:$0xff] }
 0x395   : > { %6022 = vmatpush1.bf16.msra.mxu1 %v6021_v14  ;;  %v2458_v14 = vld [vmem:[#allocation9 + $0x728] sm:$0xff]  ;;  %v2591_v0 = vld [vmem:[#allocation9 + $0xb50] sm:$0xff] }
 0x396   : > { %6246 = vmatpush3.bf16.msra.mxu0 %v6245_v10  ;;  %6024 = vmatprep.subr.bf16.mxu1 %v6023_v11  ;;  %v2465_v10 = vld [vmem:[#allocation9 + $0x760] sm:$0xff]  ;;  %v2795_v11 = vld [vmem:[#allocation9 + $0x11b0] sm:$0xff] }
 0x397   : > { %6248 = vmatprep.subr.bf16.mxu0 %v6247_v50  ;;  %v6043_v50 = vpack.c.bf16 %v2465_v10, %v2458_v14  ;;  %v6267_v20 = vpack.c.bf16 %v2802_v12, %v2795_v11  ;;  %v2746_v10 = vld [vmem:[#allocation9 + $0x1028] sm:$0xff]  ;;  %v2528_v11 = vld [vmem:[#allocation9 + $0x958] sm:$0xff]  ;;  %v2535_v12 = vld [vmem:[#allocation9 + $0x990] sm:$0xff] }
 0x399   : > { %6026 = vmatpush1.bf16.msra.mxu1 %v6025_v24  ;;  %v2472_v24 = vld [vmem:[#allocation9 + $0x798] sm:$0xff] }
 0x39a   : > { %6250 = vmatpush3.bf16.msra.mxu0 %v6249_v22  ;;  %6028 = vmatprep.subr.bf16.mxu1 %v6027_v1  ;;  %v2479_v22 = vld [vmem:[#allocation9 + $0x7d0] sm:$0xff]  ;;  %v6045_v1 = vpack.c.bf16 %v2464_v18, %v2457_v17  ;;  %v6285_v17 = vpack.c.bf16 %v2746_v10, %v2739_v13  ;;  %v6063_v18 = vpack.c.bf16 %v2535_v12, %v2528_v11  ;;  %v2597_v11 = vld [vmem:[#allocation9 + $0xb80] sm:$0xff]  ;;  %v2604_v12 = vld [vmem:[#allocation9 + $0xbb8] sm:$0xff] }
 0x39b   : > { %6252 = vmatprep.subr.bf16.mxu0 %v6251_v28  ;;  %v2471_v28 = vld [vmem:[#allocation9 + $0x790] sm:$0xff]  ;;  %v6047_v30 = vpack.c.bf16 %v2479_v22, %v2472_v24  ;;  %v2760_v22 = vld [vmem:[#allocation9 + $0x1098] sm:$0xff] }
 0x39c   : > { %v6049_v39 = vpack.c.bf16 %v2478_v51, %v2471_v28  ;;  %v6289_v51 = vpack.c.bf16 %v2760_v22, %v2753_v23  ;;  %v2618_v22 = vld [vmem:[#allocation9 + $0xc28] sm:$0xff] }
 0x39d   : > { %6030 = vmatpush1.bf16.msra.mxu1 %v6029_v33  ;;  %v2493_v33 = vld [vmem:[#allocation9 + $0x840] sm:$0xff] }
 0x39e   : > { %6254 = vmatpush3.bf16.msra.mxu0 %v6253_v34  ;;  %6032 = vmatprep.subr.bf16.mxu1 %v6031_v35  ;;  %v6271_v34 = vpack.c.bf16 %v2816_v26, %v2809_v25  ;;  %v2823_v35 = vld [vmem:[#allocation9 + $0x1290] sm:$0xff]  ;;  %v2549_v25 = vld [vmem:[#allocation9 + $0xa00] sm:$0xff] }
 0x39f   : > { %6256 = vmatprep.subr.bf16.mxu0 %v6255_v44  ;;  %v6051_v44 = vpack.c.bf16 %v2493_v33, %v2486_v31  ;;  %v6275_v49 = vpack.c.bf16 %v2830_v38, %v2823_v35  ;;  %v2879_v26 = vld [vmem:[#allocation9 + $0x1450] sm:$0xff]  ;;  %v2556_v35 = vld [vmem:[#allocation9 + $0xa38] sm:$0xff] }
 0x3a0   : > { %v2767_v31 = vld [vmem:[#allocation9 + $0x10d0] sm:$0xff] }
 0x3a1   : > { %6034 = vmatpush1.bf16.msra.mxu1 %v6033_v53  ;;  %v2507_v53 = vld [vmem:[#allocation9 + $0x8b0] sm:$0xff] }
 0x3a2   : > { %6258 = vmatpush3.bf16.msra.mxu0 %v6257_v54  ;;  %6036 = vmatprep.subr.bf16.mxu1 %v6035_v55  ;;  %v2837_v54 = vld [vmem:[#allocation9 + $0x1300] sm:$0xff]  ;;  %v2844_v55 = vld [vmem:[#allocation9 + $0x1338] sm:$0xff]  ;;  %v6055_v57 = vpack.c.bf16 %v2507_v53, %v2500_v52  ;;  %v2563_v38 = vld [vmem:[#allocation9 + $0xa70] sm:$0xff] }
 0x3a3   : > { %6260 = vmatprep.subr.bf16.mxu0 %v6259_v59  ;;  %v2506_v59 = vld [vmem:[#allocation9 + $0x8a8] sm:$0xff]  ;;  %v6279_v63 = vpack.c.bf16 %v2844_v55, %v2837_v54  ;;  %v6071_v47 = vpack.c.bf16 %v2563_v38, %v2556_v35  ;;  %v2788_v53 = vld [vmem:[#allocation9 + $0x1178] sm:$0xff]  ;;  %v2577_v55 = vld [vmem:[#allocation9 + $0xae0] sm:$0xff] }
 0x3a4   : > { %v2570_v54 = vld [vmem:[#allocation9 + $0xaa8] sm:$0xff]  ;;  %v2647_v35 = vld [vmem:[#allocation9 + $0xd10] sm:$0xff] }
 0x3a5   : > { %6038 = vmatpush1.bf16.msra.mxu1 %v6037_v3  ;;  %v2851_v3 = vld [vmem:[#allocation9 + $0x1370] sm:$0xff] }
 0x3a6   : > { %6262 = vmatpush3.bf16.msra.mxu0 %v6261_v4  ;;  %6040 = vmatprep.subr.bf16.mxu1 %v6039_v5  ;;  %v2858_v4 = vld [vmem:[#allocation9 + $0x13a8] sm:$0xff]  ;;  %v6057_v5 = vpack.c.bf16 %v2506_v59, %v2499_v58  ;;  %v2569_v58 = vld [vmem:[#allocation9 + $0xaa0] sm:$0xff]  ;;  %v2576_v59 = vld [vmem:[#allocation9 + $0xad8] sm:$0xff] }
 0x3a7   : > { %6264 = vmatprep.subr.bf16.mxu0 %v6263_v9  ;;  %v2520_v9 = vld [vmem:[#allocation9 + $0x918] sm:$0xff]  ;;  %v6283_v14 = vpack.c.bf16 %v2858_v4, %v2851_v3  ;;  %v6077_v2 = vpack.c.bf16 %v2576_v59, %v2569_v58  ;;  %v6079_v4 = vpack.c.bf16 %v2591_v0, %v2584_v60  ;;  %v2675_v59 = vld [vmem:[#allocation9 + $0xdf0] sm:$0xff] }
 0x3a8   : > { %v2668_v58 = vld [vmem:[#allocation9 + $0xdb8] sm:$0xff]  ;;  %v2667_v0 = vld [vmem:[#allocation9 + $0xdb0] sm:$0xff] }
 0x3a9   : > { %6042 = vmatpush1.bf16.msra.mxu1 %v6041_v40  ;;  %v2865_v40 = vld [vmem:[#allocation9 + $0x13e0] sm:$0xff]  ;;  %v6103_v60 = vpack.c.bf16 %v2675_v59, %v2668_v58 }
 0x3aa   : > { %6266 = vmatpush3.bf16.msra.mxu0 %v6265_v15  ;;  %6044 = vmatprep.subr.bf16.mxu1 %v6043_v50  ;;  %v2872_v15 = vld [vmem:[#allocation9 + $0x1418] sm:$0xff]  ;;  %v6061_v50 = vpack.c.bf16 %v2520_v9, %v2513_v8  ;;  %v2598_v8 = vld [vmem:[#allocation9 + $0xb88] sm:$0xff]  ;;  %v2605_v9 = vld [vmem:[#allocation9 + $0xbc0] sm:$0xff] }
 0x3ab   : > { %6268 = vmatprep.subr.bf16.mxu0 %v6267_v20  ;;  %v2527_v20 = vld [vmem:[#allocation9 + $0x950] sm:$0xff]  ;;  %v6287_v24 = vpack.c.bf16 %v2872_v15, %v2865_v40  ;;  %v6083_v10 = vpack.c.bf16 %v2605_v9, %v2598_v8  ;;  %v2942_v15 = vld [vmem:[#allocation9 + $0x1648] sm:$0xff]  ;;  %v2681_v9 = vld [vmem:[#allocation9 + $0xe20] sm:$0xff] }
 0x3ac   : > { %3646 = vmatmul.mubr.f32.vlgmr.msra.gmra.mrb[12].mxu1 %v7159_v32  ;;  %v2718_v32 = vld [vmem:[#allocation9 + $0xf48] sm:$0xff]  ;;  %v6065_v28 = vpack.c.bf16 %v2534_v21, %v2527_v20  ;;  %v2935_v40 = vld [vmem:[#allocation9 + $0x1610] sm:$0xff]  ;;  %v6085_v20 = vpack.c.bf16 %v2604_v12, %v2597_v11  ;;  %v2793_v59 = vld [vmem:[#allocation9 + $0x11a0] sm:$0xff] }
 0x3ad   : > { %4000 = vmatmul.mubr.f32.vlgmr.msra.gmra.mrb[8].mxu0 %v7161_v36  ;;  %6046 = vmatpush1.bf16.msra.mxu1 %v6045_v1  ;;  %v2542_v1 = vld [vmem:[#allocation9 + $0x9c8] sm:$0xff]  ;;  %v6306_v21 = vpack.c.bf16 %v2942_v15, %v2935_v40  ;;  %v2695_v40 = vld [vmem:[#allocation9 + $0xe90] sm:$0xff] }
 0x3ae   : > { %3716 = vmatprep.mubr.f32.mxu1 %v7165_v43  ;;  %6270 = vmatpush3.bf16.msra.mxu0 %v6269_v27  ;;  %v6277_v43 = vpack.c.bf16 %v2718_v32, %v2711_v48  ;;  %v2886_v27 = vld [vmem:[#allocation9 + $0x1488] sm:$0xff]  ;;  %v6067_v29 = vpack.c.bf16 %v2549_v25, %v2542_v1  ;;  %v2555_v48 = vld [vmem:[#allocation9 + $0xa30] sm:$0xff]  ;;  %v2781_v32 = vld [vmem:[#allocation9 + $0x1140] sm:$0xff] }
 0x3af   : > { %4069 = vmatprep.mubr.f32.mxu0 %v7189_v41  ;;  %6048 = vmatprep.subr.bf16.mxu1 %v6047_v30  ;;  %v2541_v30 = vld [vmem:[#allocation9 + $0x9c0] sm:$0xff]  ;;  %v6291_v33 = vpack.c.bf16 %v2886_v27, %v2879_v26  ;;  %v2956_v25 = vld [vmem:[#allocation9 + $0x16b8] sm:$0xff]  ;;  %v2626_v26 = vld [vmem:[#allocation9 + $0xc68] sm:$0xff] }
 0x3b0   : > { %6272 = vmatprep.subr.bf16.mxu0 %v6271_v34  ;;  %v2774_v34 = vld [vmem:[#allocation9 + $0x1108] sm:$0xff]  ;;  %v2949_v1 = vld [vmem:[#allocation9 + $0x1680] sm:$0xff] }
 0x3b1   : > { %6050 = vmatpush1.bf16.msra.mxu1 %v6049_v39  ;;  %v2893_v39 = vld [vmem:[#allocation9 + $0x14c0] sm:$0xff]  ;;  %v6293_v46 = vpack.c.bf16 %v2774_v34, %v2767_v31  ;;  %v2963_v31 = vld [vmem:[#allocation9 + $0x16f0] sm:$0xff]  ;;  %v2640_v34 = vld [vmem:[#allocation9 + $0xcd8] sm:$0xff] }
 0x3b2   : > { %6274 = vmatpush3.bf16.msra.mxu0 %v6273_v42  ;;  %6052 = vmatprep.subr.bf16.mxu1 %v6051_v44  ;;  %v2900_v42 = vld [vmem:[#allocation9 + $0x14f8] sm:$0xff]  ;;  %v6069_v44 = vpack.c.bf16 %v2548_v61, %v2541_v30  ;;  %v2633_v27 = vld [vmem:[#allocation9 + $0xca0] sm:$0xff]  ;;  %v2702_v15 = vld [vmem:[#allocation9 + $0xec8] sm:$0xff] }
 0x3b3   : > { %6276 = vmatprep.subr.bf16.mxu0 %v6275_v49  ;;  %v2562_v49 = vld [vmem:[#allocation9 + $0xa68] sm:$0xff]  ;;  %v6295_v52 = vpack.c.bf16 %v2900_v42, %v2893_v39  ;;  %v2625_v30 = vld [vmem:[#allocation9 + $0xc60] sm:$0xff]  ;;  %v2632_v61 = vld [vmem:[#allocation9 + $0xc98] sm:$0xff]  ;;  %v6095_v42 = vpack.c.bf16 %v2647_v35, %v2640_v34 }
 0x3b4   : > { %v6093_v38 = vpack.c.bf16 %v2632_v61, %v2625_v30  ;;  %v2737_v30 = vld [vmem:[#allocation9 + $0xfe0] sm:$0xff]  ;;  %v2752_v61 = vld [vmem:[#allocation9 + $0x1058] sm:$0xff]  ;;  %v2751_v35 = vld [vmem:[#allocation9 + $0x1050] sm:$0xff] }
 0x3b5   : > { %6054 = vmatpush1.bf16.msra.mxu1 %v6053_v56  ;;  %v6073_v56 = vpack.c.bf16 %v2562_v49, %v2555_v48  ;;  %v2984_v48 = vld [vmem:[#allocation9 + $0x1798] sm:$0xff]  ;;  %v2654_v49 = vld [vmem:[#allocation9 + $0xd48] sm:$0xff] }
 0x3b6   : > { %6278 = vmatpush3.bf16.msra.mxu0 %v6277_v43  ;;  %6056 = vmatprep.subr.bf16.mxu1 %v6055_v57  ;;  %v6297_v43 = vpack.c.bf16 %v2788_v53, %v2781_v32  ;;  %v6075_v57 = vpack.c.bf16 %v2577_v55, %v2570_v54  ;;  %v2661_v32 = vld [vmem:[#allocation9 + $0xd80] sm:$0xff] }
 0x3b7   : > { %6280 = vmatprep.subr.bf16.mxu0 %v6279_v63  ;;  %v2914_v63 = vld [vmem:[#allocation9 + $0x1568] sm:$0xff]  ;;  %v6099_v54 = vpack.c.bf16 %v2661_v32, %v2654_v49  ;;  %v2653_v55 = vld [vmem:[#allocation9 + $0xd40] sm:$0xff]  ;;  %v2780_v49 = vld [vmem:[#allocation9 + $0x1138] sm:$0xff] }
 0x3b8   : > { %v6300_v3 = vpack.c.bf16 %v2914_v63, %v2907_v62  ;;  %v2787_v32 = vld [vmem:[#allocation9 + $0x1170] sm:$0xff] }
 0x3b9   : > { %6058 = vmatpush1.bf16.msra.mxu1 %v6057_v5  ;;  %v2590_v5 = vld [vmem:[#allocation9 + $0xb48] sm:$0xff] }
 0x3ba   : > { %6282 = vmatpush3.bf16.msra.mxu0 %v6281_v6  ;;  %6060 = vmatprep.subr.bf16.mxu1 %v6059_v7  ;;  %v2921_v6 = vld [vmem:[#allocation9 + $0x15a0] sm:$0xff]  ;;  %v2928_v7 = vld [vmem:[#allocation9 + $0x15d8] sm:$0xff]  ;;  %v6081_v13 = vpack.c.bf16 %v2590_v5, %v2583_v45  ;;  %v2682_v45 = vld [vmem:[#allocation9 + $0xe28] sm:$0xff] }
 0x3bb   : > { %6284 = vmatprep.subr.bf16.mxu0 %v6283_v14  ;;  %v6303_v14 = vpack.c.bf16 %v2928_v7, %v2921_v6  ;;  %v2689_v5 = vld [vmem:[#allocation9 + $0xe60] sm:$0xff] }
 0x3bc   : > { %v6107_v8 = vpack.c.bf16 %v2689_v5, %v2682_v45  ;;  %v2822_v45 = vld [vmem:[#allocation9 + $0x1288] sm:$0xff]  ;;  %v2829_v5 = vld [vmem:[#allocation9 + $0x12c0] sm:$0xff] }
 0x3bd   : > { %6062 = vmatpush1.bf16.msra.mxu1 %v6061_v50  ;;  %v2612_v50 = vld [vmem:[#allocation9 + $0xbf8] sm:$0xff] }
 0x3be   : > { %6286 = vmatpush3.bf16.msra.mxu0 %v6285_v17  ;;  %6064 = vmatprep.subr.bf16.mxu1 %v6063_v18  ;;  %v2619_v17 = vld [vmem:[#allocation9 + $0xc30] sm:$0xff] }
 0x3bf   : > { %6288 = vmatprep.subr.bf16.mxu0 %v6287_v24  ;;  %v7214_v18 = vld [vmem:[#allocation2 + $0x10] sm:$0xff]  ;;  %v6087_v23 = vpack.c.bf16 %v2619_v17, %v2612_v50  ;;  %v2710_v50 = vld [vmem:[#allocation9 + $0xf08] sm:$0xff]  ;;  %v2717_v17 = vld [vmem:[#allocation9 + $0xf40] sm:$0xff] }
 0x3c0   : > { %v2611_v24 = vld [vmem:[#allocation9 + $0xbf0] sm:$0xff] }
 0x3c1   : > { %6066 = vmatpush1.bf16.msra.mxu1 %v6065_v28  ;;  %v6089_v28 = vpack.c.bf16 %v2618_v22, %v2611_v24  ;;  %v2724_v24 = vld [vmem:[#allocation9 + $0xf78] sm:$0xff]  ;;  %v2731_v22 = vld [vmem:[#allocation9 + $0xfb0] sm:$0xff] }
 0x3c2   : > { %6290 = vmatpush3.bf16.msra.mxu0 %v6289_v51  ;;  %6068 = vmatprep.subr.bf16.mxu1 %v6067_v29  ;;  %v6309_v51 = vpack.c.bf16 %v2956_v25, %v2949_v1  ;;  %v6091_v29 = vpack.c.bf16 %v2633_v27, %v2626_v26  ;;  %v6119_v25 = vpack.c.bf16 %v2731_v22, %v2724_v24  ;;  %v2723_v26 = vld [vmem:[#allocation9 + $0xf70] sm:$0xff]  ;;  %v2730_v27 = vld [vmem:[#allocation9 + $0xfa8] sm:$0xff] }
 0x3c3   : > { %6292 = vmatprep.subr.bf16.mxu0 %v6291_v33  ;;  %v2970_v33 = vld [vmem:[#allocation9 + $0x1728] sm:$0xff]  ;;  %v2871_v24 = vld [vmem:[#allocation9 + $0x1410] sm:$0xff] }
 0x3c4   : > { %v6312_v39 = vpack.c.bf16 %v2970_v33, %v2963_v31  ;;  %v2759_v31 = vld [vmem:[#allocation9 + $0x1090] sm:$0xff] }
 0x3c5   : > { %6070 = vmatpush1.bf16.msra.mxu1 %v6069_v44  ;;  %v2639_v44 = vld [vmem:[#allocation9 + $0xcd0] sm:$0xff]  ;;  %v6127_v34 = vpack.c.bf16 %v2759_v31, %v2752_v61 }
 0x3c6   : > { %6294 = vmatpush3.bf16.msra.mxu0 %v6293_v46  ;;  %6072 = vmatprep.subr.bf16.mxu1 %v6071_v47  ;;  %v2646_v46 = vld [vmem:[#allocation9 + $0xd08] sm:$0xff]  ;;  %v2977_v47 = vld [vmem:[#allocation9 + $0x1760] sm:$0xff]  ;;  %v2899_v61 = vld [vmem:[#allocation9 + $0x14f0] sm:$0xff] }
 0x3c7   : > { %6296 = vmatprep.subr.bf16.mxu0 %v6295_v52  ;;  %v6097_v52 = vpack.c.bf16 %v2646_v46, %v2639_v44  ;;  %v6315_v53 = vpack.c.bf16 %v2984_v48, %v2977_v47  ;;  %v2765_v47 = vld [vmem:[#allocation9 + $0x10c0] sm:$0xff]  ;;  %v2772_v48 = vld [vmem:[#allocation9 + $0x10f8] sm:$0xff] }
 0x3c9   : > { %6074 = vmatpush1.bf16.msra.mxu1 %v6073_v56  ;;  %v2660_v56 = vld [vmem:[#allocation9 + $0xd78] sm:$0xff] }
 0x3ca   : > { %6298 = vmatpush3.bf16.msra.mxu0 %v6297_v43  ;;  %6076 = vmatprep.subr.bf16.mxu1 %v6075_v57  ;;  %v2991_v43 = vld [vmem:[#allocation9 + $0x17d0] sm:$0xff]  ;;  %v2998_v57 = vld [vmem:[#allocation9 + $0x1808] sm:$0xff]  ;;  %v6101_v62 = vpack.c.bf16 %v2660_v56, %v2653_v55 }
 0x3cb   : > { %6299 = vmatprep.subr.bf16.mxu0 %v6766_v37  ;;  %v6318_v63 = vpack.c.bf16 %v2998_v57, %v2991_v43  ;;  %v2786_v55 = vld [vmem:[#allocation9 + $0x1168] sm:$0xff]  ;;  %v2801_v43 = vld [vmem:[#allocation9 + $0x11e0] sm:$0xff] }
 0x3cc   : > { %v2794_v56 = vld [vmem:[#allocation9 + $0x11a8] sm:$0xff] }
 0x3cd   : > { %4070 = vmatmul.mubr.f32.vlgmr.msra.gmra.mrb[10].mxu0 %v7187_v16  ;;  %6078 = vmatpush1.bf16.msra.mxu1 %v6077_v2  ;;  %v2674_v2 = vld [vmem:[#allocation9 + $0xde8] sm:$0xff]  ;;  %v6139_v58 = vpack.c.bf16 %v2801_v43, %v2794_v56  ;;  %v2941_v56 = vld [vmem:[#allocation9 + $0x1640] sm:$0xff] }
 0x3ce   : > { %6301 = vmatpush3.bf16.msra.mxu0 %v6300_v3  ;;  %6080 = vmatprep.subr.bf16.mxu1 %v6079_v4  ;;  %v3005_v3 = vld [vmem:[#allocation9 + $0x1840] sm:$0xff]  ;;  %v3012_v4 = vld [vmem:[#allocation9 + $0x1878] sm:$0xff]  ;;  %v6105_v6 = vpack.c.bf16 %v2674_v2, %v2667_v0 }
 0x3cf   : > { %6302 = vmatprep.subr.bf16.mxu0 %v6766_v37  ;;  %4736 = vmatprep.mubr.msk.f32.mxu0 %vm6767_vm1, %v7214_v18  ;;  %v6321_v7 = vpack.c.bf16 %v3012_v4, %v3005_v3  ;;  %v2807_v3 = vld [vmem:[#allocation9 + $0x1210] sm:$0xff]  ;;  %v2814_v4 = vld [vmem:[#allocation9 + $0x1248] sm:$0xff] }
 0x3d1   : > { %6082 = vmatpush1.bf16.msra.mxu1 %v6081_v13  ;;  %v2688_v13 = vld [vmem:[#allocation9 + $0xe58] sm:$0xff] }
 0x3d2   : > { %6304 = vmatpush3.bf16.msra.mxu0 %v6303_v14  ;;  %6084 = vmatprep.subr.bf16.mxu1 %v6083_v10  ;;  %v2696_v14 = vld [vmem:[#allocation9 + $0xe98] sm:$0xff]  ;;  %v2703_v10 = vld [vmem:[#allocation9 + $0xed0] sm:$0xff]  ;;  %v6109_v11 = vpack.c.bf16 %v2688_v13, %v2681_v9 }
 0x3d3   : > { %6305 = vmatprep.subr.bf16.mxu0 %v6766_v37  ;;  %v6111_v12 = vpack.c.bf16 %v2703_v10, %v2696_v14  ;;  %v2828_v9 = vld [vmem:[#allocation9 + $0x12b8] sm:$0xff]  ;;  %v2843_v14 = vld [vmem:[#allocation9 + $0x1330] sm:$0xff] }
 0x3d4   : > { %v2836_v13 = vld [vmem:[#allocation9 + $0x12f8] sm:$0xff] }
 0x3d5   : > { %6086 = vmatpush1.bf16.msra.mxu1 %v6085_v20  ;;  %v6113_v20 = vpack.c.bf16 %v2702_v15, %v2695_v40  ;;  %v2842_v40 = vld [vmem:[#allocation9 + $0x1328] sm:$0xff] }
 0x3d6   : > { %6307 = vmatpush3.bf16.msra.mxu0 %v6306_v21  ;;  %6088 = vmatprep.subr.bf16.mxu1 %v6087_v23  ;;  %v2709_v21 = vld [vmem:[#allocation9 + $0xf00] sm:$0xff]  ;;  %v2716_v23 = vld [vmem:[#allocation9 + $0xf38] sm:$0xff]  ;;  %v2850_v15 = vld [vmem:[#allocation9 + $0x1368] sm:$0xff] }
 0x3d7   : > { %6308 = vmatprep.subr.bf16.mxu0 %v6766_v37  ;;  %v6117_v1 = vpack.c.bf16 %v2716_v23, %v2709_v21  ;;  %v2856_v21 = vld [vmem:[#allocation9 + $0x1398] sm:$0xff] }
 0x3d8   : > { %v2864_v23 = vld [vmem:[#allocation9 + $0x13d8] sm:$0xff] }
 0x3d9   : > { %6090 = vmatpush1.bf16.msra.mxu1 %v6089_v28  ;;  %v2738_v28 = vld [vmem:[#allocation9 + $0xfe8] sm:$0xff] }
 0x3da   : > { %6310 = vmatpush3.bf16.msra.mxu0 %v6309_v51  ;;  %6092 = vmatprep.subr.bf16.mxu1 %v6091_v29  ;;  %v6121_v51 = vpack.c.bf16 %v2730_v27, %v2723_v26  ;;  %v2870_v26 = vld [vmem:[#allocation9 + $0x1408] sm:$0xff] }
 0x3db   : > { %6311 = vmatprep.subr.bf16.mxu0 %v6766_v37  ;;  %v2878_v27 = vld [vmem:[#allocation9 + $0x1448] sm:$0xff] }
 0x3dd   : > { %6094 = vmatpush1.bf16.msra.mxu1 %v6093_v38  ;;  %v2758_v38 = vld [vmem:[#allocation9 + $0x1088] sm:$0xff] }
 0x3de   : > { %6313 = vmatpush3.bf16.msra.mxu0 %v6312_v39  ;;  %6096 = vmatprep.subr.bf16.mxu1 %v6095_v42  ;;  %v2766_v39 = vld [vmem:[#allocation9 + $0x10c8] sm:$0xff]  ;;  %v2773_v42 = vld [vmem:[#allocation9 + $0x1100] sm:$0xff]  ;;  %v6129_v44 = vpack.c.bf16 %v2758_v38, %v2751_v35 }
 0x3df   : > { %6314 = vmatprep.subr.bf16.mxu0 %v6766_v37  ;;  %v6131_v46 = vpack.c.bf16 %v2773_v42, %v2766_v39  ;;  %v2898_v35 = vld [vmem:[#allocation9 + $0x14e8] sm:$0xff]  ;;  %v2913_v39 = vld [vmem:[#allocation9 + $0x1560] sm:$0xff] }
 0x3e0   : > { %v2906_v38 = vld [vmem:[#allocation9 + $0x1528] sm:$0xff] }
 0x3e1   : > { %6098 = vmatpush1.bf16.msra.mxu1 %v6097_v52  ;;  %v6133_v52 = vpack.c.bf16 %v2772_v48, %v2765_v47  ;;  %v2912_v47 = vld [vmem:[#allocation9 + $0x1558] sm:$0xff] }
 0x3e2   : > { %6316 = vmatpush3.bf16.msra.mxu0 %v6315_v53  ;;  %6100 = vmatprep.subr.bf16.mxu1 %v6099_v54  ;;  %v6135_v53 = vpack.c.bf16 %v2787_v32, %v2780_v49  ;;  %v2779_v54 = vld [vmem:[#allocation9 + $0x1130] sm:$0xff]  ;;  %v2920_v48 = vld [vmem:[#allocation9 + $0x1598] sm:$0xff] }
 0x3e3   : > { %6317 = vmatprep.subr.bf16.mxu0 %v6766_v37  ;;  %v6137_v57 = vpack.c.bf16 %v2786_v55, %v2779_v54  ;;  %v2927_v49 = vld [vmem:[#allocation9 + $0x15d0] sm:$0xff]  ;;  %v2926_v54 = vld [vmem:[#allocation9 + $0x15c8] sm:$0xff] }
 0x3e4   : > { %v2934_v55 = vld [vmem:[#allocation9 + $0x1608] sm:$0xff] }
 0x3e5   : > { %6102 = vmatpush1.bf16.msra.mxu1 %v6101_v62  ;;  %v2800_v62 = vld [vmem:[#allocation9 + $0x11d8] sm:$0xff] }
 0x3e6   : > { %6319 = vmatpush3.bf16.msra.mxu0 %v6318_v63  ;;  %6104 = vmatprep.subr.bf16.mxu1 %v6103_v60  ;;  %v2808_v63 = vld [vmem:[#allocation9 + $0x1218] sm:$0xff]  ;;  %v2815_v60 = vld [vmem:[#allocation9 + $0x1250] sm:$0xff]  ;;  %v6141_v0 = vpack.c.bf16 %v2800_v62, %v2793_v59 }
 0x3e7   : > { %6320 = vmatprep.subr.bf16.mxu0 %v6766_v37  ;;  %v6115_v37 = vpack.c.bf16 %v2717_v17, %v2710_v50  ;;  %v6143_v2 = vpack.c.bf16 %v2815_v60, %v2808_v63  ;;  %v2857_v50 = vld [vmem:[#allocation9 + $0x13a0] sm:$0xff]  ;;  %v2940_v59 = vld [vmem:[#allocation9 + $0x1638] sm:$0xff]  ;;  %v2955_v63 = vld [vmem:[#allocation9 + $0x16b0] sm:$0xff] }
 0x3e8   : > { %v2948_v62 = vld [vmem:[#allocation9 + $0x1678] sm:$0xff] }
 0x3e9   : > { %6106 = vmatpush1.bf16.msra.mxu1 %v6105_v6  ;;  %v6145_v6 = vpack.c.bf16 %v2814_v4, %v2807_v3  ;;  %v2954_v3 = vld [vmem:[#allocation9 + $0x16a8] sm:$0xff] }
 0x3ea   : > { %6322 = vmatpush3.bf16.msra.mxu0 %v6321_v7  ;;  %6108 = vmatprep.subr.bf16.mxu1 %v6107_v8  ;;  %v6147_v7 = vpack.c.bf16 %v2829_v5, %v2822_v45  ;;  %v2821_v8 = vld [vmem:[#allocation9 + $0x1280] sm:$0xff]  ;;  %v2962_v4 = vld [vmem:[#allocation9 + $0x16e8] sm:$0xff] }
 0x3eb   : > { %v6149_v10 = vpack.c.bf16 %v2828_v9, %v2821_v8  ;;  %v2969_v45 = vld [vmem:[#allocation9 + $0x1720] sm:$0xff]  ;;  %v2983_v8 = vld [vmem:[#allocation9 + $0x1790] sm:$0xff] }
 0x3ec   : > { %3717 = vmatmul.mubr.f32.vlgmr.msra.gmra.mrb[12].mxu1 %v7161_v36  ;;  %v2745_v36 = vld [vmem:[#allocation9 + $0x1020] sm:$0xff]  ;;  %v6187_v5 = vpack.c.bf16 %v2969_v45, %v2962_v4 }
 0x3ed   : > { %4737 = vmatmul.mubr.f32.vlgmr.msra.gmra.mrb[12].mxu0 %v7184_v19  ;;  %6110 = vmatpush1.bf16.msra.mxu1 %v6109_v11  ;;  %v6123_v29 = vpack.c.bf16 %v2745_v36, %v2738_v28  ;;  %v6151_v11 = vpack.c.bf16 %v2843_v14, %v2836_v13  ;;  %v2885_v28 = vld [vmem:[#allocation9 + $0x1480] sm:$0xff]  ;;  %v2975_v14 = vld [vmem:[#allocation9 + $0x1750] sm:$0xff] }
 0x3ee   : > { %3787 = vmatprep.mubr.f32.mxu1 %v7189_v41  ;;  %6112 = vmatprep.subr.bf16.mxu1 %v6111_v12  ;;  %v2744_v41 = vld [vmem:[#allocation9 + $0x1018] sm:$0xff]  ;;  %v2835_v12 = vld [vmem:[#allocation9 + $0x12f0] sm:$0xff] }
 0x3ef   : > { %v6125_v33 = vpack.c.bf16 %v2744_v41, %v2737_v30  ;;  %v6153_v17 = vpack.c.bf16 %v2842_v40, %v2835_v12  ;;  %v2884_v30 = vld [vmem:[#allocation9 + $0x1478] sm:$0xff]  ;;  %v2997_v12 = vld [vmem:[#allocation9 + $0x1800] sm:$0xff] }
 0x3f0   : > { %v2892_v41 = vld [vmem:[#allocation9 + $0x14b8] sm:$0xff] }
 0x3f1   : > { %6114 = vmatpush1.bf16.msra.mxu1 %v6113_v20  ;;  %v6155_v20 = vpack.c.bf16 %v2857_v50, %v2850_v15  ;;  %v2989_v50 = vld [vmem:[#allocation9 + $0x17c0] sm:$0xff] }
 0x3f2   : > { %6116 = vmatprep.subr.bf16.mxu1 %v6115_v37  ;;  %v2849_v37 = vld [vmem:[#allocation9 + $0x1360] sm:$0xff] }
 0x3f3   : > { %v6157_v22 = vpack.c.bf16 %v2856_v21, %v2849_v37  ;;  %v3004_v21 = vld [vmem:[#allocation9 + $0x1838] sm:$0xff] }
 0x3f5   : > { %6118 = vmatpush1.bf16.msra.mxu1 %v6117_v1  ;;  %v6159_v1 = vpack.c.bf16 %v2871_v24, %v2864_v23  ;;  %v3011_v23 = vld [vmem:[#allocation9 + $0x1870] sm:$0xff] }
 0x3f6   : > { %6120 = vmatprep.subr.bf16.mxu1 %v6119_v25  ;;  %v2863_v25 = vld [vmem:[#allocation9 + $0x13d0] sm:$0xff] }
 0x3f7   : > { %v6161_v36 = vpack.c.bf16 %v2870_v26, %v2863_v25 }
 0x3f9   : > { %6122 = vmatpush1.bf16.msra.mxu1 %v6121_v51  ;;  %v6163_v51 = vpack.c.bf16 %v2885_v28, %v2878_v27  ;;  %v6199_v27 = vpack.c.bf16 %v3011_v23, %v3004_v21  ;;  %v3003_v28 = vld [vmem:[#allocation9 + $0x1830] sm:$0xff] }
 0x3fa   : > { %6124 = vmatprep.subr.bf16.mxu1 %v6123_v29  ;;  %v2877_v29 = vld [vmem:[#allocation9 + $0x1440] sm:$0xff] }
 0x3fb   : > { %v6165_v31 = vpack.c.bf16 %v2884_v30, %v2877_v29 }
 0x3fd   : > { %6126 = vmatpush1.bf16.msra.mxu1 %v6125_v33  ;;  %v6167_v33 = vpack.c.bf16 %v2899_v61, %v2892_v41  ;;  %v4153_v61 = vld [vmem:[#allocation3 + $0x8] sm:$0x7] }
 0x3fe   : > { %6128 = vmatprep.subr.bf16.mxu1 %v6127_v34  ;;  %v2891_v34 = vld [vmem:[#allocation9 + $0x14b0] sm:$0xff] }
 0x3ff   : > { %v6169_v42 = vpack.c.bf16 %v2898_v35, %v2891_v34 }
 0x401   : > { %6130 = vmatpush1.bf16.msra.mxu1 %v6129_v44  ;;  %v6171_v44 = vpack.c.bf16 %v2913_v39, %v2906_v38 }
 0x402   : > { %6132 = vmatprep.subr.bf16.mxu1 %v6131_v46  ;;  %v2905_v46 = vld [vmem:[#allocation9 + $0x1520] sm:$0xff] }
 0x403   : > { %v6173_v32 = vpack.c.bf16 %v2912_v47, %v2905_v46 }
 0x405   : > { %6134 = vmatpush1.bf16.msra.mxu1 %v6133_v52  ;;  %v6175_v52 = vpack.c.bf16 %v2927_v49, %v2920_v48 }
 0x406   : > { %6136 = vmatprep.subr.bf16.mxu1 %v6135_v53  ;;  %v2919_v53 = vld [vmem:[#allocation9 + $0x1590] sm:$0xff] }
 0x407   : > { %v6177_v43 = vpack.c.bf16 %v2926_v54, %v2919_v53 }
 0x409   : > { %6138 = vmatpush1.bf16.msra.mxu1 %v6137_v57  ;;  %v6179_v57 = vpack.c.bf16 %v2941_v56, %v2934_v55  ;;  %v4161_v55 = vld [vmem:[#allocation2 + $0x10] sm:$0x1]  ;;  %v4162_v56 = vld [vmem:[#allocation2 + $0x18] sm:$0x1] }
 0x40a   : > { %6140 = vmatprep.subr.bf16.mxu1 %v6139_v58  ;;  %v2933_v58 = vld [vmem:[#allocation9 + $0x1600] sm:$0xff] }
 0x40b   : > { %v6181_v60 = vpack.c.bf16 %v2940_v59, %v2933_v58 }
 0x40d   : > { %6142 = vmatpush1.bf16.msra.mxu1 %v6141_v0  ;;  %v6183_v0 = vpack.c.bf16 %v2955_v63, %v2948_v62 }
 0x40e   : > { %6144 = vmatprep.subr.bf16.mxu1 %v6143_v2  ;;  %v2947_v2 = vld [vmem:[#allocation9 + $0x1670] sm:$0xff] }
 0x411   : > { %6146 = vmatpush1.bf16.msra.mxu1 %v6145_v6  ;;  %v2961_v6 = vld [vmem:[#allocation9 + $0x16e0] sm:$0xff] }
 0x412   : > { %6148 = vmatprep.subr.bf16.mxu1 %v6147_v7  ;;  %v2976_v7 = vld [vmem:[#allocation9 + $0x1758] sm:$0xff] }
 0x413   : > { %v6191_v13 = vpack.c.bf16 %v2983_v8, %v2976_v7 }
 0x415   : > { %6150 = vmatpush1.bf16.msra.mxu1 %v6149_v10  ;;  %v2982_v10 = vld [vmem:[#allocation9 + $0x1788] sm:$0xff] }
 0x416   : > { %6152 = vmatprep.subr.bf16.mxu1 %v6151_v11  ;;  %v2990_v11 = vld [vmem:[#allocation9 + $0x17c8] sm:$0xff]  ;;  %v6193_v40 = vpack.c.bf16 %v2982_v10, %v2975_v14 }
 0x417   : > { %v6195_v15 = vpack.c.bf16 %v2997_v12, %v2990_v11 }
 0x419   : > { %6154 = vmatpush1.bf16.msra.mxu1 %v6153_v17  ;;  %v2996_v17 = vld [vmem:[#allocation9 + $0x17f8] sm:$0xff] }
 0x41a   : > { %6156 = vmatprep.subr.bf16.mxu1 %v6155_v20  ;;  %v6197_v26 = vpack.c.bf16 %v2996_v17, %v2989_v50 }
 0x41d   : > { %6158 = vmatpush1.bf16.msra.mxu1 %v6157_v22 }
 0x41e   : > { %6160 = vmatprep.subr.bf16.mxu1 %v6159_v1 }
 0x421   : > { %6162 = vmatpush1.bf16.msra.mxu1 %v6161_v36  ;;  %v3010_v36 = vld [vmem:[#allocation9 + $0x1868] sm:$0xff] }
 0x422   : > { %6164 = vmatprep.subr.bf16.mxu1 %v6163_v51  ;;  %v4152_v51 = vld [vmem:[#allocation3] sm:$0x7]  ;;  %v6201_v41 = vpack.c.bf16 %v3010_v36, %v3003_v28 }
 0x425   : > { %6166 = vmatpush1.bf16.msra.mxu1 %v6165_v31 }
 0x426   : > { %6168 = vmatprep.subr.bf16.mxu1 %v6167_v33 }
 0x429   : > { %6170 = vmatpush1.bf16.msra.mxu1 %v6169_v42 }
 0x42a   : > { %6172 = vmatprep.subr.bf16.mxu1 %v6171_v44 }
 0x42c   : > { %3788 = vmatmul.mubr.f32.vlgmr.msra.gmra.mrb[12].mxu1 %v7187_v16  ;;  %v6185_v16 = vpack.c.bf16 %v2954_v3, %v2947_v2 }
 0x42d   : > { %6174 = vmatpush1.bf16.msra.mxu1 %v6173_v32  ;;  %3858 = vmatprep.mubr.f32.mxu1 %v7214_v18  ;;  %v2968_v18 = vld [vmem:[#allocation9 + $0x1718] sm:$0xff] }
 0x42e   : > { %6176 = vmatprep.subr.bf16.mxu1 %v6175_v52  ;;  %v6189_v9 = vpack.c.bf16 %v2968_v18, %v2961_v6 }
 0x431   : > { %6178 = vmatpush1.bf16.msra.mxu1 %v6177_v43 }
 0x432   : > { %6180 = vmatprep.subr.bf16.mxu1 %v6179_v57 }
 0x435   : > { %6182 = vmatpush1.bf16.msra.mxu1 %v6181_v60 }
 0x436   : > { %6184 = vmatprep.subr.bf16.mxu1 %v6183_v0 }
 0x439   : > { %6186 = vmatpush1.bf16.msra.mxu1 %v6185_v16 }
 0x43a   : > { %6188 = vmatprep.subr.bf16.mxu1 %v6187_v5 }
 0x43d   : > { %6190 = vmatpush1.bf16.msra.mxu1 %v6189_v9 }
 0x43e   : > { %6192 = vmatprep.subr.bf16.mxu1 %v6191_v13 }
 0x43f   : > { %v3292_v20 = vpop.f32.mrb[10].mxu1  ;;  %v3576_v37 = vpop.f32.mrb[4].mxu0 }
 0x440   : > { %4145 = vst [vmem:[#allocation2] sm:$0xff] %v3292_v20  ;;  %v3294_v24 = vpop.f32.mrb[11].mxu1  ;;  %v3578_v22 = vpop.f32.mrb[5].mxu0  ;;  %v4167_v29 = vrot.slane %v3576_v37, 7 }
 0x441   : > { %4147 = vst.msk [vmem:[#allocation2 + $0x8] sm:$0xff] %vm4146_vm2, %v3294_v24  ;;  %6194 = vmatpush1.bf16.msra.mxu1 %v6193_v40  ;;  %v4168_v1 = vrot.slane %v3578_v22, 7  ;;  %v4166_v25 = vrot.slane %v3294_v24, 7  ;;  %v4195_v30 = vrot.slane %v3578_v22, 6 }
 0x442   : > { %6196 = vmatprep.subr.bf16.mxu1 %v6195_v15 }
 0x443   : > { %4173 = vrot.lane.b32.xlu1 %v4168_v1, %s6768_s27  ;;  %4169 = vrot.lane.b32.xlu0 %v4166_v25, %s6768_s27 }
 0x445   : > { %6198 = vmatpush1.bf16.msra.mxu1 %v6197_v26 }
 0x446   : > { %6200 = vmatprep.subr.bf16.mxu1 %v6199_v27 }
 0x447   : > { %v4150_v31 = vld [vmem:[#allocation2] sm:$0x7]  ;;  %4197 = vrot.lane.b32.xlu1 %v4195_v30, %s6769_s10  ;;  %4171 = vrot.lane.b32.xlu0 %v4167_v29, %s6768_s27  ;;  %v4247_v30 = vld [vmem:[%s269_s14 + $0x8] sm:$0xff] }
 0x448   : > { %v4154_v33 = vadd.f32 %v4152_v51, %v4150_v31  ;;  %v4151_v34 = vld [vmem:[#allocation2 + $0x8] sm:$0x7] }
 0x449   : > { %v4155_v35 = vadd.f32 %v4153_v61, %v4151_v34  ;;  %6202 = vmatpush1.bf16.msra.mxu1 %v6201_v41  ;;  %v4246_v41 = vld [vmem:[%s269_s14] sm:$0xff]  ;;  %s6632_s14 = scalar_lea.vmem %s6631_s15, 512 }
 0x44a   : > { %4156 = vst [vmem:[#allocation2] sm:$0x7] %v4154_v33  ;;  %p6634_p10 = scmp.lt.s32.totalorder %s6632_s14, %s6626_s28 }
 0x44b   : > { %4158 = vst.msk [vmem:[#allocation2 + $0x8] sm:$0x7] %vm4157_vm3, %v4155_v35 }
 0x44c   : > { %3859 = vmatmul.mubr.f32.vlgmr.msra.gmra.mrb[12].mxu1 %v7184_v19  ;;  %p6635_p8 = por %p6634_p10, %p6633_p1 }
 0x44e   : > { %p6636_p2 = pnand %p6635_p8, %p6629_p7 }
 0x451   : > { %v4159_v58 = vld [vmem:[#allocation2] sm:$0xfe] }
 0x452   : > { %v4160_v19 = vld [vmem:[#allocation2 + $0x8] sm:$0xfe] }
 0x460   : > { %v4579_v38 = vpop.f32.mrb[6].mxu0 }
 0x461   : > { %v4580_v39 = vpop.f32.mrb[7].mxu0 }
 0x462   : > { %v4581_v42 = vadd.f32 %v4580_v39, %v4579_v38 }
 0x480   : > { %v4614_v44 = vpop.f32.mrb[8].mxu0 }
 0x481   : > { %v4615_v46 = vpop.f32.mrb[9].mxu0 }
 0x482   : > { %v4616_v47 = vadd.f32 %v4615_v46, %v4614_v44 }
 0x484   : > { %v4002_v48 = vadd.f32 %v4616_v47, %v4581_v42 }
 0x4a0   : > { %v4649_v49 = vpop.f32.mrb[10].mxu0 }
 0x4a1   : > { %v4650_v32 = vpop.f32.mrb[11].mxu0 }
 0x4a2   : > { %v4651_v52 = vadd.f32 %v4650_v32, %v4649_v49 }
 0x4a4   : > { %v4072_v53 = vadd.f32 %v4651_v52, %v4002_v48 }
 0x4b5   : > { %v4170_v54 = vpop.permute.xlu0 %4169  ;;  %v4174_v43 = vpop.permute.xlu1 %4173 }
 0x4b9   : > { %v4172_v57 = vpop.permute.xlu0 %4171  ;;  %v4198_v9 = vpop.permute.xlu1 %4197 }
 0x4ba   : > { %v4176_v59 = vsel %vm4175_vm4, %v4170_v54, %v4172_v57  ;;  %v4177_v62 = vsel %vm4175_vm4, %v4172_v57, %v4174_v43 }
 0x4bb   : > { %v4180_v63 = vadd.f32 %v4176_v59, %v4159_v58  ;;  %v4181_v60 = vadd.f32 %v4177_v62, %v4160_v19  ;;  %v4182_v0 = vadd.f32 %v4176_v59, %v4161_v55  ;;  %v4183_v2 = vadd.f32 %v4177_v62, %v4162_v56 }
 0x4bd   : > { %4184 = vst [vmem:[#allocation2] sm:$0xfe] %v4180_v63  ;;  %4186 = vst.msk [vmem:[#allocation2 + $0x8] sm:$0xfe] %vm4185_vm5, %v4181_v60 }
 0x4be   : > { %4187 = vst [vmem:[#allocation2 + $0x10] sm:$0x1] %v4182_v0  ;;  %4189 = vst.msk [vmem:[#allocation2 + $0x18] sm:$0x1] %vm4188_vm6, %v4183_v2 }
 0x4c0   : > { %v4141_v3 = vpop.f32.mrb[12].mxu0 }
 0x4c1   : > { %v4142_v4 = vadd.f32 %v4141_v3, %v4072_v53  ;;  %v4738_v45 = vpop.f32.mrb[13].mxu0 }
 0x4c3   : > { %v4223_v7 = vrot.slane %v4142_v4, 5 }
 0x4c4   : > { %v4191_v13 = vld [vmem:[#allocation2 + $0x8] sm:$0xfc]  ;;  %v4190_v12 = vld [vmem:[#allocation2] sm:$0xfc] }
 0x4c5   : > { %v4193_v14 = vld [vmem:[#allocation2 + $0x18] sm:$0x3]  ;;  %v4192_v40 = vld [vmem:[#allocation2 + $0x10] sm:$0x3] }
 0x51f   : > { %v3860_v16 = vpop.f32.mrb[12].mxu1 }
 0x520   : > { %v4196_v5 = vrot.slane %v3860_v16, 6  ;;  %v4221_v6 = vrot.slane %v3860_v16, 5  ;;  %v3862_v18 = vpop.f32.mrb[13].mxu1 }
 0x521   : > { %v4222_v8 = vrot.slane %v3862_v18, 5 }
 0x522   : > { %4224 = vrot.lane.b32.xlu1 %v4221_v6, %s6770_s2  ;;  %4199 = vrot.lane.b32.xlu0 %v4196_v5, %s6769_s10 }
 0x526   : > { %4228 = vrot.lane.b32.xlu1 %v4223_v7, %s6770_s2  ;;  %4226 = vrot.lane.b32.xlu0 %v4222_v8, %s6770_s2 }
 0x594   : > { %v4200_v10 = vpop.permute.xlu0 %4199  ;;  %v4225_v11 = vpop.permute.xlu1 %4224 }
 0x595   : > { %v4202_v15 = vsel %vm4201_vm7, %v4198_v9, %v4200_v10  ;;  %v4206_v50 = vadd.f32 %v4200_v10, %v4191_v13  ;;  %v4208_v17 = vadd.f32 %v4200_v10, %v4193_v14 }
 0x596   : > { %v4205_v20 = vadd.f32 %v4202_v15, %v4190_v12  ;;  %v4207_v37 = vadd.f32 %v4202_v15, %v4192_v40 }
 0x597   : > { %4211 = vst.msk [vmem:[#allocation2 + $0x8] sm:$0xfc] %vm4210_vm8, %v4206_v50 }
 0x598   : > { %4214 = vst.msk [vmem:[#allocation2 + $0x18] sm:$0x3] %vm4213_vm9, %v4208_v17  ;;  %4209 = vst [vmem:[#allocation2] sm:$0xfc] %v4205_v20  ;;  %v4229_v21 = vpop.permute.xlu1 %4228  ;;  %v4227_v23 = vpop.permute.xlu0 %4226 }
 0x599   : > { %4212 = vst [vmem:[#allocation2 + $0x10] sm:$0x3] %v4207_v37  ;;  %v4232_v1 = vsel %vm4230_vm10, %v4227_v23, %v4229_v21  ;;  %v4231_v27 = vsel %vm4230_vm10, %v4225_v11, %v4227_v23 }
 0x59e   : > { %v4216_v24 = vld [vmem:[#allocation2 + $0x8] sm:$0xf8] }
 0x59f   : > { %v4218_v22 = vld [vmem:[#allocation2 + $0x18] sm:$0x7]  ;;  %v4215_v25 = vld [vmem:[#allocation2] sm:$0xf8]  ;;  %v4236_v28 = vadd.f32 %v4232_v1, %v4216_v24 }
 0x5a0   : > { %v4217_v26 = vld [vmem:[#allocation2 + $0x10] sm:$0x7]  ;;  %v4238_v36 = vadd.f32 %v4232_v1, %v4218_v22  ;;  %v4235_v51 = vadd.f32 %v4231_v27, %v4215_v25 }
 0x5a1   : > { %v4237_v29 = vadd.f32 %v4231_v27, %v4217_v26  ;;  %4241 = vst.msk [vmem:[#allocation2 + $0x8] sm:$0xf8] %vm4240_vm11, %v4236_v28 }
 0x5a2   : > { %4243 = vst.msk [vmem:[#allocation2 + $0x18] sm:$0x7] %vm4157_vm3, %v4238_v36  ;;  %4239 = vst [vmem:[#allocation2] sm:$0xf8] %v4235_v51 }
 0x5a3   : > { %4242 = vst [vmem:[#allocation2 + $0x10] sm:$0x7] %v4237_v29 }
 0x5a8   : > { %v4245_v31 = vld [vmem:[#allocation2 + $0x8] sm:$0xff] }
 0x5a9   : > { %v4253_v61 = vld [vmem:[#allocation2 + $0x18] sm:$0x7]  ;;  %v4244_v34 = vld [vmem:[#allocation2] sm:$0xff]  ;;  %v4249_v35 = vmul.f32 %v4247_v30, %v4245_v31 }
 0x5aa   : > { %v4252_v33 = vld [vmem:[#allocation2 + $0x10] sm:$0x7]  ;;  %4255 = vst.msk [vmem:[#allocation3 + $0x8] sm:$0x7] %vm4157_vm3, %v4253_v61  ;;  %v4248_v38 = vmul.f32 %v4246_v41, %v4244_v34 }
 0x5ab   : > { %4254 = vst [vmem:[#allocation3] sm:$0x7] %v4252_v33  ;;  %4251 = vst.msk [vmem:[%s7103_s7 + $0x8] sm:$0xff] %vm4146_vm2, %v4249_v35 }
 0x5ac   : > { %4250 = vst [vmem:[%s7103_s7] sm:$0xff] %v4248_v38 }
 0x5ad   : > { %6639 = shalt.err (!%p6636_p2)
}
 0x5ae   : > { %s6640_s8 = scalar_lea.hbm %s7246_s11, 256  ;;  %s6644_s27 = scalar_lea.hbm %s7359_s13, 1024 }
 0x5af   : > { %p6641_p5 = scmp.ne.s32.totalorder %s7246_s11, %s6640_s8  ;;  %p6645_p6 = scmp.lt.u32.totalorder %s7246_s11, %s7359_s13 }
 0x5b0   : > { %p6646_p12 = scmp.lt.u32.totalorder %s6644_s27, %s6640_s8  ;;  %p6648_p3 = scmp.lt.u32.totalorder %s6640_s8, %s7246_s11 }
 0x5b1   : > { %p6642_p9 = pnand %p6641_p5, %p7360_p0 }
 0x5b2   : > { %p6647_p11 = por %p6646_p12, %p6645_p6 }
 0x5b3   : > { %p6643_p13 = pneg %p6642_p9 }
 0x5b4   : > { %p6649_p4 = por %p6648_p3, %p6647_p11 }
 0x5b6   : > { %p6650_p7 = pnand %p6649_p4, %p6643_p13 }
 0x5b8   : > { %6653 = shalt.err (!%p6650_p7)
}
 0x5b9   : > { %6375 = dma.vmem_to_hbm [thread:$0]  (%p7360_p0), %s7248_s12, 256, %s7246_s11, %s4257_s20  }
 0x5ba PF: > { %s7361_s9 = sld [smem:[#allocation20_spill]]  ;;  %p6400_p1 = scmp.ge.s32.totalorder %s6756_s25, 2 }
 0x5bb   : > { %s4285_s5 = sand.u32 1, %s6728_s18  }
 0x5bc   : > { %s4286_s30 = scalar_lea.sflag [#allocation6], %s4285_s5 }
 0x5c0   : > { %p7362_p10 = scmp.ne.s32.totalorder %s7361_s9, 0 }
 0x5c2   : > { %p6392_p8 = pnand %p6400_p1, %p7362_p10 }
 0x5c4   : > { %6711 = dma.done.wait (!%p6392_p8), %s4286_s30, 256  }
 0x5c5   : > { %6713 = vsyncadd (!%p6392_p8), %s4286_s30, 4294967040  ;;  %s24_s25 = sadd.s32 1, %s6756_s25   ;;  %s7363_s29 = sld [smem:[#allocation17_spill]] }
 0x5c6   : > { %p21_p2 = scmp.ge.s32.totalorder %s24_s25, 6   ;;  %s7364_s20 = sld [smem:[#allocation21_spill]] }
 0x5c7   : > { %s7365_s4 = sld [smem:[#allocation18_spill]]  ;;  %s7366_s12 = sld [smem:[#allocation19_spill]] }
 0x5c8   : > { %s7367_s15 = smov %s6720_s16  ;;  %s7368_s16 = smov %s6724_s17 }
 0x5c9   : > { %s7369_s17 = smov %s7025_s1  ;;  %s7370_s18 = smov %s6732_s19 }
 0x5ca   : > { %s7372_s21 = smov %s6748_s23  ;;  %s7373_s22 = smov %s6752_s24 }
 0x5cb   : > { %s7371_s19 = smov %s7363_s29  ;;  %23 = sbr.rel (!%p21_p2) target bundleno = 16 (0x10), region = 106 }
 0x5cd   : > { %s7374_s23 = smov %s7365_s4  ;;  %s7375_s24 = smov %s7366_s12 }
 0x5d2   :  { %4291 = vsyncpa [#allocation5], 1 }
 0x5d3   :  { %4293 = vsyncpa [#allocation5 + $0x1], 1 }
 0x5d4   :  { %4294 = vsyncpa [#allocation8], 1 }
 0x5d5   :  { %4295 = vsyncpa [#allocation11], 1 }
 0x5d6   :  { %4297 = vsyncpa [#allocation11 + $0x1], 1 }
 0x5d7   :  { %4298 = vsyncpa [#allocation6], 1 }
 0x5d8   :  { %4300 = vsyncpa [#allocation6 + $0x1], 1 }

</bundles_post_ra>
